<compile_context>
chip_gen: v7x
topology: tpu7x:2x2x1
jax: 0.10.0
libtpu: 0.0.40
codegen_flags: <defaults>
</compile_context>

<pallas_src>
import functools

import numpy as np

import jax
import jax.numpy as jnp
from jax.experimental import pallas as pl
from jax.experimental.pallas import tpu as pltpu

EPS = 1e-5  # InstanceNorm2d default eps


# ---------------------------------------------------------------------------
# Constant structure helpers (trace-time numpy; shapes are static).
# ---------------------------------------------------------------------------
def _reflect(t, n):
    """ReflectionPad2d index map: source index for (possibly out-of-range) t."""
    if t < 0:
        return -t
    if t >= n:
        return 2 * (n - 1) - t
    return t


def _reflect_idx(n, pad):
    """Row indices of the reflection-padded axis: length n + 2*pad."""
    return np.array([_reflect(t - pad, n) for t in range(n + 2 * pad)], np.int32)


def _col_select(W, KW, pad):
    """S[dx, w_src, j] = 1 iff input column w_src is horizontal tap dx for output col j."""
    S = np.zeros((KW, W, W), np.float32)
    for dx in range(KW):
        for j in range(W):
            S[dx, _reflect(j + dx - pad, W), j] = 1.0
    return S


def _fold_conv_weights(w, S):
    """Fold horizontal taps + horizontal reflection + channel mixing into one
    K-stacked band matrix.

    w: (KH, KW, Cin, Cout) conv weights (HWIO);  S: (KW, W, W) column-selection.
    Returns B_stacked: (KH*W*Cin, W*Cout) with
        B[dy*(W*Cin) + w'*Cin + ci, j*Cout + co]
            = sum_dx [reflect(j+dx-pad)==w'] * w[dy,dx,ci,co]
    so a full reflection-padded conv is a single matmul
        Y = X_taps @ B_stacked
    where X_taps[i, dy*(W*Cin)+w'*Cin+ci] = X_vpad[i+dy, w'*Cin+ci]
    (vertical reflection applied to X, horizontal folded into B).
    """
    KH, KW, Cin, Cout = w.shape
    W = S.shape[1]
    B5 = jnp.einsum("xkj,dxio->dkijo", jnp.asarray(S), w)  # (KH, W, Cin, W, Cout)
    return B5.reshape(KH * W * Cin, W * Cout)


def _pick_b_tile(n):
    """Largest divisor of n that is <= 16 (M = B_TILE*H up to 256 for MXU fill),
    preferring a grid of >= 2 steps so both v7x TensorCores get work."""
    best = 1
    for b in range(1, min(16, n) + 1):
        if n % b == 0 and (n // b >= 2 or n == 1):
            best = b
    return best


# ---------------------------------------------------------------------------
# Weight preparation (run ONCE, outside the per-call jit).
# ---------------------------------------------------------------------------
def prepare_encoder_weights(params, W):
    """Fold conv weights into K-stacked band matrices + the IN channel-spreader."""
    C = params["w1"].shape[-1]  # 16 feature channels
    s7 = _col_select(W, 7, 3)
    s3 = _col_select(W, 3, 1)
    # Channel-spreading matrix P[w1*C+c1, w2*C+c2] = [c1 == c2]: one matmul both
    # sums a (.., W*C) row over the W positions of each channel AND broadcasts
    # the per-channel result back lane-dense.
    g = np.tile(np.eye(C, dtype=np.float32), (W, 1))       # (W*C, C)
    p = jnp.asarray(g @ g.T)                               # (W*C, W*C), f32
    # Conv biases are intentionally NOT used: InstanceNorm2d(affine=False)
    # subtracts the per-channel mean, which cancels an additive bias exactly.
    fold = lambda w, s: _fold_conv_weights(w, s).astype(jnp.bfloat16)
    return {
        "b1":  fold(params["w1"], s7),        # (7*W*3,  W*16)
        "b11": fold(params["rb1_w1"], s3),    # (3*W*16, W*16)
        "b12": fold(params["rb1_w2"], s3),
        "b21": fold(params["rb2_w1"], s3),
        "b22": fold(params["rb2_w2"], s3),
        "p":   p,
    }


# ---------------------------------------------------------------------------
# Fused whole-encoder kernel (B_TILE samples per grid step).
# ---------------------------------------------------------------------------
def _encoder_kernel(x_ref, b1_ref, b11_ref, b12_ref, b21_ref, b22_ref, p_ref,
                    out_ref, *, H, W, C, B):
    WC = W * C
    BH = B * H
    inv_hw = 1.0 / (H * W)

    def inorm(acc):
        # acc: (B, H, WC) f32 -> per-sample, per-channel InstanceNorm (affine=False).
        s1 = jnp.sum(acc, axis=1)                        # (B, WC) sublane reduce
        s2 = jnp.sum(acc * acc, axis=1)                  # (B, WC)
        stats = jnp.concatenate([s1, s2], axis=0)        # (2B, WC)
        spread = jnp.dot(stats, p_ref[...],
                         preferred_element_type=jnp.float32) * inv_hw
        mean = spread[:B].reshape(B, 1, WC)
        ex2 = spread[B:].reshape(B, 1, WC)
        var = ex2 - mean * mean                          # biased variance
        return (acc - mean) * jax.lax.rsqrt(var + EPS)

    def conv_in_3x3(h, b_ref):
        # h: (B, H, WC) f32. ReflectionPad2d(1) -> Conv3x3 -> InstanceNorm.
        # Vertical reflection via sublane slices; 3 taps K-concatenated so the
        # whole conv is ONE bf16 MXU matmul with K = 3*WC.
        hpad = jnp.concatenate([h[:, 1:2, :], h, h[:, H - 2:H - 1, :]], axis=1)
        taps = jnp.concatenate([hpad[:, dy:dy + H, :] for dy in range(3)],
                               axis=-1)                  # (B, H, 3*WC)
        taps_b = taps.reshape(BH, 3 * WC).astype(jnp.bfloat16)
        acc = jnp.dot(taps_b, b_ref[...],
                      preferred_element_type=jnp.float32).reshape(B, H, WC)
        return inorm(acc)

    # conv1_b: RefPad(3) -> Conv7x7(3->16) -> IN -> ReLU.
    # Tap stack was pre-built in the wrapper (vertical reflection in the layout,
    # horizontal reflection folded into b1), so this is one matmul.
    x_taps = x_ref[...]                                  # (B, H, 7*W*Cin) bf16
    acc1 = jnp.dot(x_taps.reshape(BH, x_taps.shape[-1]), b1_ref[...],
                   preferred_element_type=jnp.float32).reshape(B, H, WC)
    h = jnp.maximum(inorm(acc1), 0.0)

    # conv3_b: ResidualBlock(16)
    t = jnp.maximum(conv_in_3x3(h, b11_ref), 0.0)
    h = h + conv_in_3x3(t, b12_ref)

    # conv4_b: ResidualBlock(16)
    t = jnp.maximum(conv_in_3x3(h, b21_ref), 0.0)
    h = h + conv_in_3x3(t, b22_ref)

    out_ref[...] = h.astype(out_ref.dtype)


# ---------------------------------------------------------------------------
# Wrapper: layout plumbing + the single pallas_call.
# ---------------------------------------------------------------------------
@jax.jit
def encoder_forward(x_nchw, folded):
    N, Cin, H, W = x_nchw.shape
    WC = folded["p"].shape[0]
    C = WC // W
    KH1 = folded["b1"].shape[0] // (W * Cin)             # 7
    pad1 = (KH1 - 1) // 2

    # NCHW (PyTorch) -> lane-packed (N, H, W*Cin), then vertical reflection pad +
    # tap K-concat for conv1 (wrapper-side layout plumbing; tiny).
    xw = jnp.transpose(x_nchw, (0, 2, 3, 1)).reshape(N, H, W * Cin)
    ridx = jnp.asarray(_reflect_idx(H, pad1))
    xv = jnp.take(xw, ridx, axis=1)                      # (N, H+2*pad1, W*Cin)
    x_taps1 = jnp.concatenate([xv[:, dy:dy + H, :] for dy in range(KH1)],
                              axis=-1).astype(jnp.bfloat16)   # (N, H, KH1*W*Cin)
    D1 = KH1 * W * Cin

    B_TILE = _pick_b_tile(N)
    grid = (N // B_TILE,)

    const2 = lambda n: (0, 0)

    out = pl.pallas_call(
        functools.partial(_encoder_kernel, H=H, W=W, C=C, B=B_TILE),
        out_shape=jax.ShapeDtypeStruct((N, H, WC), x_nchw.dtype),
        grid_spec=pltpu.PrefetchScalarGridSpec(
            num_scalar_prefetch=0,
            grid=grid,                                   # B_TILE samples per step
            in_specs=[
                pl.BlockSpec((B_TILE, H, D1), lambda n: (n, 0, 0)),
                pl.BlockSpec(folded["b1"].shape, const2),
                pl.BlockSpec(folded["b11"].shape, const2),
                pl.BlockSpec(folded["b12"].shape, const2),
                pl.BlockSpec(folded["b21"].shape, const2),
                pl.BlockSpec(folded["b22"].shape, const2),
                pl.BlockSpec(folded["p"].shape, const2),
            ],
            out_specs=pl.BlockSpec((B_TILE, H, WC), lambda n: (n, 0, 0)),
        ),
        # Batch axis is embarrassingly parallel -> shard across v7x's 2 TensorCores.
        compiler_params=pltpu.CompilerParams(
            dimension_semantics=("parallel",),
        ),
    )(x_taps1, folded["b1"], folded["b11"], folded["b12"],
      folded["b21"], folded["b22"], folded["p"])

    # lane-packed (N, H, W*C) -> NCHW to match PyTorch output convention.
    # TODO(synk): drop this transpose if the consumer accepts channel-last.
    return jnp.transpose(out.reshape(N, H, W, C), (0, 3, 1, 2))


def init_encoder_params(key):
    """Deterministic synthetic weights: conv weights ~ N(0, 0.02) (HWIO layout),
    matching weights_init_normal. Conv biases are omitted because InstanceNorm
    (affine=False) cancels them exactly (see prepare_encoder_weights)."""
    keys = jax.random.split(key, 5)

    def conv_w(k, kh, kw, cin, cout):
        return jax.random.normal(k, (kh, kw, cin, cout), jnp.float32) * 0.02

    return {
        "w1": conv_w(keys[0], 7, 7, 3, 16),        # conv1_b
        "rb1_w1": conv_w(keys[1], 3, 3, 16, 16),   # conv3_b block conv 1
        "rb1_w2": conv_w(keys[2], 3, 3, 16, 16),   # conv3_b block conv 2
        "rb2_w1": conv_w(keys[3], 3, 3, 16, 16),   # conv4_b block conv 1
        "rb2_w2": conv_w(keys[4], 3, 3, 16, 16),   # conv4_b block conv 2
    }


if __name__ == "__main__":
    key = jax.random.PRNGKey(0)
    k_x, k_p = jax.random.split(key)

    # Shapes consistent with the module: batch=2, 3 input channels, 16x16 spatial.
    x = jax.random.normal(k_x, (2, 3, 16, 16), jnp.float32)
    params = init_encoder_params(k_p)

    folded = prepare_encoder_weights(params, W=16)   # fold ONCE, reuse per call
    out = jax.block_until_ready(encoder_forward(x, folded))

    assert out.shape == (2, 16, 16, 16), out.shape
    assert bool(jnp.all(jnp.isfinite(out)))
    print("KERNEL_OK")
</pallas_src>

<mosaic_0001>
module attributes {stable_mosaic.version = 11 : i64} {
  func.func @_encoder_kernel(%arg0: i32, %arg1: memref<1x16x336xbf16, #tpu.memory_space<vmem>>, %arg2: memref<336x256xbf16, #tpu.memory_space<vmem>>, %arg3: memref<768x256xbf16, #tpu.memory_space<vmem>>, %arg4: memref<768x256xbf16, #tpu.memory_space<vmem>>, %arg5: memref<768x256xbf16, #tpu.memory_space<vmem>>, %arg6: memref<768x256xbf16, #tpu.memory_space<vmem>>, %arg7: memref<256x256xf32, #tpu.memory_space<vmem>>, %arg8: memref<1x16x256xf32, #tpu.memory_space<vmem>>) attributes {dimension_semantics = [#tpu.dimension_semantics<parallel>], iteration_bounds = array<i64: 2>, scalar_prefetch = 0 : i64, scratch_operands = 0 : i64, tpu.core_type = #tpu.core_type<tc>, window_params = [{transform_indices = @transform_0, window_bounds = array<i64: 1, 16, 336>}, {pipeline_mode = #tpu.pipeline_mode<synchronous>, transform_indices = @transform_1, window_bounds = array<i64: 336, 256>}, {pipeline_mode = #tpu.pipeline_mode<synchronous>, transform_indices = @transform_2, window_bounds = array<i64: 768, 256>}, {pipeline_mode = #tpu.pipeline_mode<synchronous>, transform_indices = @transform_3, window_bounds = array<i64: 768, 256>}, {pipeline_mode = #tpu.pipeline_mode<synchronous>, transform_indices = @transform_4, window_bounds = array<i64: 768, 256>}, {pipeline_mode = #tpu.pipeline_mode<synchronous>, transform_indices = @transform_5, window_bounds = array<i64: 768, 256>}, {pipeline_mode = #tpu.pipeline_mode<synchronous>, transform_indices = @transform_6, window_bounds = array<i64: 256, 256>}, {transform_indices = @transform_7, window_bounds = array<i64: 1, 16, 256>}]} {
    %c0 = arith.constant 0 : index
    %c0_0 = arith.constant 0 : index
    %c0_1 = arith.constant 0 : index
    %0 = vector.load %arg1[%c0, %c0_0, %c0_1] : memref<1x16x336xbf16, #tpu.memory_space<vmem>>, vector<1x16x336xbf16>
    %1 = vector.shape_cast %0 : vector<1x16x336xbf16> to vector<16x336xbf16>
    %c0_2 = arith.constant 0 : index
    %c0_3 = arith.constant 0 : index
    %2 = vector.load %arg2[%c0_2, %c0_3] : memref<336x256xbf16, #tpu.memory_space<vmem>>, vector<336x256xbf16>
    %cst = arith.constant dense<0.000000e+00> : vector<16x256xf32>
    %3 = tpu.matmul %1, %2, %cst {dimension_numbers = #tpu.dot_dimension_numbers<[1], [0], [0], [1], [0, 0, 1, 1], [], []>} : vector<16x336xbf16>, vector<336x256xbf16>, vector<16x256xf32> -> vector<16x256xf32>
    %4 = vector.shape_cast %3 : vector<16x256xf32> to vector<1x16x256xf32>
    %cst_4 = arith.constant dense<0.000000e+00> : vector<1x256xf32>
    %5 = vector.multi_reduction <add>, %4, %cst_4 [1] : vector<1x16x256xf32> to vector<1x256xf32>
    %6 = arith.mulf %4, %4 : vector<1x16x256xf32>
    %cst_5 = arith.constant dense<0.000000e+00> : vector<1x256xf32>
    %7 = vector.multi_reduction <add>, %6, %cst_5 [1] : vector<1x16x256xf32> to vector<1x256xf32>
    %8 = tpu.concatenate %5, %7 in 0 : vector<1x256xf32>, vector<1x256xf32> -> vector<2x256xf32>
    %c0_6 = arith.constant 0 : index
    %c0_7 = arith.constant 0 : index
    %9 = vector.load %arg7[%c0_6, %c0_7] : memref<256x256xf32, #tpu.memory_space<vmem>>, vector<256x256xf32>
    %cst_8 = arith.constant dense<0.000000e+00> : vector<2x256xf32>
    %10 = tpu.matmul %8, %9, %cst_8 {dimension_numbers = #tpu.dot_dimension_numbers<[1], [0], [0], [1], [0, 0, 1, 1], [], []>} : vector<2x256xf32>, vector<256x256xf32>, vector<2x256xf32> -> vector<2x256xf32>
    %cst_9 = arith.constant 3.906250e-03 : f32
    %11 = vector.broadcast %cst_9 : f32 to vector<2x256xf32>
    %12 = arith.mulf %10, %11 : vector<2x256xf32>
    %13 = vector.extract_strided_slice %12 {offsets = [0, 0], sizes = [1, 256], strides = [1, 1]} : vector<2x256xf32> to vector<1x256xf32>
    %14 = vector.shape_cast %13 : vector<1x256xf32> to vector<1x1x256xf32>
    %15 = vector.extract_strided_slice %12 {offsets = [1, 0], sizes = [1, 256], strides = [1, 1]} : vector<2x256xf32> to vector<1x256xf32>
    %16 = vector.shape_cast %15 : vector<1x256xf32> to vector<1x1x256xf32>
    %17 = arith.mulf %14, %14 : vector<1x1x256xf32>
    %18 = arith.subf %16, %17 : vector<1x1x256xf32>
    %19 = vector.broadcast %14 : vector<1x1x256xf32> to vector<1x16x256xf32>
    %20 = arith.subf %4, %19 : vector<1x16x256xf32>
    %cst_10 = arith.constant 9.99999974E-6 : f32
    %21 = vector.broadcast %cst_10 : f32 to vector<1x1x256xf32>
    %22 = arith.addf %18, %21 : vector<1x1x256xf32>
    %23 = math.rsqrt %22 : vector<1x1x256xf32>
    %24 = vector.broadcast %23 : vector<1x1x256xf32> to vector<1x16x256xf32>
    %25 = arith.mulf %20, %24 : vector<1x16x256xf32>
    %cst_11 = arith.constant 0.000000e+00 : f32
    %26 = vector.broadcast %cst_11 : f32 to vector<1x16x256xf32>
    %27 = arith.maximumf %25, %26 : vector<1x16x256xf32>
    %28 = vector.extract_strided_slice %27 {offsets = [0, 1, 0], sizes = [1, 1, 256], strides = [1, 1, 1]} : vector<1x16x256xf32> to vector<1x1x256xf32>
    %29 = vector.extract_strided_slice %27 {offsets = [0, 14, 0], sizes = [1, 1, 256], strides = [1, 1, 1]} : vector<1x16x256xf32> to vector<1x1x256xf32>
    %30 = tpu.concatenate %28, %27, %29 in 1 : vector<1x1x256xf32>, vector<1x16x256xf32>, vector<1x1x256xf32> -> vector<1x18x256xf32>
    %31 = vector.extract_strided_slice %30 {offsets = [0, 0, 0], sizes = [1, 16, 256], strides = [1, 1, 1]} : vector<1x18x256xf32> to vector<1x16x256xf32>
    %32 = vector.extract_strided_slice %30 {offsets = [0, 1, 0], sizes = [1, 16, 256], strides = [1, 1, 1]} : vector<1x18x256xf32> to vector<1x16x256xf32>
    %33 = vector.extract_strided_slice %30 {offsets = [0, 2, 0], sizes = [1, 16, 256], strides = [1, 1, 1]} : vector<1x18x256xf32> to vector<1x16x256xf32>
    %34 = tpu.concatenate %31, %32, %33 in 2 : vector<1x16x256xf32>, vector<1x16x256xf32>, vector<1x16x256xf32> -> vector<1x16x768xf32>
    %35 = vector.shape_cast %34 : vector<1x16x768xf32> to vector<16x768xf32>
    %36 = arith.truncf %35 : vector<16x768xf32> to vector<16x768xbf16>
    %c0_12 = arith.constant 0 : index
    %c0_13 = arith.constant 0 : index
    %37 = vector.load %arg3[%c0_12, %c0_13] : memref<768x256xbf16, #tpu.memory_space<vmem>>, vector<768x256xbf16>
    %cst_14 = arith.constant dense<0.000000e+00> : vector<16x256xf32>
    %38 = tpu.matmul %36, %37, %cst_14 {dimension_numbers = #tpu.dot_dimension_numbers<[1], [0], [0], [1], [0, 0, 1, 1], [], []>} : vector<16x768xbf16>, vector<768x256xbf16>, vector<16x256xf32> -> vector<16x256xf32>
    %39 = vector.shape_cast %38 : vector<16x256xf32> to vector<1x16x256xf32>
    %cst_15 = arith.constant dense<0.000000e+00> : vector<1x256xf32>
    %40 = vector.multi_reduction <add>, %39, %cst_15 [1] : vector<1x16x256xf32> to vector<1x256xf32>
    %41 = arith.mulf %39, %39 : vector<1x16x256xf32>
    %cst_16 = arith.constant dense<0.000000e+00> : vector<1x256xf32>
    %42 = vector.multi_reduction <add>, %41, %cst_16 [1] : vector<1x16x256xf32> to vector<1x256xf32>
    %43 = tpu.concatenate %40, %42 in 0 : vector<1x256xf32>, vector<1x256xf32> -> vector<2x256xf32>
    %c0_17 = arith.constant 0 : index
    %c0_18 = arith.constant 0 : index
    %44 = vector.load %arg7[%c0_17, %c0_18] : memref<256x256xf32, #tpu.memory_space<vmem>>, vector<256x256xf32>
    %cst_19 = arith.constant dense<0.000000e+00> : vector<2x256xf32>
    %45 = tpu.matmul %43, %44, %cst_19 {dimension_numbers = #tpu.dot_dimension_numbers<[1], [0], [0], [1], [0, 0, 1, 1], [], []>} : vector<2x256xf32>, vector<256x256xf32>, vector<2x256xf32> -> vector<2x256xf32>
    %cst_20 = arith.constant 3.906250e-03 : f32
    %46 = vector.broadcast %cst_20 : f32 to vector<2x256xf32>
    %47 = arith.mulf %45, %46 : vector<2x256xf32>
    %48 = vector.extract_strided_slice %47 {offsets = [0, 0], sizes = [1, 256], strides = [1, 1]} : vector<2x256xf32> to vector<1x256xf32>
    %49 = vector.shape_cast %48 : vector<1x256xf32> to vector<1x1x256xf32>
    %50 = vector.extract_strided_slice %47 {offsets = [1, 0], sizes = [1, 256], strides = [1, 1]} : vector<2x256xf32> to vector<1x256xf32>
    %51 = vector.shape_cast %50 : vector<1x256xf32> to vector<1x1x256xf32>
    %52 = arith.mulf %49, %49 : vector<1x1x256xf32>
    %53 = arith.subf %51, %52 : vector<1x1x256xf32>
    %54 = vector.broadcast %49 : vector<1x1x256xf32> to vector<1x16x256xf32>
    %55 = arith.subf %39, %54 : vector<1x16x256xf32>
    %cst_21 = arith.constant 9.99999974E-6 : f32
    %56 = vector.broadcast %cst_21 : f32 to vector<1x1x256xf32>
    %57 = arith.addf %53, %56 : vector<1x1x256xf32>
    %58 = math.rsqrt %57 : vector<1x1x256xf32>
    %59 = vector.broadcast %58 : vector<1x1x256xf32> to vector<1x16x256xf32>
    %60 = arith.mulf %55, %59 : vector<1x16x256xf32>
    %cst_22 = arith.constant 0.000000e+00 : f32
    %61 = vector.broadcast %cst_22 : f32 to vector<1x16x256xf32>
    %62 = arith.maximumf %60, %61 : vector<1x16x256xf32>
    %63 = vector.extract_strided_slice %62 {offsets = [0, 1, 0], sizes = [1, 1, 256], strides = [1, 1, 1]} : vector<1x16x256xf32> to vector<1x1x256xf32>
    %64 = vector.extract_strided_slice %62 {offsets = [0, 14, 0], sizes = [1, 1, 256], strides = [1, 1, 1]} : vector<1x16x256xf32> to vector<1x1x256xf32>
    %65 = tpu.concatenate %63, %62, %64 in 1 : vector<1x1x256xf32>, vector<1x16x256xf32>, vector<1x1x256xf32> -> vector<1x18x256xf32>
    %66 = vector.extract_strided_slice %65 {offsets = [0, 0, 0], sizes = [1, 16, 256], strides = [1, 1, 1]} : vector<1x18x256xf32> to vector<1x16x256xf32>
    %67 = vector.extract_strided_slice %65 {offsets = [0, 1, 0], sizes = [1, 16, 256], strides = [1, 1, 1]} : vector<1x18x256xf32> to vector<1x16x256xf32>
    %68 = vector.extract_strided_slice %65 {offsets = [0, 2, 0], sizes = [1, 16, 256], strides = [1, 1, 1]} : vector<1x18x256xf32> to vector<1x16x256xf32>
    %69 = tpu.concatenate %66, %67, %68 in 2 : vector<1x16x256xf32>, vector<1x16x256xf32>, vector<1x16x256xf32> -> vector<1x16x768xf32>
    %70 = vector.shape_cast %69 : vector<1x16x768xf32> to vector<16x768xf32>
    %71 = arith.truncf %70 : vector<16x768xf32> to vector<16x768xbf16>
    %c0_23 = arith.constant 0 : index
    %c0_24 = arith.constant 0 : index
    %72 = vector.load %arg4[%c0_23, %c0_24] : memref<768x256xbf16, #tpu.memory_space<vmem>>, vector<768x256xbf16>
    %cst_25 = arith.constant dense<0.000000e+00> : vector<16x256xf32>
    %73 = tpu.matmul %71, %72, %cst_25 {dimension_numbers = #tpu.dot_dimension_numbers<[1], [0], [0], [1], [0, 0, 1, 1], [], []>} : vector<16x768xbf16>, vector<768x256xbf16>, vector<16x256xf32> -> vector<16x256xf32>
    %74 = vector.shape_cast %73 : vector<16x256xf32> to vector<1x16x256xf32>
    %cst_26 = arith.constant dense<0.000000e+00> : vector<1x256xf32>
    %75 = vector.multi_reduction <add>, %74, %cst_26 [1] : vector<1x16x256xf32> to vector<1x256xf32>
    %76 = arith.mulf %74, %74 : vector<1x16x256xf32>
    %cst_27 = arith.constant dense<0.000000e+00> : vector<1x256xf32>
    %77 = vector.multi_reduction <add>, %76, %cst_27 [1] : vector<1x16x256xf32> to vector<1x256xf32>
    %78 = tpu.concatenate %75, %77 in 0 : vector<1x256xf32>, vector<1x256xf32> -> vector<2x256xf32>
    %c0_28 = arith.constant 0 : index
    %c0_29 = arith.constant 0 : index
    %79 = vector.load %arg7[%c0_28, %c0_29] : memref<256x256xf32, #tpu.memory_space<vmem>>, vector<256x256xf32>
    %cst_30 = arith.constant dense<0.000000e+00> : vector<2x256xf32>
    %80 = tpu.matmul %78, %79, %cst_30 {dimension_numbers = #tpu.dot_dimension_numbers<[1], [0], [0], [1], [0, 0, 1, 1], [], []>} : vector<2x256xf32>, vector<256x256xf32>, vector<2x256xf32> -> vector<2x256xf32>
    %cst_31 = arith.constant 3.906250e-03 : f32
    %81 = vector.broadcast %cst_31 : f32 to vector<2x256xf32>
    %82 = arith.mulf %80, %81 : vector<2x256xf32>
    %83 = vector.extract_strided_slice %82 {offsets = [0, 0], sizes = [1, 256], strides = [1, 1]} : vector<2x256xf32> to vector<1x256xf32>
    %84 = vector.shape_cast %83 : vector<1x256xf32> to vector<1x1x256xf32>
    %85 = vector.extract_strided_slice %82 {offsets = [1, 0], sizes = [1, 256], strides = [1, 1]} : vector<2x256xf32> to vector<1x256xf32>
    %86 = vector.shape_cast %85 : vector<1x256xf32> to vector<1x1x256xf32>
    %87 = arith.mulf %84, %84 : vector<1x1x256xf32>
    %88 = arith.subf %86, %87 : vector<1x1x256xf32>
    %89 = vector.broadcast %84 : vector<1x1x256xf32> to vector<1x16x256xf32>
    %90 = arith.subf %74, %89 : vector<1x16x256xf32>
    %cst_32 = arith.constant 9.99999974E-6 : f32
    %91 = vector.broadcast %cst_32 : f32 to vector<1x1x256xf32>
    %92 = arith.addf %88, %91 : vector<1x1x256xf32>
    %93 = math.rsqrt %92 : vector<1x1x256xf32>
    %94 = vector.broadcast %93 : vector<1x1x256xf32> to vector<1x16x256xf32>
    %95 = arith.mulf %90, %94 : vector<1x16x256xf32>
    %96 = arith.addf %27, %95 : vector<1x16x256xf32>
    %97 = vector.extract_strided_slice %96 {offsets = [0, 1, 0], sizes = [1, 1, 256], strides = [1, 1, 1]} : vector<1x16x256xf32> to vector<1x1x256xf32>
    %98 = vector.extract_strided_slice %96 {offsets = [0, 14, 0], sizes = [1, 1, 256], strides = [1, 1, 1]} : vector<1x16x256xf32> to vector<1x1x256xf32>
    %99 = tpu.concatenate %97, %96, %98 in 1 : vector<1x1x256xf32>, vector<1x16x256xf32>, vector<1x1x256xf32> -> vector<1x18x256xf32>
    %100 = vector.extract_strided_slice %99 {offsets = [0, 0, 0], sizes = [1, 16, 256], strides = [1, 1, 1]} : vector<1x18x256xf32> to vector<1x16x256xf32>
    %101 = vector.extract_strided_slice %99 {offsets = [0, 1, 0], sizes = [1, 16, 256], strides = [1, 1, 1]} : vector<1x18x256xf32> to vector<1x16x256xf32>
    %102 = vector.extract_strided_slice %99 {offsets = [0, 2, 0], sizes = [1, 16, 256], strides = [1, 1, 1]} : vector<1x18x256xf32> to vector<1x16x256xf32>
    %103 = tpu.concatenate %100, %101, %102 in 2 : vector<1x16x256xf32>, vector<1x16x256xf32>, vector<1x16x256xf32> -> vector<1x16x768xf32>
    %104 = vector.shape_cast %103 : vector<1x16x768xf32> to vector<16x768xf32>
    %105 = arith.truncf %104 : vector<16x768xf32> to vector<16x768xbf16>
    %c0_33 = arith.constant 0 : index
    %c0_34 = arith.constant 0 : index
    %106 = vector.load %arg5[%c0_33, %c0_34] : memref<768x256xbf16, #tpu.memory_space<vmem>>, vector<768x256xbf16>
    %cst_35 = arith.constant dense<0.000000e+00> : vector<16x256xf32>
    %107 = tpu.matmul %105, %106, %cst_35 {dimension_numbers = #tpu.dot_dimension_numbers<[1], [0], [0], [1], [0, 0, 1, 1], [], []>} : vector<16x768xbf16>, vector<768x256xbf16>, vector<16x256xf32> -> vector<16x256xf32>
    %108 = vector.shape_cast %107 : vector<16x256xf32> to vector<1x16x256xf32>
    %cst_36 = arith.constant dense<0.000000e+00> : vector<1x256xf32>
    %109 = vector.multi_reduction <add>, %108, %cst_36 [1] : vector<1x16x256xf32> to vector<1x256xf32>
    %110 = arith.mulf %108, %108 : vector<1x16x256xf32>
    %cst_37 = arith.constant dense<0.000000e+00> : vector<1x256xf32>
    %111 = vector.multi_reduction <add>, %110, %cst_37 [1] : vector<1x16x256xf32> to vector<1x256xf32>
    %112 = tpu.concatenate %109, %111 in 0 : vector<1x256xf32>, vector<1x256xf32> -> vector<2x256xf32>
    %c0_38 = arith.constant 0 : index
    %c0_39 = arith.constant 0 : index
    %113 = vector.load %arg7[%c0_38, %c0_39] : memref<256x256xf32, #tpu.memory_space<vmem>>, vector<256x256xf32>
    %cst_40 = arith.constant dense<0.000000e+00> : vector<2x256xf32>
    %114 = tpu.matmul %112, %113, %cst_40 {dimension_numbers = #tpu.dot_dimension_numbers<[1], [0], [0], [1], [0, 0, 1, 1], [], []>} : vector<2x256xf32>, vector<256x256xf32>, vector<2x256xf32> -> vector<2x256xf32>
    %cst_41 = arith.constant 3.906250e-03 : f32
    %115 = vector.broadcast %cst_41 : f32 to vector<2x256xf32>
    %116 = arith.mulf %114, %115 : vector<2x256xf32>
    %117 = vector.extract_strided_slice %116 {offsets = [0, 0], sizes = [1, 256], strides = [1, 1]} : vector<2x256xf32> to vector<1x256xf32>
    %118 = vector.shape_cast %117 : vector<1x256xf32> to vector<1x1x256xf32>
    %119 = vector.extract_strided_slice %116 {offsets = [1, 0], sizes = [1, 256], strides = [1, 1]} : vector<2x256xf32> to vector<1x256xf32>
    %120 = vector.shape_cast %119 : vector<1x256xf32> to vector<1x1x256xf32>
    %121 = arith.mulf %118, %118 : vector<1x1x256xf32>
    %122 = arith.subf %120, %121 : vector<1x1x256xf32>
    %123 = vector.broadcast %118 : vector<1x1x256xf32> to vector<1x16x256xf32>
    %124 = arith.subf %108, %123 : vector<1x16x256xf32>
    %cst_42 = arith.constant 9.99999974E-6 : f32
    %125 = vector.broadcast %cst_42 : f32 to vector<1x1x256xf32>
    %126 = arith.addf %122, %125 : vector<1x1x256xf32>
    %127 = math.rsqrt %126 : vector<1x1x256xf32>
    %128 = vector.broadcast %127 : vector<1x1x256xf32> to vector<1x16x256xf32>
    %129 = arith.mulf %124, %128 : vector<1x16x256xf32>
    %cst_43 = arith.constant 0.000000e+00 : f32
    %130 = vector.broadcast %cst_43 : f32 to vector<1x16x256xf32>
    %131 = arith.maximumf %129, %130 : vector<1x16x256xf32>
    %132 = vector.extract_strided_slice %131 {offsets = [0, 1, 0], sizes = [1, 1, 256], strides = [1, 1, 1]} : vector<1x16x256xf32> to vector<1x1x256xf32>
    %133 = vector.extract_strided_slice %131 {offsets = [0, 14, 0], sizes = [1, 1, 256], strides = [1, 1, 1]} : vector<1x16x256xf32> to vector<1x1x256xf32>
    %134 = tpu.concatenate %132, %131, %133 in 1 : vector<1x1x256xf32>, vector<1x16x256xf32>, vector<1x1x256xf32> -> vector<1x18x256xf32>
    %135 = vector.extract_strided_slice %134 {offsets = [0, 0, 0], sizes = [1, 16, 256], strides = [1, 1, 1]} : vector<1x18x256xf32> to vector<1x16x256xf32>
    %136 = vector.extract_strided_slice %134 {offsets = [0, 1, 0], sizes = [1, 16, 256], strides = [1, 1, 1]} : vector<1x18x256xf32> to vector<1x16x256xf32>
    %137 = vector.extract_strided_slice %134 {offsets = [0, 2, 0], sizes = [1, 16, 256], strides = [1, 1, 1]} : vector<1x18x256xf32> to vector<1x16x256xf32>
    %138 = tpu.concatenate %135, %136, %137 in 2 : vector<1x16x256xf32>, vector<1x16x256xf32>, vector<1x16x256xf32> -> vector<1x16x768xf32>
    %139 = vector.shape_cast %138 : vector<1x16x768xf32> to vector<16x768xf32>
    %140 = arith.truncf %139 : vector<16x768xf32> to vector<16x768xbf16>
    %c0_44 = arith.constant 0 : index
    %c0_45 = arith.constant 0 : index
    %141 = vector.load %arg6[%c0_44, %c0_45] : memref<768x256xbf16, #tpu.memory_space<vmem>>, vector<768x256xbf16>
    %cst_46 = arith.constant dense<0.000000e+00> : vector<16x256xf32>
    %142 = tpu.matmul %140, %141, %cst_46 {dimension_numbers = #tpu.dot_dimension_numbers<[1], [0], [0], [1], [0, 0, 1, 1], [], []>} : vector<16x768xbf16>, vector<768x256xbf16>, vector<16x256xf32> -> vector<16x256xf32>
    %143 = vector.shape_cast %142 : vector<16x256xf32> to vector<1x16x256xf32>
    %cst_47 = arith.constant dense<0.000000e+00> : vector<1x256xf32>
    %144 = vector.multi_reduction <add>, %143, %cst_47 [1] : vector<1x16x256xf32> to vector<1x256xf32>
    %145 = arith.mulf %143, %143 : vector<1x16x256xf32>
    %cst_48 = arith.constant dense<0.000000e+00> : vector<1x256xf32>
    %146 = vector.multi_reduction <add>, %145, %cst_48 [1] : vector<1x16x256xf32> to vector<1x256xf32>
    %147 = tpu.concatenate %144, %146 in 0 : vector<1x256xf32>, vector<1x256xf32> -> vector<2x256xf32>
    %c0_49 = arith.constant 0 : index
    %c0_50 = arith.constant 0 : index
    %148 = vector.load %arg7[%c0_49, %c0_50] : memref<256x256xf32, #tpu.memory_space<vmem>>, vector<256x256xf32>
    %cst_51 = arith.constant dense<0.000000e+00> : vector<2x256xf32>
    %149 = tpu.matmul %147, %148, %cst_51 {dimension_numbers = #tpu.dot_dimension_numbers<[1], [0], [0], [1], [0, 0, 1, 1], [], []>} : vector<2x256xf32>, vector<256x256xf32>, vector<2x256xf32> -> vector<2x256xf32>
    %cst_52 = arith.constant 3.906250e-03 : f32
    %150 = vector.broadcast %cst_52 : f32 to vector<2x256xf32>
    %151 = arith.mulf %149, %150 : vector<2x256xf32>
    %152 = vector.extract_strided_slice %151 {offsets = [0, 0], sizes = [1, 256], strides = [1, 1]} : vector<2x256xf32> to vector<1x256xf32>
    %153 = vector.shape_cast %152 : vector<1x256xf32> to vector<1x1x256xf32>
    %154 = vector.extract_strided_slice %151 {offsets = [1, 0], sizes = [1, 256], strides = [1, 1]} : vector<2x256xf32> to vector<1x256xf32>
    %155 = vector.shape_cast %154 : vector<1x256xf32> to vector<1x1x256xf32>
    %156 = arith.mulf %153, %153 : vector<1x1x256xf32>
    %157 = arith.subf %155, %156 : vector<1x1x256xf32>
    %158 = vector.broadcast %153 : vector<1x1x256xf32> to vector<1x16x256xf32>
    %159 = arith.subf %143, %158 : vector<1x16x256xf32>
    %cst_53 = arith.constant 9.99999974E-6 : f32
    %160 = vector.broadcast %cst_53 : f32 to vector<1x1x256xf32>
    %161 = arith.addf %157, %160 : vector<1x1x256xf32>
    %162 = math.rsqrt %161 : vector<1x1x256xf32>
    %163 = vector.broadcast %162 : vector<1x1x256xf32> to vector<1x16x256xf32>
    %164 = arith.mulf %159, %163 : vector<1x16x256xf32>
    %165 = arith.addf %96, %164 : vector<1x16x256xf32>
    %c0_54 = arith.constant 0 : index
    %c0_55 = arith.constant 0 : index
    %c0_56 = arith.constant 0 : index
    %166 = vector.load %arg8[%c0_54, %c0_55, %c0_56] : memref<1x16x256xf32, #tpu.memory_space<vmem>>, vector<1x16x256xf32>
    tpu.vector_store %arg8[%c0_54, %c0_55, %c0_56], %165 {strides = array<i32>} : memref<1x16x256xf32, #tpu.memory_space<vmem>>, vector<1x16x256xf32>,
    return
  }
  func.func @transform_0(%arg0: i32) -> (i32, i32, i32) {
    %c0_i32 = arith.constant 0 : i32
    %c0_i32_0 = arith.constant 0 : i32
    %c0_i32_1 = arith.constant 0 : i32
    return %arg0, %c0_i32, %c0_i32_0 : i32, i32, i32
  }
  func.func @transform_1(%arg0: i32) -> (i32, i32) {
    %c0_i32 = arith.constant 0 : i32
    %c0_i32_0 = arith.constant 0 : i32
    %c0_i32_1 = arith.constant 0 : i32
    return %c0_i32, %c0_i32_0 : i32, i32
  }
  func.func @transform_2(%arg0: i32) -> (i32, i32) {
    %c0_i32 = arith.constant 0 : i32
    %c0_i32_0 = arith.constant 0 : i32
    %c0_i32_1 = arith.constant 0 : i32
    return %c0_i32, %c0_i32_0 : i32, i32
  }
  func.func @transform_3(%arg0: i32) -> (i32, i32) {
    %c0_i32 = arith.constant 0 : i32
    %c0_i32_0 = arith.constant 0 : i32
    %c0_i32_1 = arith.constant 0 : i32
    return %c0_i32, %c0_i32_0 : i32, i32
  }
  func.func @transform_4(%arg0: i32) -> (i32, i32) {
    %c0_i32 = arith.constant 0 : i32
    %c0_i32_0 = arith.constant 0 : i32
    %c0_i32_1 = arith.constant 0 : i32
    return %c0_i32, %c0_i32_0 : i32, i32
  }
  func.func @transform_5(%arg0: i32) -> (i32, i32) {
    %c0_i32 = arith.constant 0 : i32
    %c0_i32_0 = arith.constant 0 : i32
    %c0_i32_1 = arith.constant 0 : i32
    return %c0_i32, %c0_i32_0 : i32, i32
  }
  func.func @transform_6(%arg0: i32) -> (i32, i32) {
    %c0_i32 = arith.constant 0 : i32
    %c0_i32_0 = arith.constant 0 : i32
    %c0_i32_1 = arith.constant 0 : i32
    return %c0_i32, %c0_i32_0 : i32, i32
  }
  func.func @transform_7(%arg0: i32) -> (i32, i32, i32) {
    %c0_i32 = arith.constant 0 : i32
    %c0_i32_0 = arith.constant 0 : i32
    %c0_i32_1 = arith.constant 0 : i32
    return %arg0, %c0_i32, %c0_i32_0 : i32, i32, i32
  }
}

</mosaic_0001>

<bundles_post_ra>
// kernel: encoder_forward.1
= control target key start
LH: loop header
LB: loop body
LE: loop exit
PB: predicated region body
PF: predicated region fallthrough
CT: control target
= control target key end

     0   :  { %12 = vsyncpa [#allocation3], 0  ;;  %s7446_s0 = inlined_call_operand.vmem [shape: bf16[2,16,336], index: 0, kind: input, shape index: {}]   ;;  %s7447_s1 = inlined_call_operand.hbm [shape: bf16[336,256], index: 1, kind: input, shape index: {}]   ;;  %s7448_s2 = inlined_call_operand.hbm [shape: bf16[768,256], index: 2, kind: input, shape index: {}]   ;;  %s7449_s3 = inlined_call_operand.hbm [shape: bf16[768,256], index: 3, kind: input, shape index: {}]   ;;  %s7450_s4 = inlined_call_operand.hbm [shape: bf16[768,256], index: 4, kind: input, shape index: {}]   ;;  %s7451_s5 = inlined_call_operand.hbm [shape: bf16[768,256], index: 5, kind: input, shape index: {}]   ;;  %s7452_s6 = inlined_call_operand.vmem [shape: f32[256,256], index: 6, kind: input, shape index: {}]   ;;  %s7453_s7 = inlined_call_operand.vmem [shape: f32[2,16,256], index: 7, kind: output, shape index: {}]  }
   0x1   :  { %13 = vsyncpa [#allocation5], 0 }
   0x2   :  { %14 = vsyncpa [#allocation8], 0  ;;  %s6460_s24 = smov 0  }
   0x3 LB: > { %s6466_s25 = sadd.s32 4294967295, %s6410_s24   ;;  %p4721_p0 = scmp.ge.s32.totalorder %s6410_s24, 1  ;;  %s6410_s24 = sphi %s6460_s24, %s20_s24  }
   0x4   : > { %p203_p1 = scmp.lt.s32.totalorder %s6410_s24, 3  ;;  %p7454_p2 = scmp.eq.s32.totalorder %s6466_s25, 0 }
   0x5   : > { %s6412_s27 = smov [#allocation4]   ;;  %s6413_s29 = smov [#allocation7]  }
   0x6   : > { %p6471_p3 = pnand %p4721_p0, %p203_p1  ;;  %s228_s28 = sshll.u32 %s6412_s27, 4  ;;  %s6475_s28 = int_to_ptr.vmem [resolvable:$true] %s228_s28 }
   0x7   : > { %s254_s30 = sshll.u32 %s6413_s29, 4  ;;  %s6414_s9 = smov [#allocation2]   ;;  %s6479_s30 = int_to_ptr.vmem [resolvable:$true] %s254_s30 }
   0x8   : > { %s7462_s26 = scalar_select %p6471_p3, 1, 0 }
   0x9   : > { %p5547_p4 = pneg %p6471_p3  ;;  %s215_s10 = sshll.u32 %s6414_s9, 4  ;;  %s6487_s10 = int_to_ptr.vmem [resolvable:$true] %s215_s10 }
   0xa   : > { %s6415_s11 = smov [#allocation6]   ;;  %s6252_s15 = scalar_lea.hbm %s7448_s2, 12288 }
   0xb   : > { %p6483_p5 = pnand %p7454_p2, %p5547_p4  ;;  %s6489_s12 = sshll.u32 %s6415_s11, 4  ;;  %s242_s12 = int_to_ptr.vmem [resolvable:$true] %s6489_s12 }
   0xc   : > { %p6253_p6 = scmp.ne.s32.totalorder %s7448_s2, %s6252_s15  ;;  %p6259_p10 = scmp.lt.u32.totalorder %s6252_s15, %s7448_s2 }
   0xd   : > { %p6499_p7 = pneg %p6483_p5 }
   0xf   : > { %p6255_p8 = pnand %p6499_p7, %p6253_p6 }
  0x11   : > { %p6256_p9 = pneg %p6255_p8 }
  0x13   : > { %p6261_p11 = pnand %p6259_p10, %p6256_p9 }
  0x15   : > { %6264 = shalt.err (!%p6261_p11)
}
  0x16   : > { %s6265_s21 = scalar_lea.vmem %s6475_s28, 12288  ;;  %p6273_p1 = scmp.lt.s32.totalorder %s6475_s28, %s6475_s28 }
  0x17   : > { %p6266_p12 = scmp.ne.s32.totalorder %s6475_s28, %s6265_s21  ;;  %p6274_p4 = scmp.lt.s32.totalorder %s6265_s21, %s6265_s21 }
  0x19   : > { %p6268_p13 = pnand %p6266_p12, %p6499_p7  ;;  %p6275_p6 = por %p6274_p4, %p6273_p1 }
  0x1b   : > { %p6269_p0 = pneg %p6268_p13 }
  0x1d   : > { %p6276_p8 = pnand %p6275_p6, %p6269_p0 }
  0x1f   : > { %6279 = shalt.err (!%p6276_p8)
}
  0x20   : > { %s6416_s22 = smov 128   ;;  %s6417_s23 = smov 8  }
  0x21   : > { %5553 = dma.hbm_to_vmem [thread:$0]  (!%p6483_p5), %s7448_s2, 12288, %s6475_s28, [#allocation5], %s6416_s22, %s6416_s22, %s6417_s23  }
  0x22   : > { %s6280_s13 = scalar_lea.hbm %s7450_s4, 12288 }
  0x23   : > { %p6281_p9 = scmp.ne.s32.totalorder %s7450_s4, %s6280_s13  ;;  %p6287_p12 = scmp.lt.u32.totalorder %s6280_s13, %s7450_s4 }
  0x25   : > { %p6283_p10 = pnand %p6281_p9, %p6499_p7 }
  0x27   : > { %p6284_p11 = pneg %p6283_p10 }
  0x29   : > { %p6289_p13 = pnand %p6287_p12, %p6284_p11 }
  0x2b   : > { %6292 = shalt.err (!%p6289_p13)
}
  0x2c   : > { %s6293_s28 = scalar_lea.vmem %s6479_s30, 12288  ;;  %p6301_p6 = scmp.lt.s32.totalorder %s6479_s30, %s6479_s30 }
  0x2d   : > { %p6294_p0 = scmp.ne.s32.totalorder %s6479_s30, %s6293_s28  ;;  %p6302_p8 = scmp.lt.s32.totalorder %s6293_s28, %s6293_s28 }
  0x2f   : > { %p6296_p1 = pnand %p6294_p0, %p6499_p7  ;;  %p6303_p9 = por %p6302_p8, %p6301_p6 }
  0x31   : > { %p6297_p4 = pneg %p6296_p1 }
  0x33   : > { %p6304_p10 = pnand %p6303_p9, %p6297_p4 }
  0x35   : > { %6307 = shalt.err (!%p6304_p10)
}
  0x36   : > { %5559 = dma.hbm_to_vmem [thread:$0]  (!%p6483_p5), %s7450_s4, 12288, %s6479_s30, [#allocation8], %s6416_s22, %s6416_s22, %s6417_s23  }
  0x37   : > { %s6308_s29 = scalar_lea.hbm %s7447_s1, 5376 }
  0x38   : > { %p6309_p11 = scmp.ne.s32.totalorder %s7447_s1, %s6308_s29  ;;  %p6315_p0 = scmp.lt.u32.totalorder %s6308_s29, %s7447_s1 }
  0x3a   : > { %p6311_p12 = pnand %p6309_p11, %p6499_p7 }
  0x3c   : > { %p6312_p13 = pneg %p6311_p12 }
  0x3e   : > { %p6317_p1 = pnand %p6315_p0, %p6312_p13 }
  0x40   : > { %6320 = shalt.err (!%p6317_p1)
}
  0x41   : > { %s6321_s30 = scalar_lea.vmem %s6487_s10, 5376  ;;  %p6329_p9 = scmp.lt.s32.totalorder %s6487_s10, %s6487_s10 }
  0x42   : > { %p6322_p4 = scmp.ne.s32.totalorder %s6487_s10, %s6321_s30  ;;  %p6330_p10 = scmp.lt.s32.totalorder %s6321_s30, %s6321_s30 }
  0x44   : > { %p6324_p6 = pnand %p6322_p4, %p6499_p7  ;;  %p6331_p11 = por %p6330_p10, %p6329_p9 }
  0x46   : > { %p6325_p8 = pneg %p6324_p6 }
  0x48   : > { %p6332_p12 = pnand %p6331_p11, %p6325_p8 }
  0x4a   : > { %6335 = shalt.err (!%p6332_p12)
}
  0x4b   : > { %5550 = dma.hbm_to_vmem [thread:$0]  (!%p6483_p5), %s7447_s1, 5376, %s6487_s10, [#allocation3], %s6416_s22, %s6416_s22, %s6417_s23  }
  0x4c   : > { %s6336_s19 = scalar_lea.hbm %s7449_s3, 12288 }
  0x4d   : > { %p6337_p13 = scmp.ne.s32.totalorder %s7449_s3, %s6336_s19  ;;  %p6343_p4 = scmp.lt.u32.totalorder %s6336_s19, %s7449_s3 }
  0x4f   : > { %p6339_p0 = pnand %p6337_p13, %p6499_p7 }
  0x51   : > { %p6340_p1 = pneg %p6339_p0 }
  0x53   : > { %p6345_p6 = pnand %p6343_p4, %p6340_p1 }
  0x55   : > { %6348 = shalt.err (!%p6345_p6)
}
  0x56   : > { %s6349_s9 = scalar_lea.vmem %s242_s12, 12288  ;;  %p6357_p11 = scmp.lt.s32.totalorder %s242_s12, %s242_s12 }
  0x57   : > { %p6350_p8 = scmp.ne.s32.totalorder %s242_s12, %s6349_s9  ;;  %p6358_p12 = scmp.lt.s32.totalorder %s6349_s9, %s6349_s9 }
  0x59   : > { %p6352_p9 = pnand %p6350_p8, %p6499_p7  ;;  %p6359_p2 = por %p6358_p12, %p6357_p11 }
  0x5b   : > { %p6353_p10 = pneg %p6352_p9 }
  0x5d   : > { %p6360_p3 = pnand %p6359_p2, %p6353_p10 }
  0x5f   : > { %6363 = shalt.err (!%p6360_p3)
}
  0x60   : > { %5556 = dma.hbm_to_vmem [thread:$0]  (!%p6483_p5), %s7449_s3, 12288, %s242_s12, [#allocation5], %s6416_s22, %s6416_s22, %s6417_s23  }
  0x61   : > { %s6418_s13 = smov [#allocation9]   ;;  %s6364_s16 = scalar_lea.hbm %s7451_s5, 12288 }
  0x62   : > { %s267_s14 = sshll.u32 %s6418_s13, 4  ;;  %p6365_p2 = scmp.ne.s32.totalorder %s7451_s5, %s6364_s16  ;;  %s268_s14 = int_to_ptr.vmem [resolvable:$true] %s267_s14 }
  0x63   : > { %p6371_p0 = scmp.lt.u32.totalorder %s6364_s16, %s7451_s5 }
  0x64   : > { %p6367_p3 = pnand %p6365_p2, %p6499_p7 }
  0x66   : > { %p6368_p13 = pneg %p6367_p3 }
  0x68   : > { %p6373_p1 = pnand %p6371_p0, %p6368_p13 }
  0x6a   : > { %6376 = shalt.err (!%p6373_p1)
}
  0x6b   : > { %s6377_s12 = scalar_lea.vmem %s268_s14, 12288  ;;  %p6385_p9 = scmp.lt.s32.totalorder %s268_s14, %s268_s14 }
  0x6c   : > { %p6378_p4 = scmp.ne.s32.totalorder %s268_s14, %s6377_s12  ;;  %p6386_p10 = scmp.lt.s32.totalorder %s6377_s12, %s6377_s12 }
  0x6e   : > { %p6380_p6 = pnand %p6378_p4, %p6499_p7  ;;  %p6387_p11 = por %p6386_p10, %p6385_p9 }
  0x70   : > { %p6381_p8 = pneg %p6380_p6 }
  0x72   : > { %p6388_p12 = pnand %p6387_p11, %p6381_p8 }
  0x74   : > { %6391 = shalt.err (!%p6388_p12)
}
  0x75   : > { %5562 = dma.hbm_to_vmem [thread:$0]  (!%p6483_p5), %s7451_s5, 12288, %s268_s14, [#allocation8], %s6416_s22, %s6416_s22, %s6417_s23  }
  0x76   : > { %p7465_p2 = scmp.ne.s32.totalorder %s7462_s26, 0 }
  0x78   : > { %294 = sbr.rel (%p7465_p2) target bundleno = 3108 (0xc24), region = 48 }
  0x7f   : > { %p7466_p7 = scmp.eq.s32.totalorder %s6466_s25, 0 }
  0x81   : > { %6397 = dma.done.wait (%p7466_p7), [#allocation3], 5376   ;;  %p7467_p3 = pmov %p7466_p7 }
  0x83   : > { %6399 = vsyncadd (%p7467_p3), [#allocation3], 4294961920  ;;  %p7468_p13 = pmov %p7467_p3 }
  0x84   : > { %p7469_p0 = pmov %p7467_p3 }
  0x85   : > { %6401 = dma.done.wait (%p7468_p13), [#allocation5], 24576  }
  0x86   : > { %6403 = vsyncadd (%p7469_p0), [#allocation5], 4294942720  ;;  %p7470_p1 = pmov %p7469_p0 }
  0x87   : > { %p7471_p5 = pmov %p7469_p0 }
  0x88   : > { %6405 = dma.done.wait (%p7470_p1), [#allocation8], 24576  }
  0x89   : > { %6407 = vsyncadd (%p7471_p5), [#allocation8], 4294942720  ;;  %v6419_v0 = vmov 0   ;;  %v5589_v1 = vld [vmem:[#allocation2 + $0x4] ss:$8 sps:$4 sm:$0xff]   ;;  %p342_p4 = scmp.lt.s32.totalorder %s6466_s25, 1 }
  0x8a   : > { %703 = vmatprep.mubr.bf16.mxu1 %v6419_v0  ;;  %v5591_v2 = vld [vmem:[#allocation2] ss:$8 sps:$4 sm:$0xff]   ;;  %628 = vmatprep.subr.bf16.mxu0 %v5589_v1  ;;  %v5592_v3 = vld [vmem:[#allocation2 + $0x14] ss:$8 sps:$4 sm:$0xff]   ;;  %v5594_v4 = vld [vmem:[#allocation2 + $0x10] ss:$8 sps:$4 sm:$0xff]  }
  0x8b   : > { %629 = vmatpush1.bf16.msra.mxu0 %v5591_v2  ;;  %v5595_v5 = vld [vmem:[#allocation2 + $0x24] ss:$8 sps:$4 sm:$0xff]   ;;  %v5597_v6 = vld [vmem:[#allocation2 + $0x20] ss:$8 sps:$4 sm:$0xff]   ;;  %v5598_v7 = vld [vmem:[#allocation2 + $0x34] ss:$8 sps:$4 sm:$0xff]  }
  0x8c   : > { %630 = vmatprep.subr.bf16.mxu0 %v5592_v3  ;;  %v5600_v8 = vld [vmem:[#allocation2 + $0x30] ss:$8 sps:$4 sm:$0xff]   ;;  %v5601_v9 = vld [vmem:[#allocation2 + $0x44] ss:$8 sps:$4 sm:$0xff]   ;;  %v5603_v10 = vld [vmem:[#allocation2 + $0x40] ss:$8 sps:$4 sm:$0xff]  }
  0x8d   : > { %v5622_v11 = vld [vmem:[#allocation2 + $0x104] ss:$8 sps:$4 sm:$0xff]   ;;  %v5624_v12 = vld [vmem:[#allocation2 + $0x100] ss:$8 sps:$4 sm:$0xff]   ;;  %v5604_v13 = vld [vmem:[#allocation2 + $0x54] ss:$8 sps:$4 sm:$0xff]  }
  0x8e   : > { %671 = vmatprep.subr.bf16.mxu1 %v5622_v11  ;;  %v5628_v14 = vld [vmem:[#allocation2 + $0x114] ss:$8 sps:$4 sm:$0xff]   ;;  %v5630_v15 = vld [vmem:[#allocation2 + $0x110] ss:$8 sps:$4 sm:$0xff]   ;;  %v5607_v17 = vld [vmem:[#allocation2 + $0x64] ss:$8 sps:$4 sm:$0xff]  }
  0x8f   : > { %631 = vmatpush1.bf16.msra.mxu0 %v5594_v4  ;;  %672 = vmatpush1.bf16.msra.mxu1 %v5624_v12  ;;  %v5606_v16 = vld [vmem:[#allocation2 + $0x50] ss:$8 sps:$4 sm:$0xff]   ;;  %s7484_s25 = smov (!%p342_p4, %s6466_s25), 1  ;;  %v5634_v18 = vld [vmem:[#allocation2 + $0x124] ss:$8 sps:$4 sm:$0xff]   ;;  %vm624_vm0 = vcmask 654336  }
  0x90   : > { %632 = vmatprep.subr.bf16.mxu0 %v5595_v5  ;;  %673 = vmatprep.subr.bf16.mxu1 %v5628_v14  ;;  %v5636_v19 = vld [vmem:[#allocation2 + $0x120] ss:$8 sps:$4 sm:$0xff]   ;;  %v5640_v21 = vld [vmem:[#allocation2 + $0x134] ss:$8 sps:$4 sm:$0xff]   ;;  %s5526_s26 = smul.u32 24, %s7484_s25  ;;  %vm746_vm1 = vcmask 1040384  }
  0x91   : > { %v5609_v20 = vld [vmem:[#allocation2 + $0x60] ss:$8 sps:$4 sm:$0xff]   ;;  %v5610_v22 = vld [vmem:[#allocation2 + $0x74] ss:$8 sps:$4 sm:$0xff]   ;;  %v5642_v23 = vld [vmem:[#allocation2 + $0x130] ss:$8 sps:$4 sm:$0xff]  }
  0x92   : > { %v5612_v24 = vld [vmem:[#allocation2 + $0x70] ss:$8 sps:$4 sm:$0xff]   ;;  %v5646_v25 = vld [vmem:[#allocation2 + $0x144] ss:$8 sps:$4 sm:$0xff]   ;;  %s6640_s22 = scalar_lea.vmem %s7446_s0, %s5526_s26  ;;  %v5648_v27 = vld [vmem:[#allocation2 + $0x140] ss:$8 sps:$4 sm:$0xff]  }
  0x93   : > { %633 = vmatpush1.bf16.msra.mxu0 %v5597_v6  ;;  %674 = vmatpush1.bf16.msra.mxu1 %v5630_v15  ;;  %v5613_v26 = vld [vmem:[#allocation2 + $0x84] ss:$8 sps:$4 sm:$0xff]   ;;  %v752_v30 = vld [vmem:[%s7452_s6 + $0x18] sm:$0xff]  ;;  %v5615_v31 = vld [vmem:[#allocation2 + $0x80] ss:$8 sps:$4 sm:$0xff]   ;;  %vm960_vm2 = vcmask 1046528  }
  0x94   : > { %634 = vmatprep.subr.bf16.mxu0 %v5598_v7  ;;  %675 = vmatprep.subr.bf16.mxu1 %v5634_v18  ;;  %v5655_v28 = vld [vmem:[%s6640_s22 + $0x4] ss:$12 sps:$4 sm:$0xff]   ;;  %v750_v29 = vld [vmem:[%s7452_s6 + $0x8] sm:$0xff]  ;;  %v5616_v35 = vld [vmem:[#allocation2 + $0x94] ss:$8 sps:$4 sm:$0xff]   ;;  %vm975_vm3 = vcmask 1045504  }
  0x95   : > { %v6649_v32 = vpack.c.bf16 %v752_v30, %v750_v29  ;;  %v749_v33 = vld [vmem:[%s7452_s6] sm:$0xff]  ;;  %v751_v34 = vld [vmem:[%s7452_s6 + $0x10] sm:$0xff]  ;;  %660 = vmatprep.mubr.bf16.mxu0 %v5655_v28  ;;  %v754_v36 = vld [vmem:[%s7452_s6 + $0x28] sm:$0xff]  ;;  %s5169_s13 = sshll.u32 %s7484_s25, 5 }
  0x96   : > { %v756_v37 = vld [vmem:[%s7452_s6 + $0x38] sm:$0xff]  ;;  %v5652_v38 = vld [vmem:[%s6640_s22 + $0x8] ss:$12 sps:$4 sm:$0xff]   ;;  %v6664_v39 = vpack.c.bf16 %v751_v34, %v749_v33  ;;  %v753_v42 = vld [vmem:[%s7452_s6 + $0x20] sm:$0xff]  ;;  %s351_s15 = scalar_lea.vmem %s7453_s7, %s5169_s13 }
  0x97   : > { %635 = vmatpush1.bf16.msra.mxu0 %v5600_v8  ;;  %676 = vmatpush1.bf16.msra.mxu1 %v5636_v19  ;;  %v5618_v40 = vld [vmem:[#allocation2 + $0x90] ss:$8 sps:$4 sm:$0xff]   ;;  %v6667_v41 = vpack.c.bf16 %v756_v37, %v754_v36  ;;  %v5619_v44 = vld [vmem:[#allocation2 + $0xa4] ss:$8 sps:$4 sm:$0xff]   ;;  %v5621_v48 = vld [vmem:[#allocation2 + $0xa0] ss:$8 sps:$4 sm:$0xff]  }
  0x98   : > { %636 = vmatprep.subr.bf16.mxu0 %v5601_v9  ;;  %677 = vmatprep.subr.bf16.mxu1 %v5640_v21  ;;  %v755_v43 = vld [vmem:[%s7452_s6 + $0x30] sm:$0xff]  ;;  %v758_v45 = vld [vmem:[%s7452_s6 + $0x48] sm:$0xff]  ;;  %v760_v46 = vld [vmem:[%s7452_s6 + $0x58] sm:$0xff] }
  0x99   : > { %v6682_v47 = vpack.c.bf16 %v755_v43, %v753_v42  ;;  %v6685_v49 = vpack.c.bf16 %v760_v46, %v758_v45  ;;  %v757_v50 = vld [vmem:[%s7452_s6 + $0x40] sm:$0xff]  ;;  %v759_v51 = vld [vmem:[%s7452_s6 + $0x50] sm:$0xff]  ;;  %v762_v53 = vld [vmem:[%s7452_s6 + $0x68] sm:$0xff] }
  0x9a   : > { %v5625_v52 = vld [vmem:[#allocation2 + $0xb4] ss:$8 sps:$4 sm:$0xff]   ;;  %v5627_v55 = vld [vmem:[#allocation2 + $0xb0] ss:$8 sps:$4 sm:$0xff]   ;;  %v761_v56 = vld [vmem:[%s7452_s6 + $0x60] sm:$0xff]  ;;  %v6703_v58 = vpack.c.bf16 %v759_v51, %v757_v50 }
  0x9b   : > { %637 = vmatpush1.bf16.msra.mxu0 %v5603_v10  ;;  %678 = vmatpush1.bf16.msra.mxu1 %v5642_v23  ;;  %v764_v54 = vld [vmem:[%s7452_s6 + $0x78] sm:$0xff]  ;;  %v5631_v57 = vld [vmem:[#allocation2 + $0xc4] ss:$8 sps:$4 sm:$0xff]   ;;  %v763_v59 = vld [vmem:[%s7452_s6 + $0x70] sm:$0xff] }
  0x9c   : > { %638 = vmatprep.subr.bf16.mxu0 %v5604_v13  ;;  %679 = vmatprep.subr.bf16.mxu1 %v5646_v25  ;;  %v766_v60 = vld [vmem:[%s7452_s6 + $0x88] sm:$0xff]  ;;  %v768_v61 = vld [vmem:[%s7452_s6 + $0x98] sm:$0xff]  ;;  %v6715_v62 = vpack.c.bf16 %v764_v54, %v762_v53  ;;  %v765_v0 = vld [vmem:[%s7452_s6 + $0x80] sm:$0xff]  ;;  %v6724_v3 = vpack.c.bf16 %v763_v59, %v761_v56 }
  0x9d   : > { %v5633_v63 = vld [vmem:[#allocation2 + $0xc0] ss:$8 sps:$4 sm:$0xff]   ;;  %v767_v1 = vld [vmem:[%s7452_s6 + $0x90] sm:$0xff]  ;;  %v772_v5 = vld [vmem:[%s7452_s6 + $0xb8] sm:$0xff]  ;;  %v6733_v6 = vpack.c.bf16 %v768_v61, %v766_v60 }
  0x9e   : > { %v5637_v2 = vld [vmem:[#allocation2 + $0xd4] ss:$8 sps:$4 sm:$0xff]   ;;  %v770_v4 = vld [vmem:[%s7452_s6 + $0xa8] sm:$0xff]  ;;  %v5639_v7 = vld [vmem:[#allocation2 + $0xd0] ss:$8 sps:$4 sm:$0xff]   ;;  %v6742_v11 = vpack.c.bf16 %v767_v1, %v765_v0 }
  0x9f   : > { %639 = vmatpush1.bf16.msra.mxu0 %v5606_v16  ;;  %680 = vmatpush1.bf16.msra.mxu1 %v5648_v27  ;;  %v769_v8 = vld [vmem:[%s7452_s6 + $0xa0] sm:$0xff]  ;;  %v771_v9 = vld [vmem:[%s7452_s6 + $0xb0] sm:$0xff]  ;;  %v774_v12 = vld [vmem:[%s7452_s6 + $0xc8] sm:$0xff]  ;;  %v6751_v14 = vpack.c.bf16 %v772_v5, %v770_v4 }
  0xa0   : > { %640 = vmatprep.subr.bf16.mxu0 %v5607_v17  ;;  %5171 = vmatprep.subr.bf16.mxu1 %v6649_v32  ;;  %v5643_v10 = vld [vmem:[#allocation2 + $0xe4] ss:$8 sps:$4 sm:$0xff]   ;;  %v776_v13 = vld [vmem:[%s7452_s6 + $0xd8] sm:$0xff]  ;;  %v5645_v15 = vld [vmem:[#allocation2 + $0xe0] ss:$8 sps:$4 sm:$0xff]   ;;  %v6760_v19 = vpack.c.bf16 %v771_v9, %v769_v8 }
  0xa1   : > { %v773_v16 = vld [vmem:[%s7452_s6 + $0xc0] sm:$0xff]  ;;  %v775_v17 = vld [vmem:[%s7452_s6 + $0xd0] sm:$0xff]  ;;  %v780_v21 = vld [vmem:[%s7452_s6 + $0xf8] sm:$0xff] }
  0xa2   : > { %4782 = vmatmul.mubr.msk.bf16.vlgmr.msra.gmra.mrb[0].mxu1 %vm624_vm0, %v5652_v38  ;;  %v5649_v18 = vld [vmem:[#allocation2 + $0xf4] ss:$8 sps:$4 sm:$0xff]   ;;  %v5651_v23 = vld [vmem:[#allocation2 + $0xf0] ss:$8 sps:$4 sm:$0xff]   ;;  %v782_v27 = vld [vmem:[%s7452_s6 + $0x108] sm:$0xff] }
  0xa3   : > { %641 = vmatpush1.bf16.msra.mxu0 %v5609_v20  ;;  %5173 = vmatpush1.bf16.msra.mxu1 %v6664_v39  ;;  %v778_v20 = vld [vmem:[%s7452_s6 + $0xe8] sm:$0xff]  ;;  %v779_v25 = vld [vmem:[%s7452_s6 + $0xf0] sm:$0xff]  ;;  %v784_v28 = vld [vmem:[%s7452_s6 + $0x118] sm:$0xff] }
  0xa4   : > { %642 = vmatprep.subr.bf16.mxu0 %v5610_v22  ;;  %5175 = vmatprep.subr.bf16.mxu1 %v6667_v41  ;;  %v6769_v22 = vpack.c.bf16 %v776_v13, %v774_v12  ;;  %v6787_v29 = vpack.c.bf16 %v780_v21, %v778_v20  ;;  %v5653_v30 = vld [vmem:[%s6640_s22] ss:$12 sps:$4 sm:$0xff]   ;;  %v783_v33 = vld [vmem:[%s7452_s6 + $0x110] sm:$0xff]  ;;  %v788_v36 = vld [vmem:[%s7452_s6 + $0x138] sm:$0xff]  ;;  %v6806_v37 = vpack.c.bf16 %v784_v28, %v782_v27 }
  0xa5   : > { %v785_v42 = vld [vmem:[%s7452_s6 + $0x120] sm:$0xff]  ;;  %v787_v43 = vld [vmem:[%s7452_s6 + $0x130] sm:$0xff]  ;;  %v790_v45 = vld [vmem:[%s7452_s6 + $0x148] sm:$0xff] }
  0xa6   : > { %v792_v46 = vld [vmem:[%s7452_s6 + $0x158] sm:$0xff]  ;;  %v789_v50 = vld [vmem:[%s7452_s6 + $0x140] sm:$0xff]  ;;  %v791_v51 = vld [vmem:[%s7452_s6 + $0x150] sm:$0xff] }
  0xa7   : > { %643 = vmatpush1.bf16.msra.mxu0 %v5612_v24  ;;  %5177 = vmatpush1.bf16.msra.mxu1 %v6682_v47  ;;  %v777_v24 = vld [vmem:[%s7452_s6 + $0xe0] sm:$0xff]  ;;  %v794_v53 = vld [vmem:[%s7452_s6 + $0x168] sm:$0xff]  ;;  %v796_v54 = vld [vmem:[%s7452_s6 + $0x178] sm:$0xff] }
  0xa8   : > { %644 = vmatprep.subr.bf16.mxu0 %v5613_v26  ;;  %5179 = vmatprep.subr.bf16.mxu1 %v6685_v49  ;;  %v6778_v26 = vpack.c.bf16 %v775_v17, %v773_v16  ;;  %v6797_v34 = vpack.c.bf16 %v779_v25, %v777_v24  ;;  %v793_v56 = vld [vmem:[%s7452_s6 + $0x160] sm:$0xff]  ;;  %v798_v60 = vld [vmem:[%s7452_s6 + $0x188] sm:$0xff]  ;;  %v800_v61 = vld [vmem:[%s7452_s6 + $0x198] sm:$0xff] }
  0xa9   : > { %v797_v0 = vld [vmem:[%s7452_s6 + $0x180] sm:$0xff]  ;;  %v799_v1 = vld [vmem:[%s7452_s6 + $0x190] sm:$0xff]  ;;  %v802_v4 = vld [vmem:[%s7452_s6 + $0x1a8] sm:$0xff] }
  0xaa   : > { %v804_v5 = vld [vmem:[%s7452_s6 + $0x1b8] sm:$0xff]  ;;  %v801_v8 = vld [vmem:[%s7452_s6 + $0x1a0] sm:$0xff]  ;;  %v803_v9 = vld [vmem:[%s7452_s6 + $0x1b0] sm:$0xff] }
  0xab   : > { %645 = vmatpush1.bf16.msra.mxu0 %v5615_v31  ;;  %5181 = vmatpush1.bf16.msra.mxu1 %v6703_v58  ;;  %v781_v31 = vld [vmem:[%s7452_s6 + $0x100] sm:$0xff]  ;;  %v806_v12 = vld [vmem:[%s7452_s6 + $0x1c8] sm:$0xff]  ;;  %v808_v13 = vld [vmem:[%s7452_s6 + $0x1d8] sm:$0xff] }
  0xac   : > { %646 = vmatprep.subr.bf16.mxu0 %v5616_v35  ;;  %5183 = vmatprep.subr.bf16.mxu1 %v6715_v62  ;;  %v786_v35 = vld [vmem:[%s7452_s6 + $0x128] sm:$0xff]  ;;  %v6810_v38 = vpack.c.bf16 %v783_v33, %v781_v31  ;;  %v6934_v16 = vpack.c.bf16 %v808_v13, %v806_v12  ;;  %v807_v17 = vld [vmem:[%s7452_s6 + $0x1d0] sm:$0xff]  ;;  %v812_v20 = vld [vmem:[%s7452_s6 + $0x1f8] sm:$0xff] }
  0xad   : > { %v809_v24 = vld [vmem:[%s7452_s6 + $0x1e0] sm:$0xff]  ;;  %v811_v25 = vld [vmem:[%s7452_s6 + $0x1f0] sm:$0xff] }
  0xae   : > { %v6958_v27 = vpack.c.bf16 %v811_v25, %v809_v24  ;;  %v5658_v28 = vld [vmem:[#allocation4 + $0x4] ss:$8 sps:$4 sm:$0xff]  }
  0xaf   : > { %647 = vmatpush1.bf16.msra.mxu0 %v5618_v40  ;;  %5185 = vmatpush1.bf16.msra.mxu1 %v6724_v3  ;;  %v6813_v40 = vpack.c.bf16 %v788_v36, %v786_v35 }
  0xb0   : > { %648 = vmatprep.subr.bf16.mxu0 %v5619_v44  ;;  %5187 = vmatprep.subr.bf16.mxu1 %v6733_v6  ;;  %v6841_v44 = vpack.c.bf16 %v787_v43, %v785_v42  ;;  %7472 = vst [vmem:[#allocation13_spill] sm:$0xff] %v6958_v27 }
  0xb3   : > { %649 = vmatpush1.bf16.msra.mxu0 %v5621_v48  ;;  %5189 = vmatpush1.bf16.msra.mxu1 %v6742_v11  ;;  %v6851_v48 = vpack.c.bf16 %v792_v46, %v790_v45 }
  0xb4   : > { %650 = vmatprep.subr.bf16.mxu0 %v5625_v52  ;;  %5191 = vmatprep.subr.bf16.mxu1 %v6751_v14  ;;  %v6859_v52 = vpack.c.bf16 %v791_v51, %v789_v50 }
  0xb7   : > { %651 = vmatpush1.bf16.msra.mxu0 %v5627_v55  ;;  %5193 = vmatpush1.bf16.msra.mxu1 %v6760_v19  ;;  %v6871_v55 = vpack.c.bf16 %v796_v54, %v794_v53 }
  0xb8   : > { %652 = vmatprep.subr.bf16.mxu0 %v5631_v57  ;;  %5195 = vmatprep.subr.bf16.mxu1 %v6769_v22  ;;  %v795_v57 = vld [vmem:[%s7452_s6 + $0x170] sm:$0xff] }
  0xb9   : > { %v6879_v59 = vpack.c.bf16 %v795_v57, %v793_v56 }
  0xbb   : > { %653 = vmatpush1.bf16.msra.mxu0 %v5633_v63  ;;  %5197 = vmatpush1.bf16.msra.mxu1 %v6778_v26  ;;  %v6891_v63 = vpack.c.bf16 %v800_v61, %v798_v60 }
  0xbc   : > { %654 = vmatprep.subr.bf16.mxu0 %v5637_v2  ;;  %5199 = vmatprep.subr.bf16.mxu1 %v6787_v29  ;;  %v6899_v2 = vpack.c.bf16 %v799_v1, %v797_v0 }
  0xbf   : > { %655 = vmatpush1.bf16.msra.mxu0 %v5639_v7  ;;  %5201 = vmatpush1.bf16.msra.mxu1 %v6797_v34  ;;  %v6911_v7 = vpack.c.bf16 %v804_v5, %v802_v4 }
  0xc0   : > { %656 = vmatprep.subr.bf16.mxu0 %v5643_v10  ;;  %5203 = vmatprep.subr.bf16.mxu1 %v6806_v37  ;;  %v6919_v10 = vpack.c.bf16 %v803_v9, %v801_v8 }
  0xc3   : > { %657 = vmatpush1.bf16.msra.mxu0 %v5645_v15  ;;  %5205 = vmatpush1.bf16.msra.mxu1 %v6810_v38  ;;  %v805_v15 = vld [vmem:[%s7452_s6 + $0x1c0] sm:$0xff] }
  0xc4   : > { %658 = vmatprep.subr.bf16.mxu0 %v5649_v18  ;;  %5207 = vmatprep.subr.bf16.mxu1 %v6813_v40  ;;  %v810_v18 = vld [vmem:[%s7452_s6 + $0x1e8] sm:$0xff]  ;;  %v6945_v21 = vpack.c.bf16 %v807_v17, %v805_v15 }
  0xc7   : > { %659 = vmatpush1.bf16.msra.mxu0 %v5651_v23  ;;  %5209 = vmatpush1.bf16.msra.mxu1 %v6841_v44  ;;  %v6947_v23 = vpack.c.bf16 %v812_v20, %v810_v18 }
  0xc8   : > { %5235 = vmatprep.subr.bf16.mxu0 %v6649_v32  ;;  %5211 = vmatprep.subr.bf16.mxu1 %v6851_v48 }
  0xca   : > { %661 = vmatmul.mubr.bf16.vlgmr.msra.gmra.mrb[0].mxu0 %v5653_v30 }
  0xcb   : > { %5237 = vmatpush1.bf16.msra.mxu0 %v6664_v39  ;;  %5213 = vmatpush1.bf16.msra.mxu1 %v6859_v52 }
  0xcc   : > { %5239 = vmatprep.subr.bf16.mxu0 %v6667_v41  ;;  %5215 = vmatprep.subr.bf16.mxu1 %v6871_v55 }
  0xcf   : > { %5241 = vmatpush1.bf16.msra.mxu0 %v6682_v47  ;;  %5217 = vmatpush1.bf16.msra.mxu1 %v6879_v59 }
  0xd0   : > { %5243 = vmatprep.subr.bf16.mxu0 %v6685_v49  ;;  %5219 = vmatprep.subr.bf16.mxu1 %v6891_v63 }
  0xd3   : > { %5245 = vmatpush1.bf16.msra.mxu0 %v6703_v58  ;;  %5221 = vmatpush1.bf16.msra.mxu1 %v6899_v2 }
  0xd4   : > { %5247 = vmatprep.subr.bf16.mxu0 %v6715_v62  ;;  %5223 = vmatprep.subr.bf16.mxu1 %v6911_v7 }
  0xd7   : > { %5249 = vmatpush1.bf16.msra.mxu0 %v6724_v3  ;;  %5225 = vmatpush1.bf16.msra.mxu1 %v6919_v10 }
  0xd8   : > { %5251 = vmatprep.subr.bf16.mxu0 %v6733_v6  ;;  %5227 = vmatprep.subr.bf16.mxu1 %v6934_v16 }
  0xdb   : > { %5253 = vmatpush1.bf16.msra.mxu0 %v6742_v11  ;;  %5229 = vmatpush1.bf16.msra.mxu1 %v6945_v21 }
  0xdc   : > { %5255 = vmatprep.subr.bf16.mxu0 %v6751_v14  ;;  %5231 = vmatprep.subr.bf16.mxu1 %v6947_v23 }
  0xdf   : > { %5257 = vmatpush1.bf16.msra.mxu0 %v6760_v19  ;;  %5233 = vmatpush1.bf16.msra.mxu1 %v6958_v27 }
  0xe0   : > { %5259 = vmatprep.subr.bf16.mxu0 %v6769_v22  ;;  %1572 = vmatprep.subr.bf16.mxu1 %v5658_v28 }
  0xe3   : > { %5261 = vmatpush1.bf16.msra.mxu0 %v6778_v26 }
  0xe4   : > { %5263 = vmatprep.subr.bf16.mxu0 %v6787_v29 }
  0xe7   : > { %5265 = vmatpush1.bf16.msra.mxu0 %v6797_v34 }
  0xe8   : > { %5267 = vmatprep.subr.bf16.mxu0 %v6806_v37 }
  0xeb   : > { %5269 = vmatpush1.bf16.msra.mxu0 %v6810_v38 }
  0xec   : > { %5271 = vmatprep.subr.bf16.mxu0 %v6813_v40 }
  0xef   : > { %5273 = vmatpush1.bf16.msra.mxu0 %v6841_v44 }
  0xf0   : > { %5275 = vmatprep.subr.bf16.mxu0 %v6851_v48 }
  0xf3   : > { %5277 = vmatpush1.bf16.msra.mxu0 %v6859_v52 }
  0xf4   : > { %5279 = vmatprep.subr.bf16.mxu0 %v6871_v55 }
  0xf7   : > { %5281 = vmatpush1.bf16.msra.mxu0 %v6879_v59 }
  0xf8   : > { %5283 = vmatprep.subr.bf16.mxu0 %v6891_v63 }
  0xfb   : > { %5285 = vmatpush1.bf16.msra.mxu0 %v6899_v2 }
  0xfc   : > { %5287 = vmatprep.subr.bf16.mxu0 %v6911_v7 }
  0xff   : > { %5289 = vmatpush1.bf16.msra.mxu0 %v6919_v10 }
 0x100   : > { %5291 = vmatprep.subr.bf16.mxu0 %v6934_v16 }
 0x103   : > { %5293 = vmatpush1.bf16.msra.mxu0 %v6945_v21 }
 0x104   : > { %5295 = vmatprep.subr.bf16.mxu0 %v6947_v23 }
 0x107   : > { %5297 = vmatpush1.bf16.msra.mxu0 %v6958_v27 }
 0x175   : > { %v705_v30 = vpop.f32.mrb[0].mxu1 }
 0x176   : > { %v707_v31 = vpop.f32.mrb[1].mxu1 }
 0x177   : > { %v709_v33 = vpop.f32.mrb[2].mxu1 }
 0x178   : > { %v711_v35 = vpop.f32.mrb[3].mxu1 }
 0x19d   : > { %v662_v36 = vpop.f32.mrb[0].mxu0 }
 0x19e   : > { %v6965_v42 = vadd.f32 %v705_v30, %v662_v36  ;;  %v664_v43 = vpop.f32.mrb[1].mxu0 }
 0x19f   : > { %v6967_v45 = vadd.f32 %v707_v31, %v664_v43  ;;  %v666_v46 = vpop.f32.mrb[2].mxu0 }
 0x1a0   : > { %v6969_v50 = vadd.f32 %v709_v33, %v666_v46  ;;  %v668_v51 = vpop.f32.mrb[3].mxu0  ;;  %v728_v54 = vmul.f32 %v6965_v42, %v6965_v42 }
 0x1a1   : > { %v6971_v53 = vadd.f32 %v711_v35, %v668_v51  ;;  %v729_v60 = vmul.f32 %v6967_v45, %v6967_v45 }
 0x1a2   : > { %v714_v56 = vadd.f32 %v6969_v50, %v6965_v42  ;;  %v730_v57 = vmul.f32 %v6969_v50, %v6969_v50 }
 0x1a3   : > { %v721_v61 = vadd.f32 %v6971_v53, %v6967_v45  ;;  %v731_v0 = vmul.f32 %v6971_v53, %v6971_v53 }
 0x1a4   : > { %v715_v1 = vrot.slane %v714_v56, 4  ;;  %v732_v4 = vadd.f32 %v730_v57, %v728_v54 }
 0x1a5   : > { %v722_v5 = vrot.slane %v721_v61, 4  ;;  %v739_v8 = vadd.f32 %v731_v0, %v729_v60 }
 0x1a6   : > { %v716_v9 = vadd.f32 %v715_v1, %v714_v56  ;;  %v733_v12 = vrot.slane %v732_v4, 4  ;;  %v5661_v1 = vld [vmem:[#allocation4 + $0x14] ss:$8 sps:$4 sm:$0xff]  }
 0x1a7   : > { %v723_v13 = vadd.f32 %v722_v5, %v721_v61  ;;  %v740_v15 = vrot.slane %v739_v8, 4  ;;  %v5656_v61 = vld [vmem:[#allocation4] ss:$8 sps:$4 sm:$0xff]   ;;  %v5659_v5 = vld [vmem:[#allocation4 + $0x10] ss:$8 sps:$4 sm:$0xff]  }
 0x1a8   : > { %v717_v17 = vrot.slane %v716_v9, 2  ;;  %v734_v18 = vadd.f32 %v733_v12, %v732_v4  ;;  %v5667_v12 = vld [vmem:[#allocation4 + $0x34] ss:$8 sps:$4 sm:$0xff]  }
 0x1a9   : > { %v724_v20 = vrot.slane %v723_v13, 2  ;;  %v741_v24 = vadd.f32 %v740_v15, %v739_v8  ;;  %v5664_v8 = vld [vmem:[#allocation4 + $0x24] ss:$8 sps:$4 sm:$0xff]  }
 0x1aa   : > { %v718_v25 = vadd.f32 %v717_v17, %v716_v9  ;;  %v735_v28 = vrot.slane %v734_v18, 2  ;;  %v5662_v9 = vld [vmem:[#allocation4 + $0x20] ss:$8 sps:$4 sm:$0xff]   ;;  %v5670_v15 = vld [vmem:[#allocation4 + $0x44] ss:$8 sps:$4 sm:$0xff]  }
 0x1ab   : > { %v725_v30 = vadd.f32 %v724_v20, %v723_v13  ;;  %v742_v31 = vrot.slane %v741_v24, 2  ;;  %v5665_v13 = vld [vmem:[#allocation4 + $0x30] ss:$8 sps:$4 sm:$0xff]   ;;  %v5668_v17 = vld [vmem:[#allocation4 + $0x40] ss:$8 sps:$4 sm:$0xff]  }
 0x1ac   : > { %v736_v33 = vadd.f32 %v735_v28, %v734_v18  ;;  %v719_v43 = vrot.slane %v718_v25, 1  ;;  %v5673_v18 = vld [vmem:[#allocation4 + $0x54] ss:$8 sps:$4 sm:$0xff]   ;;  %v5671_v20 = vld [vmem:[#allocation4 + $0x50] ss:$8 sps:$4 sm:$0xff]  }
 0x1ad   : > { %v726_v35 = vrot.slane %v725_v30, 1  ;;  %v743_v36 = vadd.f32 %v742_v31, %v741_v24  ;;  %v5676_v24 = vld [vmem:[#allocation4 + $0x64] ss:$8 sps:$4 sm:$0xff]   ;;  %v5679_v28 = vld [vmem:[#allocation4 + $0x74] ss:$8 sps:$4 sm:$0xff]  }
 0x1ae   : > { %v737_v46 = vrot.slane %v736_v33, 1  ;;  %v720_v60 = vadd.f32 %v719_v43, %v718_v25  ;;  %v5674_v25 = vld [vmem:[#allocation4 + $0x60] ss:$8 sps:$4 sm:$0xff]   ;;  %v5682_v31 = vld [vmem:[#allocation4 + $0x84] ss:$8 sps:$4 sm:$0xff]  }
 0x1af   : > { %v744_v51 = vrot.slane %v743_v36, 1  ;;  %v727_v56 = vadd.f32 %v726_v35, %v725_v30  ;;  %v5677_v30 = vld [vmem:[#allocation4 + $0x70] ss:$8 sps:$4 sm:$0xff]   ;;  %v5685_v35 = vld [vmem:[#allocation4 + $0x94] ss:$8 sps:$4 sm:$0xff]  }
 0x1b0   : > { %v738_v54 = vadd.f32 %v737_v46, %v736_v33  ;;  %v5680_v33 = vld [vmem:[#allocation4 + $0x80] ss:$8 sps:$4 sm:$0xff]   ;;  %v5688_v43 = vld [vmem:[#allocation4 + $0xa4] ss:$8 sps:$4 sm:$0xff]  }
 0x1b1   : > { %v745_v57 = vadd.f32 %v744_v51, %v743_v36  ;;  %v5683_v36 = vld [vmem:[#allocation4 + $0x90] ss:$8 sps:$4 sm:$0xff]   ;;  %v5686_v46 = vld [vmem:[#allocation4 + $0xa0] ss:$8 sps:$4 sm:$0xff]   ;;  %v5691_v51 = vld [vmem:[#allocation4 + $0xb4] ss:$8 sps:$4 sm:$0xff]  }
 0x1b2   : > { %v747_v4 = vsel %vm746_vm1, %v720_v60, %v738_v54  ;;  %v5689_v54 = vld [vmem:[#allocation4 + $0xb0] ss:$8 sps:$4 sm:$0xff]   ;;  %v5697_v60 = vld [vmem:[#allocation4 + $0xd4] ss:$8 sps:$4 sm:$0xff]  }
 0x1b3   : > { %v748_v0 = vsel %vm746_vm1, %v727_v56, %v745_v57  ;;  %v5694_v56 = vld [vmem:[#allocation4 + $0xc4] ss:$8 sps:$4 sm:$0xff]   ;;  %v5692_v57 = vld [vmem:[#allocation4 + $0xc0] ss:$8 sps:$4 sm:$0xff]  }
 0x1b4   : > { %877 = vmatprep.mubr.f32.mxu1 %v748_v0  ;;  %v5700_v0 = vld [vmem:[#allocation4 + $0xe4] ss:$8 sps:$4 sm:$0xff]  }
 0x1b5   : > { %878 = vmatmul.mubr.f32.vlgmr.msra.gmra.mrb[4].mxu1 %v747_v4  ;;  %v5703_v4 = vld [vmem:[#allocation4 + $0xf4] ss:$8 sps:$4 sm:$0xff]  }
 0x1b6   : > { %1573 = vmatpush1.bf16.msra.mxu1 %v5656_v61  ;;  %v5695_v61 = vld [vmem:[#allocation4 + $0xd0] ss:$8 sps:$4 sm:$0xff]  }
 0x1b7   : > { %1574 = vmatprep.subr.bf16.mxu1 %v5661_v1  ;;  %v5698_v1 = vld [vmem:[#allocation4 + $0xe0] ss:$8 sps:$4 sm:$0xff]  }
 0x1ba   : > { %1575 = vmatpush1.bf16.msra.mxu1 %v5659_v5  ;;  %v5701_v5 = vld [vmem:[#allocation4 + $0xf0] ss:$8 sps:$4 sm:$0xff]  }
 0x1bb   : > { %1576 = vmatprep.subr.bf16.mxu1 %v5664_v8  ;;  %v5706_v8 = vld [vmem:[#allocation4 + $0x104] ss:$8 sps:$4 sm:$0xff]  }
 0x1be   : > { %1577 = vmatpush1.bf16.msra.mxu1 %v5662_v9 }
 0x1bf   : > { %1578 = vmatprep.subr.bf16.mxu1 %v5667_v12 }
 0x1c2   : > { %1579 = vmatpush1.bf16.msra.mxu1 %v5665_v13 }
 0x1c3   : > { %1580 = vmatprep.subr.bf16.mxu1 %v5670_v15 }
 0x1c6   : > { %1581 = vmatpush1.bf16.msra.mxu1 %v5668_v17 }
 0x1c7   : > { %1582 = vmatprep.subr.bf16.mxu1 %v5673_v18 }
 0x1ca   : > { %1583 = vmatpush1.bf16.msra.mxu1 %v5671_v20 }
 0x1cb   : > { %1584 = vmatprep.subr.bf16.mxu1 %v5676_v24  ;;  %v896_v24 = vlaneseq }
 0x1ce   : > { %1585 = vmatpush1.bf16.msra.mxu1 %v5674_v25 }
 0x1cf   : > { %1586 = vmatprep.subr.bf16.mxu1 %v5679_v28 }
 0x1d2   : > { %1587 = vmatpush1.bf16.msra.mxu1 %v5677_v30 }
 0x1d3   : > { %1588 = vmatprep.subr.bf16.mxu1 %v5682_v31 }
 0x1d6   : > { %1589 = vmatpush1.bf16.msra.mxu1 %v5680_v33  ;;  %v897_v33 = vshrl.u32 %v896_v24, 7 }
 0x1d7   : > { %1590 = vmatprep.subr.bf16.mxu1 %v5685_v35 }
 0x1da   : > { %1591 = vmatpush1.bf16.msra.mxu1 %v5683_v36  ;;  %v6987_v36 = vsub.s32 0, %v897_v33 }
 0x1db   : > { %1592 = vmatprep.subr.bf16.mxu1 %v5688_v43 }
 0x1de   : > { %1593 = vmatpush1.bf16.msra.mxu1 %v5686_v46  ;;  %v6990_v46 = vsub.s32 1, %v897_v33 }
 0x1df   : > { %1594 = vmatprep.subr.bf16.mxu1 %v5691_v51 }
 0x1e2   : > { %1595 = vmatpush1.bf16.msra.mxu1 %v5689_v54 }
 0x1e3   : > { %1596 = vmatprep.subr.bf16.mxu1 %v5694_v56 }
 0x1e6   : > { %1597 = vmatpush1.bf16.msra.mxu1 %v5692_v57 }
 0x1e7   : > { %1598 = vmatprep.subr.bf16.mxu1 %v5697_v60 }
 0x1ea   : > { %1599 = vmatpush1.bf16.msra.mxu1 %v5695_v61 }
 0x1eb   : > { %1600 = vmatprep.subr.bf16.mxu1 %v5700_v0 }
 0x1ee   : > { %1601 = vmatpush1.bf16.msra.mxu1 %v5698_v1 }
 0x1ef   : > { %1602 = vmatprep.subr.bf16.mxu1 %v5703_v4 }
 0x1f2   : > { %1603 = vmatpush1.bf16.msra.mxu1 %v5701_v5 }
 0x1f3   : > { %1615 = vmatprep.subr.bf16.mxu1 %v5706_v8 }
 0x288   : > { %v879_v9 = vpop.f32.mrb[4].mxu1 }
 0x289   : > { %v884_v12 = vmul.f32 0.00390625, %v879_v9  ;;  %v881_v13 = vpop.f32.mrb[5].mxu1 }
 0x28a   : > { %v885_v15 = vmul.f32 0.00390625, %v881_v13 }
 0x28b   : > { %v886_v17 = vmul.f32 %v884_v12, %v884_v12  ;;  %v899_v43 = vrot.slane %v884_v12, %v6987_v36 }
 0x28c   : > { %v887_v18 = vmul.f32 %v885_v15, %v885_v15  ;;  %v903_v51 = vrot.slane %v885_v15, %v6987_v36 }
 0x28d   : > { %v890_v20 = vrot.slane %v886_v17, 7  ;;  %v904_v57 = vsub.f32 %v6965_v42, %v899_v43  ;;  %v906_v60 = vsub.f32 %v6969_v50, %v899_v43 }
 0x28e   : > { %v891_v25 = vrot.slane %v887_v18, 7  ;;  %v905_v0 = vsub.f32 %v6967_v45, %v903_v51  ;;  %v907_v1 = vsub.f32 %v6971_v53, %v903_v51 }
 0x28f   : > { %v894_v28 = vsub.f32 %v884_v12, %v890_v20 }
 0x290   : > { %v895_v30 = vsub.f32 %v885_v15, %v891_v25 }
 0x291   : > { %v908_v31 = vadd.f32 1e-05, %v894_v28 }
 0x292   : > { %v909_v35 = vadd.f32 1e-05, %v895_v30 }
 0x293   : > { %6232 = vrsqrt.f32 %v908_v31 }
 0x294   : > { %6234 = vrsqrt.f32 %v909_v35 }
 0x29d   : > { %v6233_v54 = vpop.eup %6232 }
 0x29e   : > { %v6235_v56 = vpop.eup %6234  ;;  %v915_v61 = vrot.slane %v6233_v54, %v6990_v46 }
 0x29f   : > { %v919_v4 = vrot.slane %v6235_v56, %v6990_v46  ;;  %v5704_v56 = vld [vmem:[#allocation4 + $0x100] ss:$8 sps:$4 sm:$0xff]  }
 0x2a0   : > { %v920_v5 = vmul.f32 %v915_v61, %v904_v57  ;;  %v922_v8 = vmul.f32 %v915_v61, %v906_v60 }
 0x2a1   : > { %v921_v9 = vmul.f32 %v919_v4, %v905_v0  ;;  %v923_v12 = vmul.f32 %v919_v4, %v907_v1  ;;  %v5709_v4 = vld [vmem:[#allocation4 + $0x114] ss:$8 sps:$4 sm:$0xff]  }
 0x2a2   : > { %v6999_v13 = vmax.f32 %v920_v5, 0.0  ;;  %v7001_v15 = vmax.f32 %v922_v8, 0.0 }
 0x2a3   : > { %v7003_v17 = vmax.f32 %v921_v9, 0.0  ;;  %v7005_v42 = vmax.f32 %v923_v12, 0.0 }
 0x2a4   : > { %7473 = vst [vmem:[#allocation14_spill] sm:$0xff] %v6999_v13  ;;  %7474 = vst [vmem:[#allocation15_spill] sm:$0xff] %v7001_v15  ;;  %v930_v50 = vrot.slane %v6999_v13, 1  ;;  %v936_v45 = vrot.slane %v6999_v13, 7  ;;  %v938_v53 = vrot.slane %v7001_v15, 7  ;;  %v948_v18 = vrot.slane %v7001_v15, 5 }
 0x2a5   : > { %7475 = vst [vmem:[#allocation16_spill] sm:$0xff] %v7003_v17  ;;  %7476 = vst [vmem:[#allocation17_spill] sm:$0xff] %v7005_v42  ;;  %v931_v20 = vrot.slane %v7003_v17, 1  ;;  %v937_v24 = vrot.slane %v7003_v17, 7  ;;  %v940_v25 = vrot.slane %v7005_v42, 7  ;;  %v949_v28 = vrot.slane %v7005_v42, 5 }
 0x2a6   : > { %v7016_v30 = vsel %vm746_vm1, %v936_v45, %v938_v53  ;;  %v7019_v31 = vsel %vm746_vm1, %v930_v50, %v936_v45  ;;  %v7034_v61 = vsel %vm746_vm1, %v938_v53, %v948_v18  ;;  %v5707_v45 = vld [vmem:[#allocation4 + $0x110] ss:$8 sps:$4 sm:$0xff]   ;;  %v5712_v18 = vld [vmem:[#allocation4 + $0x124] ss:$8 sps:$4 sm:$0xff]  }
 0x2a7   : > { %v7022_v33 = vsel %vm746_vm1, %v937_v24, %v940_v25  ;;  %v7025_v35 = vsel %vm746_vm1, %v931_v20, %v937_v24  ;;  %v976_v57 = vrot.slane %v7019_v31, 2  ;;  %v977_v60 = vrot.slane %v7016_v30, 2 }
 0x2a8   : > { %v964_v43 = vrot.slane %v7025_v35, 1  ;;  %v965_v51 = vrot.slane %v7022_v33, 1  ;;  %v991_v54 = vpack.c.bf16 %v7022_v33, %v7025_v35  ;;  %v990_v0 = vpack.c.bf16 %v7016_v30, %v7019_v31 }
 0x2a9   : > { %v7039_v1 = vsel %vm746_vm1, %v940_v25, %v949_v28  ;;  %v7044_v9 = vsel %vm975_vm3, %v976_v57, %v977_v60  ;;  %v982_v12 = vrot.slane %v7034_v61, 2  ;;  %v5710_v25 = vld [vmem:[#allocation4 + $0x120] ss:$8 sps:$4 sm:$0xff]   ;;  %v5715_v28 = vld [vmem:[#allocation4 + $0x134] ss:$8 sps:$4 sm:$0xff]  }
 0x2aa   : > { %1604 = vmatprep.mubr.bf16.mxu1 %v991_v54  ;;  %v966_v5 = vsel %vm960_vm2, %v964_v43, %v965_v51  ;;  %v969_v8 = vrot.slane %v7039_v1, 1  ;;  %v5713_v43 = vld [vmem:[#allocation4 + $0x130] ss:$8 sps:$4 sm:$0xff]   ;;  %v5718_v54 = vld [vmem:[#allocation4 + $0x144] ss:$8 sps:$4 sm:$0xff]  }
 0x2ab   : > { %1605 = vmatmul.mubr.bf16.vlgmr.msra.gmra.mrb[8].mxu1 %v990_v0  ;;  %v7049_v20 = vsel %vm975_vm3, %v977_v60, %v982_v12  ;;  %v5719_v57 = vld [vmem:[#allocation4 + $0x150] ss:$8 sps:$4 sm:$0xff]   ;;  %v5724_v60 = vld [vmem:[#allocation4 + $0x164] ss:$8 sps:$4 sm:$0xff]   ;;  %v5722_v0 = vld [vmem:[#allocation4 + $0x160] ss:$8 sps:$4 sm:$0xff]  }
 0x2ac   : > { %1616 = vmatpush1.bf16.msra.mxu1 %v5704_v56  ;;  %v970_v50 = vsel %vm960_vm2, %v965_v51, %v969_v8  ;;  %v994_v24 = vpack.c.bf16 %v7049_v20, %v7044_v9  ;;  %v5716_v51 = vld [vmem:[#allocation4 + $0x140] ss:$8 sps:$4 sm:$0xff]   ;;  %v5721_v56 = vld [vmem:[#allocation4 + $0x154] ss:$8 sps:$4 sm:$0xff]   ;;  %v5730_v8 = vld [vmem:[#allocation4 + $0x184] ss:$8 sps:$4 sm:$0xff]  }
 0x2ad   : > { %v993_v53 = vpack.c.bf16 %v970_v50, %v966_v5  ;;  %1617 = vmatprep.subr.bf16.mxu1 %v5709_v4  ;;  %v5727_v4 = vld [vmem:[#allocation4 + $0x174] ss:$8 sps:$4 sm:$0xff]   ;;  %v5725_v5 = vld [vmem:[#allocation4 + $0x170] ss:$8 sps:$4 sm:$0xff]   ;;  %v5728_v12 = vld [vmem:[#allocation4 + $0x180] ss:$8 sps:$4 sm:$0xff]  }
 0x2ae   : > { %v5733_v50 = vld [vmem:[#allocation4 + $0x194] ss:$8 sps:$4 sm:$0xff]   ;;  %v5802_v9 = vld [vmem:[#allocation6 + $0x4] ss:$8 sps:$4 sm:$0xff]  }
 0x2af   : > { %1647 = vmatprep.mubr.bf16.mxu1 %v993_v53  ;;  %v5736_v53 = vld [vmem:[#allocation4 + $0x1a4] ss:$8 sps:$4 sm:$0xff]   ;;  %2492 = vmatprep.subr.bf16.mxu0 %v5802_v9 }
 0x2b0   : > { %1618 = vmatpush1.bf16.msra.mxu1 %v5707_v45  ;;  %v5731_v45 = vld [vmem:[#allocation4 + $0x190] ss:$8 sps:$4 sm:$0xff]  }
 0x2b1   : > { %1619 = vmatprep.subr.bf16.mxu1 %v5712_v18  ;;  %v5734_v18 = vld [vmem:[#allocation4 + $0x1a0] ss:$8 sps:$4 sm:$0xff]  }
 0x2b4   : > { %1620 = vmatpush1.bf16.msra.mxu1 %v5710_v25  ;;  %v5739_v25 = vld [vmem:[#allocation4 + $0x1b4] ss:$8 sps:$4 sm:$0xff]  }
 0x2b5   : > { %1621 = vmatprep.subr.bf16.mxu1 %v5715_v28  ;;  %v5737_v28 = vld [vmem:[#allocation4 + $0x1b0] ss:$8 sps:$4 sm:$0xff]  }
 0x2b8   : > { %1622 = vmatpush1.bf16.msra.mxu1 %v5713_v43  ;;  %v5742_v43 = vld [vmem:[#allocation4 + $0x1c4] ss:$8 sps:$4 sm:$0xff]  }
 0x2b9   : > { %1623 = vmatprep.subr.bf16.mxu1 %v5718_v54  ;;  %v5740_v54 = vld [vmem:[#allocation4 + $0x1c0] ss:$8 sps:$4 sm:$0xff]  }
 0x2bc   : > { %1624 = vmatpush1.bf16.msra.mxu1 %v5716_v51  ;;  %v5745_v51 = vld [vmem:[#allocation4 + $0x1d4] ss:$8 sps:$4 sm:$0xff]  }
 0x2bd   : > { %1625 = vmatprep.subr.bf16.mxu1 %v5721_v56  ;;  %v5743_v56 = vld [vmem:[#allocation4 + $0x1d0] ss:$8 sps:$4 sm:$0xff]  }
 0x2c0   : > { %1626 = vmatpush1.bf16.msra.mxu1 %v5719_v57  ;;  %v5748_v57 = vld [vmem:[#allocation4 + $0x1e4] ss:$8 sps:$4 sm:$0xff]  }
 0x2c1   : > { %1627 = vmatprep.subr.bf16.mxu1 %v5724_v60  ;;  %v5746_v60 = vld [vmem:[#allocation4 + $0x1e0] ss:$8 sps:$4 sm:$0xff]  }
 0x2c4   : > { %1628 = vmatpush1.bf16.msra.mxu1 %v5722_v0  ;;  %v5751_v0 = vld [vmem:[#allocation4 + $0x1f4] ss:$8 sps:$4 sm:$0xff]  }
 0x2c5   : > { %1629 = vmatprep.subr.bf16.mxu1 %v5727_v4  ;;  %v961_v4 = vrot.slane %v7019_v31, 1 }
 0x2c8   : > { %1630 = vmatpush1.bf16.msra.mxu1 %v5725_v5  ;;  %v962_v5 = vrot.slane %v7016_v30, 1 }
 0x2c9   : > { %1631 = vmatprep.subr.bf16.mxu1 %v5730_v8  ;;  %v967_v8 = vrot.slane %v7034_v61, 1  ;;  %v5752_v61 = vld [vmem:[#allocation4 + $0x200] ss:$8 sps:$4 sm:$0xff]  }
 0x2cc   : > { %1632 = vmatpush1.bf16.msra.mxu1 %v5728_v12  ;;  %v979_v12 = vrot.slane %v7025_v35, 2  ;;  %v5757_v35 = vld [vmem:[#allocation4 + $0x214] ss:$8 sps:$4 sm:$0xff]  }
 0x2cd   : > { %1633 = vmatprep.subr.bf16.mxu1 %v5733_v50  ;;  %v980_v50 = vrot.slane %v7022_v33, 2 }
 0x2cf   : > { %v981_v31 = vsel %vm975_vm3, %v979_v12, %v980_v50  ;;  %v5770_v12 = vld [vmem:[#allocation4 + $0x260] ss:$8 sps:$4 sm:$0xff]  }
 0x2d0   : > { %1634 = vmatpush1.bf16.msra.mxu1 %v5731_v45  ;;  %v984_v45 = vrot.slane %v7039_v1, 2  ;;  %v5755_v1 = vld [vmem:[#allocation4 + $0x210] ss:$8 sps:$4 sm:$0xff]  }
 0x2d1   : > { %1635 = vmatprep.subr.bf16.mxu1 %v5736_v53  ;;  %v5749_v53 = vld [vmem:[#allocation4 + $0x1f0] ss:$8 sps:$4 sm:$0xff]  }
 0x2d2   : > { %v985_v30 = vsel %vm975_vm3, %v980_v50, %v984_v45  ;;  %v5775_v50 = vld [vmem:[#allocation4 + $0x274] ss:$8 sps:$4 sm:$0xff]   ;;  %v5773_v45 = vld [vmem:[#allocation4 + $0x270] ss:$8 sps:$4 sm:$0xff]  }
 0x2d3   : > { %v995_v33 = vpack.c.bf16 %v985_v30, %v981_v31  ;;  %v5784_v31 = vld [vmem:[#allocation4 + $0x2a4] ss:$8 sps:$4 sm:$0xff]   ;;  %v5782_v30 = vld [vmem:[#allocation4 + $0x2a0] ss:$8 sps:$4 sm:$0xff]  }
 0x2d4   : > { %1636 = vmatpush1.bf16.msra.mxu1 %v5734_v18  ;;  %v5754_v18 = vld [vmem:[#allocation4 + $0x204] ss:$8 sps:$4 sm:$0xff]  }
 0x2d5   : > { %1637 = vmatprep.subr.bf16.mxu1 %v5739_v25  ;;  %v963_v25 = vsel %vm960_vm2, %v961_v4, %v962_v5  ;;  %v5769_v4 = vld [vmem:[#allocation4 + $0x254] ss:$8 sps:$4 sm:$0xff]  }
 0x2d8   : > { %1638 = vmatpush1.bf16.msra.mxu1 %v5737_v28  ;;  %v968_v28 = vsel %vm960_vm2, %v962_v5, %v967_v8  ;;  %v5767_v5 = vld [vmem:[#allocation4 + $0x250] ss:$8 sps:$4 sm:$0xff]   ;;  %v5772_v8 = vld [vmem:[#allocation4 + $0x264] ss:$8 sps:$4 sm:$0xff]  }
 0x2d9   : > { %1639 = vmatprep.subr.bf16.mxu1 %v5742_v43  ;;  %v992_v43 = vpack.c.bf16 %v968_v28, %v963_v25  ;;  %v5781_v25 = vld [vmem:[#allocation4 + $0x294] ss:$8 sps:$4 sm:$0xff]   ;;  %v5779_v28 = vld [vmem:[#allocation4 + $0x290] ss:$8 sps:$4 sm:$0xff]  }
 0x2dc   : > { %1640 = vmatpush1.bf16.msra.mxu1 %v5740_v54  ;;  %v5760_v54 = vld [vmem:[#allocation4 + $0x224] ss:$8 sps:$4 sm:$0xff]  }
 0x2dd   : > { %1641 = vmatprep.subr.bf16.mxu1 %v5745_v51  ;;  %v5758_v51 = vld [vmem:[#allocation4 + $0x220] ss:$8 sps:$4 sm:$0xff]  }
 0x2e0   : > { %1642 = vmatpush1.bf16.msra.mxu1 %v5743_v56  ;;  %v5763_v56 = vld [vmem:[#allocation4 + $0x234] ss:$8 sps:$4 sm:$0xff]  }
 0x2e1   : > { %1643 = vmatprep.subr.bf16.mxu1 %v5748_v57  ;;  %v5761_v57 = vld [vmem:[#allocation4 + $0x230] ss:$8 sps:$4 sm:$0xff]  }
 0x2e4   : > { %1644 = vmatpush1.bf16.msra.mxu1 %v5746_v60  ;;  %v5766_v60 = vld [vmem:[#allocation4 + $0x244] ss:$8 sps:$4 sm:$0xff]  }
 0x2e5   : > { %1645 = vmatprep.subr.bf16.mxu1 %v5751_v0  ;;  %v5764_v0 = vld [vmem:[#allocation4 + $0x240] ss:$8 sps:$4 sm:$0xff]  }
 0x2e8   : > { %1646 = vmatpush1.bf16.msra.mxu1 %v5749_v53  ;;  %v5778_v53 = vld [vmem:[#allocation4 + $0x284] ss:$8 sps:$4 sm:$0xff]  }
 0x2e9   : > { %1658 = vmatprep.subr.bf16.mxu1 %v5754_v18  ;;  %v5776_v18 = vld [vmem:[#allocation4 + $0x280] ss:$8 sps:$4 sm:$0xff]  }
 0x2eb   : > { %1648 = vmatmul.mubr.bf16.vlgmr.msra.gmra.mrb[8].mxu1 %v992_v43  ;;  %v5785_v43 = vld [vmem:[#allocation4 + $0x2b0] ss:$8 sps:$4 sm:$0xff]  }
 0x2ec   : > { %1659 = vmatpush1.bf16.msra.mxu1 %v5752_v61  ;;  %1690 = vmatprep.mubr.bf16.mxu1 %v995_v33  ;;  %v5787_v61 = vld [vmem:[#allocation4 + $0x2b4] ss:$8 sps:$4 sm:$0xff]   ;;  %v5788_v33 = vld [vmem:[#allocation4 + $0x2c0] ss:$8 sps:$4 sm:$0xff]  }
 0x2ed   : > { %1660 = vmatprep.subr.bf16.mxu1 %v5757_v35  ;;  %v5790_v35 = vld [vmem:[#allocation4 + $0x2c4] ss:$8 sps:$4 sm:$0xff]  }
 0x2f0   : > { %1661 = vmatpush1.bf16.msra.mxu1 %v5755_v1  ;;  %v5793_v1 = vld [vmem:[#allocation4 + $0x2d4] ss:$8 sps:$4 sm:$0xff]  }
 0x2f1   : > { %1662 = vmatprep.subr.bf16.mxu1 %v5760_v54  ;;  %v5791_v54 = vld [vmem:[#allocation4 + $0x2d0] ss:$8 sps:$4 sm:$0xff]  }
 0x2f4   : > { %1663 = vmatpush1.bf16.msra.mxu1 %v5758_v51  ;;  %v5796_v51 = vld [vmem:[#allocation4 + $0x2e4] ss:$8 sps:$4 sm:$0xff]  }
 0x2f5   : > { %1664 = vmatprep.subr.bf16.mxu1 %v5763_v56  ;;  %v5794_v56 = vld [vmem:[#allocation4 + $0x2e0] ss:$8 sps:$4 sm:$0xff]  }
 0x2f8   : > { %1665 = vmatpush1.bf16.msra.mxu1 %v5761_v57  ;;  %v5799_v57 = vld [vmem:[#allocation4 + $0x2f4] ss:$8 sps:$4 sm:$0xff]  }
 0x2f9   : > { %1666 = vmatprep.subr.bf16.mxu1 %v5766_v60  ;;  %v5797_v60 = vld [vmem:[#allocation4 + $0x2f0] ss:$8 sps:$4 sm:$0xff]  }
 0x2fc   : > { %1667 = vmatpush1.bf16.msra.mxu1 %v5764_v0 }
 0x2fd   : > { %1668 = vmatprep.subr.bf16.mxu1 %v5769_v4 }
 0x300   : > { %1669 = vmatpush1.bf16.msra.mxu1 %v5767_v5 }
 0x301   : > { %1670 = vmatprep.subr.bf16.mxu1 %v5772_v8 }
 0x304   : > { %1671 = vmatpush1.bf16.msra.mxu1 %v5770_v12 }
 0x305   : > { %1672 = vmatprep.subr.bf16.mxu1 %v5775_v50 }
 0x308   : > { %1673 = vmatpush1.bf16.msra.mxu1 %v5773_v45 }
 0x309   : > { %1674 = vmatprep.subr.bf16.mxu1 %v5778_v53 }
 0x30c   : > { %1675 = vmatpush1.bf16.msra.mxu1 %v5776_v18 }
 0x30d   : > { %1676 = vmatprep.subr.bf16.mxu1 %v5781_v25 }
 0x310   : > { %1677 = vmatpush1.bf16.msra.mxu1 %v5779_v28 }
 0x311   : > { %1678 = vmatprep.subr.bf16.mxu1 %v5784_v31 }
 0x314   : > { %1679 = vmatpush1.bf16.msra.mxu1 %v5782_v30 }
 0x315   : > { %1680 = vmatprep.subr.bf16.mxu1 %v5787_v61 }
 0x318   : > { %1681 = vmatpush1.bf16.msra.mxu1 %v5785_v43 }
 0x319   : > { %1682 = vmatprep.subr.bf16.mxu1 %v5790_v35 }
 0x31c   : > { %1683 = vmatpush1.bf16.msra.mxu1 %v5788_v33 }
 0x31d   : > { %1684 = vmatprep.subr.bf16.mxu1 %v5793_v1 }
 0x320   : > { %1685 = vmatpush1.bf16.msra.mxu1 %v5791_v54 }
 0x321   : > { %1686 = vmatprep.subr.bf16.mxu1 %v5796_v51 }
 0x324   : > { %1687 = vmatpush1.bf16.msra.mxu1 %v5794_v56 }
 0x325   : > { %1688 = vmatprep.subr.bf16.mxu1 %v5799_v57 }
 0x328   : > { %1689 = vmatpush1.bf16.msra.mxu1 %v5797_v60 }
 0x329   : > { %5299 = vmatprep.subr.bf16.mxu1 %v6649_v32 }
 0x32b   : > { %1691 = vmatmul.mubr.bf16.vlgmr.msra.gmra.mrb[8].mxu1 %v994_v24 }
 0x32c   : > { %5301 = vmatpush1.bf16.msra.mxu1 %v6664_v39 }
 0x32d   : > { %5303 = vmatprep.subr.bf16.mxu1 %v6667_v41 }
 0x330   : > { %5305 = vmatpush1.bf16.msra.mxu1 %v6682_v47 }
 0x331   : > { %5307 = vmatprep.subr.bf16.mxu1 %v6685_v49 }
 0x334   : > { %5309 = vmatpush1.bf16.msra.mxu1 %v6703_v58 }
 0x335   : > { %5311 = vmatprep.subr.bf16.mxu1 %v6715_v62 }
 0x338   : > { %5313 = vmatpush1.bf16.msra.mxu1 %v6724_v3 }
 0x339   : > { %5315 = vmatprep.subr.bf16.mxu1 %v6733_v6 }
 0x33c   : > { %5317 = vmatpush1.bf16.msra.mxu1 %v6742_v11 }
 0x33d   : > { %5319 = vmatprep.subr.bf16.mxu1 %v6751_v14 }
 0x340   : > { %5321 = vmatpush1.bf16.msra.mxu1 %v6760_v19 }
 0x341   : > { %5323 = vmatprep.subr.bf16.mxu1 %v6769_v22 }
 0x344   : > { %5325 = vmatpush1.bf16.msra.mxu1 %v6778_v26 }
 0x345   : > { %5327 = vmatprep.subr.bf16.mxu1 %v6787_v29 }
 0x348   : > { %5329 = vmatpush1.bf16.msra.mxu1 %v6797_v34 }
 0x349   : > { %5331 = vmatprep.subr.bf16.mxu1 %v6806_v37 }
 0x34c   : > { %5333 = vmatpush1.bf16.msra.mxu1 %v6810_v38 }
 0x34d   : > { %5335 = vmatprep.subr.bf16.mxu1 %v6813_v40 }
 0x350   : > { %5337 = vmatpush1.bf16.msra.mxu1 %v6841_v44 }
 0x351   : > { %5339 = vmatprep.subr.bf16.mxu1 %v6851_v48 }
 0x354   : > { %5341 = vmatpush1.bf16.msra.mxu1 %v6859_v52 }
 0x355   : > { %5343 = vmatprep.subr.bf16.mxu1 %v6871_v55 }
 0x358   : > { %5345 = vmatpush1.bf16.msra.mxu1 %v6879_v59 }
 0x359   : > { %5347 = vmatprep.subr.bf16.mxu1 %v6891_v63 }
 0x35c   : > { %5349 = vmatpush1.bf16.msra.mxu1 %v6899_v2 }
 0x35d   : > { %5351 = vmatprep.subr.bf16.mxu1 %v6911_v7 }
 0x360   : > { %5353 = vmatpush1.bf16.msra.mxu1 %v6919_v10 }
 0x361   : > { %5355 = vmatprep.subr.bf16.mxu1 %v6934_v16 }
 0x364   : > { %5357 = vmatpush1.bf16.msra.mxu1 %v6945_v21 }
 0x365   : > { %5359 = vmatprep.subr.bf16.mxu1 %v6947_v23 }
 0x368   : > { %5361 = vmatpush1.bf16.msra.mxu1 %v6958_v27 }
 0x3fe   : > { %v7098_v20 = vpop.f32.mrb[8].mxu1 }
 0x3ff   : > { %v7100_v24 = vpop.f32.mrb[9].mxu1  ;;  %v1715_v4 = vmul.f32 %v7098_v20, %v7098_v20 }
 0x400   : > { %v7102_v0 = vpop.f32.mrb[10].mxu1  ;;  %v1716_v50 = vmul.f32 %v7100_v24, %v7100_v24 }
 0x401   : > { %v1701_v5 = vadd.f32 %v7102_v0, %v7098_v20  ;;  %v1717_v8 = vmul.f32 %v7102_v0, %v7102_v0  ;;  %v7110_v12 = vpop.f32.mrb[11].mxu1 }
 0x402   : > { %v1708_v45 = vadd.f32 %v7110_v12, %v7100_v24  ;;  %v1718_v53 = vmul.f32 %v7110_v12, %v7110_v12 }
 0x403   : > { %v1702_v18 = vrot.slane %v1701_v5, 4  ;;  %v1719_v25 = vadd.f32 %v1717_v8, %v1715_v4 }
 0x404   : > { %v1709_v28 = vrot.slane %v1708_v45, 4  ;;  %v1726_v31 = vadd.f32 %v1718_v53, %v1716_v50 }
 0x405   : > { %v1703_v30 = vadd.f32 %v1702_v18, %v1701_v5  ;;  %v1720_v61 = vrot.slane %v1719_v25, 4  ;;  %v5800_v18 = vld [vmem:[#allocation6] ss:$8 sps:$4 sm:$0xff]  }
 0x406   : > { %v1710_v43 = vadd.f32 %v1709_v28, %v1708_v45  ;;  %v1727_v35 = vrot.slane %v1726_v31, 4  ;;  %v5805_v28 = vld [vmem:[#allocation6 + $0x14] ss:$8 sps:$4 sm:$0xff]  }
 0x407   : > { %v1704_v33 = vrot.slane %v1703_v30, 2  ;;  %v1721_v1 = vadd.f32 %v1720_v61, %v1719_v25  ;;  %v5806_v61 = vld [vmem:[#allocation6 + $0x20] ss:$8 sps:$4 sm:$0xff]  }
 0x408   : > { %v1711_v54 = vrot.slane %v1710_v43, 2  ;;  %v1728_v51 = vadd.f32 %v1727_v35, %v1726_v31  ;;  %v5803_v31 = vld [vmem:[#allocation6 + $0x10] ss:$8 sps:$4 sm:$0xff]   ;;  %v5820_v35 = vld [vmem:[#allocation6 + $0x64] ss:$8 sps:$4 sm:$0xff]  }
 0x409   : > { %v1705_v56 = vadd.f32 %v1704_v33, %v1703_v30  ;;  %v1722_v57 = vrot.slane %v1721_v1, 2  ;;  %v5808_v30 = vld [vmem:[#allocation6 + $0x24] ss:$8 sps:$4 sm:$0xff]   ;;  %v5818_v33 = vld [vmem:[#allocation6 + $0x60] ss:$8 sps:$4 sm:$0xff]  }
 0x40a   : > { %v1712_v60 = vadd.f32 %v1711_v54, %v1710_v43  ;;  %v1729_v9 = vrot.slane %v1728_v51, 2  ;;  %v5811_v43 = vld [vmem:[#allocation6 + $0x34] ss:$8 sps:$4 sm:$0xff]   ;;  %v5821_v54 = vld [vmem:[#allocation6 + $0x70] ss:$8 sps:$4 sm:$0xff]  }
 0x40b   : > { %v1706_v42 = vrot.slane %v1705_v56, 1  ;;  %v1723_v17 = vadd.f32 %v1722_v57, %v1721_v1  ;;  %v5823_v1 = vld [vmem:[#allocation6 + $0x74] ss:$8 sps:$4 sm:$0xff]  }
 0x40c   : > { %v1713_v15 = vrot.slane %v1712_v60, 1  ;;  %v1730_v13 = vadd.f32 %v1729_v9, %v1728_v51  ;;  %v5826_v51 = vld [vmem:[#allocation6 + $0x84] ss:$8 sps:$4 sm:$0xff]   ;;  %v5829_v57 = vld [vmem:[#allocation6 + $0x94] ss:$8 sps:$4 sm:$0xff]  }
 0x40d   : > { %v1724_v27 = vrot.slane %v1723_v17, 1  ;;  %v1707_v8 = vadd.f32 %v1706_v42, %v1705_v56  ;;  %v5815_v42 = vld [vmem:[#allocation6 + $0x50] ss:$8 sps:$4 sm:$0xff]   ;;  %v5824_v56 = vld [vmem:[#allocation6 + $0x80] ss:$8 sps:$4 sm:$0xff]  }
 0x40e   : > { %v1731_v4 = vrot.slane %v1730_v13, 1  ;;  %v1714_v5 = vadd.f32 %v1713_v15, %v1712_v60  ;;  %v5812_v15 = vld [vmem:[#allocation6 + $0x40] ss:$8 sps:$4 sm:$0xff]   ;;  %v5827_v60 = vld [vmem:[#allocation6 + $0x90] ss:$8 sps:$4 sm:$0xff]  }
 0x40f   : > { %v1725_v50 = vadd.f32 %v1724_v27, %v1723_v17  ;;  %v5809_v27 = vld [vmem:[#allocation6 + $0x30] ss:$8 sps:$4 sm:$0xff]   ;;  %v5817_v17 = vld [vmem:[#allocation6 + $0x54] ss:$8 sps:$4 sm:$0xff]   ;;  %v5832_v9 = vld [vmem:[#allocation6 + $0xa4] ss:$8 sps:$4 sm:$0xff]  }
 0x410   : > { %v1732_v53 = vadd.f32 %v1731_v4, %v1730_v13  ;;  %v5814_v13 = vld [vmem:[#allocation6 + $0x44] ss:$8 sps:$4 sm:$0xff]   ;;  %v5830_v4 = vld [vmem:[#allocation6 + $0xa0] ss:$8 sps:$4 sm:$0xff]  }
 0x411   : > { %v1733_v45 = vsel %vm746_vm1, %v1707_v8, %v1725_v50  ;;  %v5835_v8 = vld [vmem:[#allocation6 + $0xb4] ss:$8 sps:$4 sm:$0xff]   ;;  %v5833_v50 = vld [vmem:[#allocation6 + $0xb0] ss:$8 sps:$4 sm:$0xff]  }
 0x412   : > { %v1734_v25 = vsel %vm746_vm1, %v1714_v5, %v1732_v53  ;;  %v5838_v5 = vld [vmem:[#allocation6 + $0xc4] ss:$8 sps:$4 sm:$0xff]   ;;  %v5836_v53 = vld [vmem:[#allocation6 + $0xc0] ss:$8 sps:$4 sm:$0xff]  }
 0x413   : > { %1799 = vmatprep.mubr.f32.mxu0 %v1734_v25  ;;  %v5844_v25 = vld [vmem:[#allocation6 + $0xe4] ss:$8 sps:$4 sm:$0xff]  }
 0x414   : > { %1800 = vmatmul.mubr.f32.vlgmr.msra.gmra.mrb[4].mxu0 %v1733_v45  ;;  %v5841_v45 = vld [vmem:[#allocation6 + $0xd4] ss:$8 sps:$4 sm:$0xff]  }
 0x415   : > { %2493 = vmatpush1.bf16.msra.mxu0 %v5800_v18  ;;  %v5839_v18 = vld [vmem:[#allocation6 + $0xd0] ss:$8 sps:$4 sm:$0xff]  }
 0x416   : > { %2494 = vmatprep.subr.bf16.mxu0 %v5805_v28  ;;  %v5842_v28 = vld [vmem:[#allocation6 + $0xe0] ss:$8 sps:$4 sm:$0xff]  }
 0x419   : > { %2495 = vmatpush1.bf16.msra.mxu0 %v5803_v31  ;;  %v5847_v31 = vld [vmem:[#allocation6 + $0xf4] ss:$8 sps:$4 sm:$0xff]  }
 0x41a   : > { %2496 = vmatprep.subr.bf16.mxu0 %v5808_v30  ;;  %v5845_v30 = vld [vmem:[#allocation6 + $0xf0] ss:$8 sps:$4 sm:$0xff]  }
 0x41d   : > { %2497 = vmatpush1.bf16.msra.mxu0 %v5806_v61  ;;  %v5850_v61 = vld [vmem:[#allocation6 + $0x104] ss:$8 sps:$4 sm:$0xff]  }
 0x41e   : > { %2498 = vmatprep.subr.bf16.mxu0 %v5811_v43 }
 0x421   : > { %2499 = vmatpush1.bf16.msra.mxu0 %v5809_v27 }
 0x422   : > { %2500 = vmatprep.subr.bf16.mxu0 %v5814_v13 }
 0x425   : > { %2501 = vmatpush1.bf16.msra.mxu0 %v5812_v15 }
 0x426   : > { %2502 = vmatprep.subr.bf16.mxu0 %v5817_v17 }
 0x429   : > { %2503 = vmatpush1.bf16.msra.mxu0 %v5815_v42 }
 0x42a   : > { %2504 = vmatprep.subr.bf16.mxu0 %v5820_v35 }
 0x42d   : > { %2505 = vmatpush1.bf16.msra.mxu0 %v5818_v33 }
 0x42e   : > { %2506 = vmatprep.subr.bf16.mxu0 %v5823_v1 }
 0x431   : > { %2507 = vmatpush1.bf16.msra.mxu0 %v5821_v54 }
 0x432   : > { %2508 = vmatprep.subr.bf16.mxu0 %v5826_v51 }
 0x435   : > { %2509 = vmatpush1.bf16.msra.mxu0 %v5824_v56 }
 0x436   : > { %2510 = vmatprep.subr.bf16.mxu0 %v5829_v57 }
 0x439   : > { %2511 = vmatpush1.bf16.msra.mxu0 %v5827_v60 }
 0x43a   : > { %2512 = vmatprep.subr.bf16.mxu0 %v5832_v9 }
 0x43d   : > { %2513 = vmatpush1.bf16.msra.mxu0 %v5830_v4 }
 0x43e   : > { %2514 = vmatprep.subr.bf16.mxu0 %v5835_v8 }
 0x441   : > { %2515 = vmatpush1.bf16.msra.mxu0 %v5833_v50 }
 0x442   : > { %2516 = vmatprep.subr.bf16.mxu0 %v5838_v5 }
 0x445   : > { %2517 = vmatpush1.bf16.msra.mxu0 %v5836_v53 }
 0x446   : > { %2518 = vmatprep.subr.bf16.mxu0 %v5841_v45 }
 0x449   : > { %2519 = vmatpush1.bf16.msra.mxu0 %v5839_v18 }
 0x44a   : > { %2520 = vmatprep.subr.bf16.mxu0 %v5844_v25 }
 0x44d   : > { %2521 = vmatpush1.bf16.msra.mxu0 %v5842_v28 }
 0x44e   : > { %2522 = vmatprep.subr.bf16.mxu0 %v5847_v31 }
 0x451   : > { %2523 = vmatpush1.bf16.msra.mxu0 %v5845_v30 }
 0x452   : > { %2535 = vmatprep.subr.bf16.mxu0 %v5850_v61 }
 0x4e7   : > { %v1801_v43 = vpop.f32.mrb[4].mxu0 }
 0x4e8   : > { %v1806_v27 = vmul.f32 0.00390625, %v1801_v43  ;;  %v1803_v13 = vpop.f32.mrb[5].mxu0 }
 0x4e9   : > { %v1807_v15 = vmul.f32 0.00390625, %v1803_v13 }
 0x4ea   : > { %v1808_v17 = vmul.f32 %v1806_v27, %v1806_v27  ;;  %v1821_v42 = vrot.slane %v1806_v27, %v6987_v36 }
 0x4eb   : > { %v1809_v35 = vmul.f32 %v1807_v15, %v1807_v15  ;;  %v1825_v33 = vrot.slane %v1807_v15, %v6987_v36 }
 0x4ec   : > { %v1812_v1 = vrot.slane %v1808_v17, 7  ;;  %v1826_v54 = vsub.f32 %v7098_v20, %v1821_v42  ;;  %v1828_v51 = vsub.f32 %v7102_v0, %v1821_v42 }
 0x4ed   : > { %v1813_v56 = vrot.slane %v1809_v35, 7  ;;  %v1827_v57 = vsub.f32 %v7100_v24, %v1825_v33  ;;  %v1829_v60 = vsub.f32 %v7110_v12, %v1825_v33 }
 0x4ee   : > { %v1816_v9 = vsub.f32 %v1806_v27, %v1812_v1 }
 0x4ef   : > { %v1817_v4 = vsub.f32 %v1807_v15, %v1813_v56 }
 0x4f0   : > { %v1830_v8 = vadd.f32 1e-05, %v1816_v9 }
 0x4f1   : > { %v1831_v50 = vadd.f32 1e-05, %v1817_v4 }
 0x4f2   : > { %6236 = vrsqrt.f32 %v1830_v8 }
 0x4f3   : > { %6238 = vrsqrt.f32 %v1831_v50 }
 0x4fc   : > { %v6237_v5 = vpop.eup %6236 }
 0x4fd   : > { %v6239_v53 = vpop.eup %6238  ;;  %v1837_v45 = vrot.slane %v6237_v5, %v6990_v46 }
 0x4fe   : > { %v1841_v18 = vrot.slane %v6239_v53, %v6990_v46  ;;  %v5848_v53 = vld [vmem:[#allocation6 + $0x100] ss:$8 sps:$4 sm:$0xff]  }
 0x4ff   : > { %v1842_v20 = vmul.f32 %v1837_v45, %v1826_v54  ;;  %v1844_v25 = vmul.f32 %v1837_v45, %v1828_v51 }
 0x500   : > { %v1843_v0 = vmul.f32 %v1841_v18, %v1827_v57  ;;  %v1845_v28 = vmul.f32 %v1841_v18, %v1829_v60 }
 0x501   : > { %v1846_v31 = vmax.f32 %v1842_v20, 0.0  ;;  %v1848_v24 = vmax.f32 %v1844_v25, 0.0 }
 0x502   : > { %v1847_v30 = vmax.f32 %v1843_v0, 0.0  ;;  %v1849_v12 = vmax.f32 %v1845_v28, 0.0  ;;  %v5853_v28 = vld [vmem:[#allocation6 + $0x114] ss:$8 sps:$4 sm:$0xff]  }
 0x503   : > { %v1852_v61 = vrot.slane %v1846_v31, 1  ;;  %v1858_v43 = vrot.slane %v1846_v31, 7  ;;  %v1860_v27 = vrot.slane %v1848_v24, 7  ;;  %v1870_v13 = vrot.slane %v1848_v24, 5 }
 0x504   : > { %v1853_v15 = vrot.slane %v1847_v30, 1  ;;  %v1859_v17 = vrot.slane %v1847_v30, 7  ;;  %v1862_v42 = vrot.slane %v1849_v12, 7  ;;  %v1871_v35 = vrot.slane %v1849_v12, 5 }
 0x505   : > { %v1861_v33 = vsel %vm746_vm1, %v1858_v43, %v1860_v27  ;;  %v1874_v1 = vsel %vm746_vm1, %v1852_v61, %v1858_v43  ;;  %v1876_v54 = vsel %vm746_vm1, %v1860_v27, %v1870_v13 }
 0x506   : > { %v1863_v51 = vsel %vm746_vm1, %v1859_v17, %v1862_v42  ;;  %v1875_v56 = vsel %vm746_vm1, %v1853_v15, %v1859_v17  ;;  %v1882_v57 = vrot.slane %v1874_v1, 1  ;;  %v1883_v60 = vrot.slane %v1861_v33, 1  ;;  %v5851_v17 = vld [vmem:[#allocation6 + $0x110] ss:$8 sps:$4 sm:$0xff]  }
 0x507   : > { %v1885_v9 = vrot.slane %v1875_v56, 1  ;;  %v1886_v4 = vrot.slane %v1863_v51, 1  ;;  %v1899_v8 = vrot.slane %v1875_v56, 2  ;;  %v1900_v50 = vrot.slane %v1863_v51, 2 }
 0x508   : > { %v1911_v5 = vpack.c.bf16 %v1863_v51, %v1875_v56  ;;  %v1896_v45 = vrot.slane %v1874_v1, 2  ;;  %v1897_v18 = vrot.slane %v1861_v33, 2  ;;  %v1910_v20 = vpack.c.bf16 %v1861_v33, %v1874_v1  ;;  %v5856_v1 = vld [vmem:[#allocation6 + $0x124] ss:$8 sps:$4 sm:$0xff]  }
 0x509   : > { %v1877_v25 = vsel %vm746_vm1, %v1862_v42, %v1871_v35  ;;  %v1887_v0 = vsel %vm960_vm2, %v1885_v9, %v1886_v4  ;;  %v7136_v31 = vsel %vm960_vm2, %v1882_v57, %v1883_v60  ;;  %v1888_v24 = vrot.slane %v1876_v54, 1  ;;  %v5854_v57 = vld [vmem:[#allocation6 + $0x120] ss:$8 sps:$4 sm:$0xff]   ;;  %v5857_v9 = vld [vmem:[#allocation6 + $0x130] ss:$8 sps:$4 sm:$0xff]  }
 0x50a   : > { %2524 = vmatprep.mubr.bf16.mxu0 %v1911_v5  ;;  %v1890_v30 = vrot.slane %v1877_v25, 1  ;;  %v7139_v12 = vsel %vm975_vm3, %v1899_v8, %v1900_v50  ;;  %v1904_v61 = vrot.slane %v1877_v25, 2  ;;  %v7142_v43 = vsel %vm975_vm3, %v1896_v45, %v1897_v18  ;;  %v5860_v8 = vld [vmem:[#allocation6 + $0x140] ss:$8 sps:$4 sm:$0xff]   ;;  %v5863_v5 = vld [vmem:[#allocation6 + $0x150] ss:$8 sps:$4 sm:$0xff]  }
 0x50b   : > { %2525 = vmatmul.mubr.bf16.vlgmr.msra.gmra.mrb[8].mxu0 %v1910_v20  ;;  %v7145_v27 = vsel %vm960_vm2, %v1883_v60, %v1888_v24  ;;  %v1902_v13 = vrot.slane %v1876_v54, 2  ;;  %v5859_v60 = vld [vmem:[#allocation6 + $0x134] ss:$8 sps:$4 sm:$0xff]   ;;  %v5866_v45 = vld [vmem:[#allocation6 + $0x160] ss:$8 sps:$4 sm:$0xff]  }
 0x50c   : > { %2536 = vmatpush1.bf16.msra.mxu0 %v5848_v53  ;;  %v1891_v15 = vsel %vm960_vm2, %v1886_v4, %v1890_v30  ;;  %v1912_v42 = vpack.c.bf16 %v7145_v27, %v7136_v31  ;;  %v7151_v35 = vsel %vm975_vm3, %v1900_v50, %v1904_v61  ;;  %v5862_v4 = vld [vmem:[#allocation6 + $0x144] ss:$8 sps:$4 sm:$0xff]   ;;  %v5865_v50 = vld [vmem:[#allocation6 + $0x154] ss:$8 sps:$4 sm:$0xff]   ;;  %v5869_v20 = vld [vmem:[#allocation6 + $0x170] ss:$8 sps:$4 sm:$0xff]  }
 0x50d   : > { %v1913_v33 = vpack.c.bf16 %v1891_v15, %v1887_v0  ;;  %2537 = vmatprep.subr.bf16.mxu0 %v5853_v28  ;;  %v1915_v51 = vpack.c.bf16 %v7151_v35, %v7139_v12  ;;  %v7156_v56 = vsel %vm975_vm3, %v1897_v18, %v1902_v13  ;;  %v5868_v53 = vld [vmem:[#allocation6 + $0x164] ss:$8 sps:$4 sm:$0xff]   ;;  %v5871_v18 = vld [vmem:[#allocation6 + $0x174] ss:$8 sps:$4 sm:$0xff]   ;;  %v5872_v0 = vld [vmem:[#allocation6 + $0x180] ss:$8 sps:$4 sm:$0xff]  }
 0x50e   : > { %v1914_v54 = vpack.c.bf16 %v7156_v56, %v7142_v43  ;;  %v5874_v25 = vld [vmem:[#allocation6 + $0x184] ss:$8 sps:$4 sm:$0xff]   ;;  %v5877_v28 = vld [vmem:[#allocation6 + $0x194] ss:$8 sps:$4 sm:$0xff]   ;;  %v5875_v24 = vld [vmem:[#allocation6 + $0x190] ss:$8 sps:$4 sm:$0xff]  }
 0x50f   : > { %2567 = vmatprep.mubr.bf16.mxu0 %v1913_v33  ;;  %v5880_v30 = vld [vmem:[#allocation6 + $0x1a4] ss:$8 sps:$4 sm:$0xff]   ;;  %v5878_v61 = vld [vmem:[#allocation6 + $0x1a0] ss:$8 sps:$4 sm:$0xff]   ;;  %v5883_v13 = vld [vmem:[#allocation6 + $0x1b4] ss:$8 sps:$4 sm:$0xff]  }
 0x510   : > { %2538 = vmatpush1.bf16.msra.mxu0 %v5851_v17  ;;  %v5881_v15 = vld [vmem:[#allocation6 + $0x1b0] ss:$8 sps:$4 sm:$0xff]   ;;  %v5886_v17 = vld [vmem:[#allocation6 + $0x1c4] ss:$8 sps:$4 sm:$0xff]   ;;  %v5884_v33 = vld [vmem:[#allocation6 + $0x1c0] ss:$8 sps:$4 sm:$0xff]  }
 0x511   : > { %2539 = vmatprep.subr.bf16.mxu0 %v5856_v1  ;;  %v5889_v1 = vld [vmem:[#allocation6 + $0x1d4] ss:$8 sps:$4 sm:$0xff]   ;;  %v5911_v27 = vld [vmem:[#allocation6 + $0x250] ss:$8 sps:$4 sm:$0xff]   ;;  %v5916_v12 = vld [vmem:[#allocation6 + $0x264] ss:$8 sps:$4 sm:$0xff]  }
 0x512   : > { %v5913_v31 = vld [vmem:[#allocation6 + $0x254] ss:$8 sps:$4 sm:$0xff]   ;;  %v7477_v43 = vld [vmem:[#allocation13_spill] sm:$0xff] }
 0x513   : > { %v5919_v35 = vld [vmem:[#allocation6 + $0x274] ss:$8 sps:$4 sm:$0xff]   ;;  %v5946_v56 = vld [vmem:[#allocation7 + $0x4] ss:$8 sps:$4 sm:$0xff]  }
 0x514   : > { %2540 = vmatpush1.bf16.msra.mxu0 %v5854_v57  ;;  %v5887_v57 = vld [vmem:[#allocation6 + $0x1d0] ss:$8 sps:$4 sm:$0xff]   ;;  %3412 = vmatprep.subr.bf16.mxu1 %v5946_v56 }
 0x515   : > { %2541 = vmatprep.subr.bf16.mxu0 %v5859_v60  ;;  %v5892_v60 = vld [vmem:[#allocation6 + $0x1e4] ss:$8 sps:$4 sm:$0xff]  }
 0x518   : > { %2542 = vmatpush1.bf16.msra.mxu0 %v5857_v9  ;;  %v5890_v9 = vld [vmem:[#allocation6 + $0x1e0] ss:$8 sps:$4 sm:$0xff]  }
 0x519   : > { %2543 = vmatprep.subr.bf16.mxu0 %v5862_v4  ;;  %v5895_v4 = vld [vmem:[#allocation6 + $0x1f4] ss:$8 sps:$4 sm:$0xff]  }
 0x51c   : > { %2544 = vmatpush1.bf16.msra.mxu0 %v5860_v8  ;;  %v5893_v8 = vld [vmem:[#allocation6 + $0x1f0] ss:$8 sps:$4 sm:$0xff]  }
 0x51d   : > { %2545 = vmatprep.subr.bf16.mxu0 %v5865_v50  ;;  %v5898_v50 = vld [vmem:[#allocation6 + $0x204] ss:$8 sps:$4 sm:$0xff]  }
 0x520   : > { %2546 = vmatpush1.bf16.msra.mxu0 %v5863_v5  ;;  %v5896_v5 = vld [vmem:[#allocation6 + $0x200] ss:$8 sps:$4 sm:$0xff]  }
 0x521   : > { %2547 = vmatprep.subr.bf16.mxu0 %v5868_v53  ;;  %v5901_v53 = vld [vmem:[#allocation6 + $0x214] ss:$8 sps:$4 sm:$0xff]  }
 0x524   : > { %2548 = vmatpush1.bf16.msra.mxu0 %v5866_v45  ;;  %v5899_v45 = vld [vmem:[#allocation6 + $0x210] ss:$8 sps:$4 sm:$0xff]  }
 0x525   : > { %2549 = vmatprep.subr.bf16.mxu0 %v5871_v18  ;;  %v5904_v18 = vld [vmem:[#allocation6 + $0x224] ss:$8 sps:$4 sm:$0xff]  }
 0x528   : > { %2550 = vmatpush1.bf16.msra.mxu0 %v5869_v20  ;;  %v5902_v20 = vld [vmem:[#allocation6 + $0x220] ss:$8 sps:$4 sm:$0xff]  }
 0x529   : > { %2551 = vmatprep.subr.bf16.mxu0 %v5874_v25  ;;  %v5907_v25 = vld [vmem:[#allocation6 + $0x234] ss:$8 sps:$4 sm:$0xff]  }
 0x52c   : > { %2552 = vmatpush1.bf16.msra.mxu0 %v5872_v0  ;;  %v5905_v0 = vld [vmem:[#allocation6 + $0x230] ss:$8 sps:$4 sm:$0xff]  }
 0x52d   : > { %2553 = vmatprep.subr.bf16.mxu0 %v5877_v28  ;;  %v5910_v28 = vld [vmem:[#allocation6 + $0x244] ss:$8 sps:$4 sm:$0xff]  }
 0x530   : > { %2554 = vmatpush1.bf16.msra.mxu0 %v5875_v24  ;;  %v5908_v24 = vld [vmem:[#allocation6 + $0x240] ss:$8 sps:$4 sm:$0xff]  }
 0x531   : > { %2555 = vmatprep.subr.bf16.mxu0 %v5880_v30  ;;  %v5922_v30 = vld [vmem:[#allocation6 + $0x284] ss:$8 sps:$4 sm:$0xff]  }
 0x534   : > { %2556 = vmatpush1.bf16.msra.mxu0 %v5878_v61  ;;  %v5920_v61 = vld [vmem:[#allocation6 + $0x280] ss:$8 sps:$4 sm:$0xff]  }
 0x535   : > { %2557 = vmatprep.subr.bf16.mxu0 %v5883_v13  ;;  %v5925_v13 = vld [vmem:[#allocation6 + $0x294] ss:$8 sps:$4 sm:$0xff]  }
 0x538   : > { %2558 = vmatpush1.bf16.msra.mxu0 %v5881_v15  ;;  %v5923_v15 = vld [vmem:[#allocation6 + $0x290] ss:$8 sps:$4 sm:$0xff]  }
 0x539   : > { %2559 = vmatprep.subr.bf16.mxu0 %v5886_v17  ;;  %v5928_v17 = vld [vmem:[#allocation6 + $0x2a4] ss:$8 sps:$4 sm:$0xff]  }
 0x53c   : > { %2560 = vmatpush1.bf16.msra.mxu0 %v5884_v33  ;;  %v5926_v33 = vld [vmem:[#allocation6 + $0x2a0] ss:$8 sps:$4 sm:$0xff]  }
 0x53d   : > { %2561 = vmatprep.subr.bf16.mxu0 %v5889_v1  ;;  %v5931_v1 = vld [vmem:[#allocation6 + $0x2b4] ss:$8 sps:$4 sm:$0xff]  }
 0x540   : > { %2562 = vmatpush1.bf16.msra.mxu0 %v5887_v57  ;;  %v5929_v57 = vld [vmem:[#allocation6 + $0x2b0] ss:$8 sps:$4 sm:$0xff]  }
 0x541   : > { %2563 = vmatprep.subr.bf16.mxu0 %v5892_v60  ;;  %v5934_v60 = vld [vmem:[#allocation6 + $0x2c4] ss:$8 sps:$4 sm:$0xff]  }
 0x544   : > { %2564 = vmatpush1.bf16.msra.mxu0 %v5890_v9  ;;  %v5932_v9 = vld [vmem:[#allocation6 + $0x2c0] ss:$8 sps:$4 sm:$0xff]  }
 0x545   : > { %2565 = vmatprep.subr.bf16.mxu0 %v5895_v4  ;;  %v5937_v4 = vld [vmem:[#allocation6 + $0x2d4] ss:$8 sps:$4 sm:$0xff]  }
 0x548   : > { %2566 = vmatpush1.bf16.msra.mxu0 %v5893_v8  ;;  %v5935_v8 = vld [vmem:[#allocation6 + $0x2d0] ss:$8 sps:$4 sm:$0xff]  }
 0x549   : > { %2578 = vmatprep.subr.bf16.mxu0 %v5898_v50  ;;  %v5940_v50 = vld [vmem:[#allocation6 + $0x2e4] ss:$8 sps:$4 sm:$0xff]  }
 0x54b   : > { %2568 = vmatmul.mubr.bf16.vlgmr.msra.gmra.mrb[8].mxu0 %v1912_v42  ;;  %v5914_v42 = vld [vmem:[#allocation6 + $0x260] ss:$8 sps:$4 sm:$0xff]  }
 0x54c   : > { %2579 = vmatpush1.bf16.msra.mxu0 %v5896_v5  ;;  %2610 = vmatprep.mubr.bf16.mxu0 %v1915_v51  ;;  %v5917_v51 = vld [vmem:[#allocation6 + $0x270] ss:$8 sps:$4 sm:$0xff]   ;;  %v5938_v5 = vld [vmem:[#allocation6 + $0x2e0] ss:$8 sps:$4 sm:$0xff]  }
 0x54d   : > { %2580 = vmatprep.subr.bf16.mxu0 %v5901_v53  ;;  %v5943_v53 = vld [vmem:[#allocation6 + $0x2f4] ss:$8 sps:$4 sm:$0xff]  }
 0x550   : > { %2581 = vmatpush1.bf16.msra.mxu0 %v5899_v45  ;;  %v5941_v45 = vld [vmem:[#allocation6 + $0x2f0] ss:$8 sps:$4 sm:$0xff]  }
 0x551   : > { %2582 = vmatprep.subr.bf16.mxu0 %v5904_v18 }
 0x554   : > { %2583 = vmatpush1.bf16.msra.mxu0 %v5902_v20 }
 0x555   : > { %2584 = vmatprep.subr.bf16.mxu0 %v5907_v25 }
 0x558   : > { %2585 = vmatpush1.bf16.msra.mxu0 %v5905_v0 }
 0x559   : > { %2586 = vmatprep.subr.bf16.mxu0 %v5910_v28 }
 0x55c   : > { %2587 = vmatpush1.bf16.msra.mxu0 %v5908_v24 }
 0x55d   : > { %2588 = vmatprep.subr.bf16.mxu0 %v5913_v31 }
 0x560   : > { %2589 = vmatpush1.bf16.msra.mxu0 %v5911_v27 }
 0x561   : > { %2590 = vmatprep.subr.bf16.mxu0 %v5916_v12 }
 0x564   : > { %2591 = vmatpush1.bf16.msra.mxu0 %v5914_v42 }
 0x565   : > { %2592 = vmatprep.subr.bf16.mxu0 %v5919_v35 }
 0x568   : > { %2593 = vmatpush1.bf16.msra.mxu0 %v5917_v51 }
 0x569   : > { %2594 = vmatprep.subr.bf16.mxu0 %v5922_v30 }
 0x56c   : > { %2595 = vmatpush1.bf16.msra.mxu0 %v5920_v61 }
 0x56d   : > { %2596 = vmatprep.subr.bf16.mxu0 %v5925_v13 }
 0x570   : > { %2597 = vmatpush1.bf16.msra.mxu0 %v5923_v15 }
 0x571   : > { %2598 = vmatprep.subr.bf16.mxu0 %v5928_v17 }
 0x574   : > { %2599 = vmatpush1.bf16.msra.mxu0 %v5926_v33 }
 0x575   : > { %2600 = vmatprep.subr.bf16.mxu0 %v5931_v1 }
 0x578   : > { %2601 = vmatpush1.bf16.msra.mxu0 %v5929_v57 }
 0x579   : > { %2602 = vmatprep.subr.bf16.mxu0 %v5934_v60 }
 0x57c   : > { %2603 = vmatpush1.bf16.msra.mxu0 %v5932_v9 }
 0x57d   : > { %2604 = vmatprep.subr.bf16.mxu0 %v5937_v4 }
 0x580   : > { %2605 = vmatpush1.bf16.msra.mxu0 %v5935_v8 }
 0x581   : > { %2606 = vmatprep.subr.bf16.mxu0 %v5940_v50 }
 0x584   : > { %2607 = vmatpush1.bf16.msra.mxu0 %v5938_v5 }
 0x585   : > { %2608 = vmatprep.subr.bf16.mxu0 %v5943_v53 }
 0x588   : > { %2609 = vmatpush1.bf16.msra.mxu0 %v5941_v45 }
 0x589   : > { %5363 = vmatprep.subr.bf16.mxu0 %v6649_v32 }
 0x58b   : > { %2611 = vmatmul.mubr.bf16.vlgmr.msra.gmra.mrb[8].mxu0 %v1914_v54 }
 0x58c   : > { %5365 = vmatpush1.bf16.msra.mxu0 %v6664_v39 }
 0x58d   : > { %5367 = vmatprep.subr.bf16.mxu0 %v6667_v41 }
 0x590   : > { %5369 = vmatpush1.bf16.msra.mxu0 %v6682_v47 }
 0x591   : > { %5371 = vmatprep.subr.bf16.mxu0 %v6685_v49 }
 0x594   : > { %5373 = vmatpush1.bf16.msra.mxu0 %v6703_v58 }
 0x595   : > { %5375 = vmatprep.subr.bf16.mxu0 %v6715_v62 }
 0x598   : > { %5377 = vmatpush1.bf16.msra.mxu0 %v6724_v3 }
 0x599   : > { %5379 = vmatprep.subr.bf16.mxu0 %v6733_v6 }
 0x59c   : > { %5381 = vmatpush1.bf16.msra.mxu0 %v6742_v11 }
 0x59d   : > { %5383 = vmatprep.subr.bf16.mxu0 %v6751_v14 }
 0x5a0   : > { %5385 = vmatpush1.bf16.msra.mxu0 %v6760_v19 }
 0x5a1   : > { %5387 = vmatprep.subr.bf16.mxu0 %v6769_v22 }
 0x5a4   : > { %5389 = vmatpush1.bf16.msra.mxu0 %v6778_v26 }
 0x5a5   : > { %5391 = vmatprep.subr.bf16.mxu0 %v6787_v29 }
 0x5a8   : > { %5393 = vmatpush1.bf16.msra.mxu0 %v6797_v34 }
 0x5a9   : > { %5395 = vmatprep.subr.bf16.mxu0 %v6806_v37 }
 0x5ac   : > { %5397 = vmatpush1.bf16.msra.mxu0 %v6810_v38 }
 0x5ad   : > { %5399 = vmatprep.subr.bf16.mxu0 %v6813_v40 }
 0x5b0   : > { %5401 = vmatpush1.bf16.msra.mxu0 %v6841_v44 }
 0x5b1   : > { %5403 = vmatprep.subr.bf16.mxu0 %v6851_v48 }
 0x5b4   : > { %5405 = vmatpush1.bf16.msra.mxu0 %v6859_v52 }
 0x5b5   : > { %5407 = vmatprep.subr.bf16.mxu0 %v6871_v55 }
 0x5b8   : > { %5409 = vmatpush1.bf16.msra.mxu0 %v6879_v59 }
 0x5b9   : > { %5411 = vmatprep.subr.bf16.mxu0 %v6891_v63 }
 0x5bc   : > { %5413 = vmatpush1.bf16.msra.mxu0 %v6899_v2 }
 0x5bd   : > { %5415 = vmatprep.subr.bf16.mxu0 %v6911_v7 }
 0x5c0   : > { %5417 = vmatpush1.bf16.msra.mxu0 %v6919_v10 }
 0x5c1   : > { %5419 = vmatprep.subr.bf16.mxu0 %v6934_v16 }
 0x5c4   : > { %5421 = vmatpush1.bf16.msra.mxu0 %v6945_v21 }
 0x5c5   : > { %5423 = vmatprep.subr.bf16.mxu0 %v6947_v23 }
 0x5c8   : > { %5425 = vmatpush1.bf16.msra.mxu0 %v7477_v43 }
 0x65e   : > { %v7201_v54 = vpop.f32.mrb[8].mxu0 }
 0x65f   : > { %v7203_v18 = vpop.f32.mrb[9].mxu0  ;;  %v2635_v25 = vmul.f32 %v7201_v54, %v7201_v54 }
 0x660   : > { %v7205_v20 = vpop.f32.mrb[10].mxu0  ;;  %v2636_v31 = vmul.f32 %v7203_v18, %v7203_v18 }
 0x661   : > { %v2621_v0 = vadd.f32 %v7205_v20, %v7201_v54  ;;  %v2637_v28 = vmul.f32 %v7205_v20, %v7205_v20  ;;  %v7213_v24 = vpop.f32.mrb[11].mxu0 }
 0x662   : > { %v2628_v27 = vadd.f32 %v7213_v24, %v7203_v18  ;;  %v2638_v12 = vmul.f32 %v7213_v24, %v7213_v24 }
 0x663   : > { %v2622_v42 = vrot.slane %v2621_v0, 4  ;;  %v2639_v35 = vadd.f32 %v2637_v28, %v2635_v25 }
 0x664   : > { %v2629_v51 = vrot.slane %v2628_v27, 4  ;;  %v2646_v30 = vadd.f32 %v2638_v12, %v2636_v31 }
 0x665   : > { %v2623_v61 = vadd.f32 %v2622_v42, %v2621_v0  ;;  %v2640_v13 = vrot.slane %v2639_v35, 4  ;;  %v5944_v42 = vld [vmem:[#allocation7] ss:$8 sps:$4 sm:$0xff]  }
 0x666   : > { %v2630_v15 = vadd.f32 %v2629_v51, %v2628_v27  ;;  %v2647_v17 = vrot.slane %v2646_v30, 4  ;;  %v5949_v51 = vld [vmem:[#allocation7 + $0x14] ss:$8 sps:$4 sm:$0xff]  }
 0x667   : > { %v2624_v33 = vrot.slane %v2623_v61, 2  ;;  %v2641_v1 = vadd.f32 %v2640_v13, %v2639_v35  ;;  %v5950_v13 = vld [vmem:[#allocation7 + $0x20] ss:$8 sps:$4 sm:$0xff]  }
 0x668   : > { %v2631_v57 = vrot.slane %v2630_v15, 2  ;;  %v2648_v60 = vadd.f32 %v2647_v17, %v2646_v30  ;;  %v5947_v30 = vld [vmem:[#allocation7 + $0x10] ss:$8 sps:$4 sm:$0xff]   ;;  %v5958_v17 = vld [vmem:[#allocation7 + $0x44] ss:$8 sps:$4 sm:$0xff]  }
 0x669   : > { %v2625_v9 = vadd.f32 %v2624_v33, %v2623_v61  ;;  %v2642_v4 = vrot.slane %v2641_v1, 2  ;;  %v5952_v61 = vld [vmem:[#allocation7 + $0x24] ss:$8 sps:$4 sm:$0xff]   ;;  %v5956_v33 = vld [vmem:[#allocation7 + $0x40] ss:$8 sps:$4 sm:$0xff]  }
 0x66a   : > { %v2632_v8 = vadd.f32 %v2631_v57, %v2630_v15  ;;  %v2649_v50 = vrot.slane %v2648_v60, 2  ;;  %v5955_v15 = vld [vmem:[#allocation7 + $0x34] ss:$8 sps:$4 sm:$0xff]   ;;  %v5959_v57 = vld [vmem:[#allocation7 + $0x50] ss:$8 sps:$4 sm:$0xff]  }
 0x66b   : > { %v2626_v5 = vrot.slane %v2625_v9, 1  ;;  %v2643_v53 = vadd.f32 %v2642_v4, %v2641_v1  ;;  %v5961_v1 = vld [vmem:[#allocation7 + $0x54] ss:$8 sps:$4 sm:$0xff]  }
 0x66c   : > { %v2633_v45 = vrot.slane %v2632_v8, 1  ;;  %v2650_v56 = vadd.f32 %v2649_v50, %v2648_v60  ;;  %v5964_v60 = vld [vmem:[#allocation7 + $0x64] ss:$8 sps:$4 sm:$0xff]   ;;  %v5967_v4 = vld [vmem:[#allocation7 + $0x74] ss:$8 sps:$4 sm:$0xff]  }
 0x66d   : > { %v2644_v43 = vrot.slane %v2643_v53, 1  ;;  %v2627_v28 = vadd.f32 %v2626_v5, %v2625_v9  ;;  %v5962_v9 = vld [vmem:[#allocation7 + $0x60] ss:$8 sps:$4 sm:$0xff]   ;;  %v5970_v50 = vld [vmem:[#allocation7 + $0x84] ss:$8 sps:$4 sm:$0xff]  }
 0x66e   : > { %v2651_v25 = vrot.slane %v2650_v56, 1  ;;  %v2634_v0 = vadd.f32 %v2633_v45, %v2632_v8  ;;  %v5965_v8 = vld [vmem:[#allocation7 + $0x70] ss:$8 sps:$4 sm:$0xff]   ;;  %v5968_v5 = vld [vmem:[#allocation7 + $0x80] ss:$8 sps:$4 sm:$0xff]  }
 0x66f   : > { %v2645_v31 = vadd.f32 %v2644_v43, %v2643_v53  ;;  %v5953_v43 = vld [vmem:[#allocation7 + $0x30] ss:$8 sps:$4 sm:$0xff]   ;;  %v5973_v53 = vld [vmem:[#allocation7 + $0x94] ss:$8 sps:$4 sm:$0xff]  }
 0x670   : > { %v2652_v12 = vadd.f32 %v2651_v25, %v2650_v56  ;;  %v5971_v45 = vld [vmem:[#allocation7 + $0x90] ss:$8 sps:$4 sm:$0xff]   ;;  %v5976_v56 = vld [vmem:[#allocation7 + $0xa4] ss:$8 sps:$4 sm:$0xff]   ;;  %v5974_v25 = vld [vmem:[#allocation7 + $0xa0] ss:$8 sps:$4 sm:$0xff]  }
 0x671   : > { %v2653_v27 = vsel %vm746_vm1, %v2627_v28, %v2645_v31  ;;  %v5979_v28 = vld [vmem:[#allocation7 + $0xb4] ss:$8 sps:$4 sm:$0xff]   ;;  %v5977_v31 = vld [vmem:[#allocation7 + $0xb0] ss:$8 sps:$4 sm:$0xff]  }
 0x672   : > { %v2654_v35 = vsel %vm746_vm1, %v2634_v0, %v2652_v12  ;;  %v5982_v0 = vld [vmem:[#allocation7 + $0xc4] ss:$8 sps:$4 sm:$0xff]   ;;  %v5980_v12 = vld [vmem:[#allocation7 + $0xc0] ss:$8 sps:$4 sm:$0xff]  }
 0x673   : > { %2719 = vmatprep.mubr.f32.mxu1 %v2654_v35  ;;  %v5988_v35 = vld [vmem:[#allocation7 + $0xe4] ss:$8 sps:$4 sm:$0xff]  }
 0x674   : > { %2720 = vmatmul.mubr.f32.vlgmr.msra.gmra.mrb[6].mxu1 %v2653_v27  ;;  %v5985_v27 = vld [vmem:[#allocation7 + $0xd4] ss:$8 sps:$4 sm:$0xff]  }
 0x675   : > { %3413 = vmatpush1.bf16.msra.mxu1 %v5944_v42  ;;  %v5983_v42 = vld [vmem:[#allocation7 + $0xd0] ss:$8 sps:$4 sm:$0xff]  }
 0x676   : > { %3414 = vmatprep.subr.bf16.mxu1 %v5949_v51  ;;  %v5986_v51 = vld [vmem:[#allocation7 + $0xe0] ss:$8 sps:$4 sm:$0xff]  }
 0x679   : > { %3415 = vmatpush1.bf16.msra.mxu1 %v5947_v30  ;;  %v5991_v30 = vld [vmem:[#allocation7 + $0xf4] ss:$8 sps:$4 sm:$0xff]  }
 0x67a   : > { %3416 = vmatprep.subr.bf16.mxu1 %v5952_v61  ;;  %v5989_v61 = vld [vmem:[#allocation7 + $0xf0] ss:$8 sps:$4 sm:$0xff]  }
 0x67d   : > { %3417 = vmatpush1.bf16.msra.mxu1 %v5950_v13  ;;  %v5994_v13 = vld [vmem:[#allocation7 + $0x104] ss:$8 sps:$4 sm:$0xff]  }
 0x67e   : > { %3418 = vmatprep.subr.bf16.mxu1 %v5955_v15 }
 0x681   : > { %3419 = vmatpush1.bf16.msra.mxu1 %v5953_v43 }
 0x682   : > { %3420 = vmatprep.subr.bf16.mxu1 %v5958_v17 }
 0x685   : > { %3421 = vmatpush1.bf16.msra.mxu1 %v5956_v33 }
 0x686   : > { %3422 = vmatprep.subr.bf16.mxu1 %v5961_v1 }
 0x689   : > { %3423 = vmatpush1.bf16.msra.mxu1 %v5959_v57 }
 0x68a   : > { %3424 = vmatprep.subr.bf16.mxu1 %v5964_v60 }
 0x68d   : > { %3425 = vmatpush1.bf16.msra.mxu1 %v5962_v9 }
 0x68e   : > { %3426 = vmatprep.subr.bf16.mxu1 %v5967_v4 }
 0x691   : > { %3427 = vmatpush1.bf16.msra.mxu1 %v5965_v8 }
 0x692   : > { %3428 = vmatprep.subr.bf16.mxu1 %v5970_v50 }
 0x695   : > { %3429 = vmatpush1.bf16.msra.mxu1 %v5968_v5 }
 0x696   : > { %3430 = vmatprep.subr.bf16.mxu1 %v5973_v53 }
 0x699   : > { %3431 = vmatpush1.bf16.msra.mxu1 %v5971_v45 }
 0x69a   : > { %3432 = vmatprep.subr.bf16.mxu1 %v5976_v56 }
 0x69d   : > { %3433 = vmatpush1.bf16.msra.mxu1 %v5974_v25 }
 0x69e   : > { %3434 = vmatprep.subr.bf16.mxu1 %v5979_v28 }
 0x6a1   : > { %3435 = vmatpush1.bf16.msra.mxu1 %v5977_v31 }
 0x6a2   : > { %3436 = vmatprep.subr.bf16.mxu1 %v5982_v0 }
 0x6a5   : > { %3437 = vmatpush1.bf16.msra.mxu1 %v5980_v12 }
 0x6a6   : > { %3438 = vmatprep.subr.bf16.mxu1 %v5985_v27 }
 0x6a9   : > { %3439 = vmatpush1.bf16.msra.mxu1 %v5983_v42 }
 0x6aa   : > { %3440 = vmatprep.subr.bf16.mxu1 %v5988_v35 }
 0x6ad   : > { %3441 = vmatpush1.bf16.msra.mxu1 %v5986_v51 }
 0x6ae   : > { %3442 = vmatprep.subr.bf16.mxu1 %v5991_v30  ;;  %v7478_v30 = vld [vmem:[#allocation14_spill] sm:$0xff] }
 0x6b1   : > { %3443 = vmatpush1.bf16.msra.mxu1 %v5989_v61 }
 0x6b2   : > { %3455 = vmatprep.subr.bf16.mxu1 %v5994_v13  ;;  %v7480_v13 = vld [vmem:[#allocation16_spill] sm:$0xff] }
 0x747   : > { %v2721_v15 = vpop.f32.mrb[6].mxu1 }
 0x748   : > { %v2726_v43 = vmul.f32 0.00390625, %v2721_v15  ;;  %v2723_v17 = vpop.f32.mrb[7].mxu1 }
 0x749   : > { %v2727_v33 = vmul.f32 0.00390625, %v2723_v17 }
 0x74a   : > { %v2728_v1 = vmul.f32 %v2726_v43, %v2726_v43  ;;  %v2741_v57 = vrot.slane %v2726_v43, %v6987_v36 }
 0x74b   : > { %v2729_v60 = vmul.f32 %v2727_v33, %v2727_v33  ;;  %v2745_v9 = vrot.slane %v2727_v33, %v6987_v36 }
 0x74c   : > { %v2732_v4 = vrot.slane %v2728_v1, 7  ;;  %v2746_v8 = vsub.f32 %v7201_v54, %v2741_v57  ;;  %v2748_v50 = vsub.f32 %v7205_v20, %v2741_v57 }
 0x74d   : > { %v2733_v5 = vrot.slane %v2729_v60, 7  ;;  %v2747_v53 = vsub.f32 %v7203_v18, %v2745_v9  ;;  %v2749_v45 = vsub.f32 %v7213_v24, %v2745_v9  ;;  %v7479_v24 = vld [vmem:[#allocation15_spill] sm:$0xff] }
 0x74e   : > { %v2736_v56 = vsub.f32 %v2726_v43, %v2732_v4  ;;  %v7481_v43 = vld [vmem:[#allocation17_spill] sm:$0xff] }
 0x74f   : > { %v2737_v25 = vsub.f32 %v2727_v33, %v2733_v5 }
 0x750   : > { %v2750_v28 = vadd.f32 1e-05, %v2736_v56 }
 0x751   : > { %v2751_v31 = vadd.f32 1e-05, %v2737_v25 }
 0x752   : > { %6240 = vrsqrt.f32 %v2750_v28 }
 0x753   : > { %6242 = vrsqrt.f32 %v2751_v31 }
 0x75c   : > { %v6241_v0 = vpop.eup %6240 }
 0x75d   : > { %v6243_v12 = vpop.eup %6242  ;;  %v2757_v27 = vrot.slane %v6241_v0, %v6990_v46  ;;  %v5992_v0 = vld [vmem:[#allocation7 + $0x100] ss:$8 sps:$4 sm:$0xff]  }
 0x75e   : > { %v2761_v42 = vrot.slane %v6243_v12, %v6990_v46 }
 0x75f   : > { %v2762_v54 = vmul.f32 %v2757_v27, %v2746_v8  ;;  %v2764_v35 = vmul.f32 %v2757_v27, %v2748_v50 }
 0x760   : > { %v2763_v20 = vmul.f32 %v2761_v42, %v2747_v53  ;;  %v2765_v51 = vmul.f32 %v2761_v42, %v2749_v45 }
 0x761   : > { %v7232_v18 = vadd.f32 %v2762_v54, %v7478_v30  ;;  %v7235_v61 = vadd.f32 %v2764_v35, %v7479_v24 }
 0x762   : > { %v7238_v15 = vadd.f32 %v2763_v20, %v7480_v13  ;;  %v7241_v17 = vadd.f32 %v2765_v51, %v7481_v43  ;;  %v5997_v20 = vld [vmem:[#allocation7 + $0x114] ss:$8 sps:$4 sm:$0xff]  }
 0x763   : > { %v2772_v33 = vrot.slane %v7232_v18, 1  ;;  %v2778_v1 = vrot.slane %v7232_v18, 7  ;;  %v2780_v57 = vrot.slane %v7235_v61, 7  ;;  %v2790_v60 = vrot.slane %v7235_v61, 5 }
 0x764   : > { %v2773_v9 = vrot.slane %v7238_v15, 1  ;;  %v2779_v4 = vrot.slane %v7238_v15, 7  ;;  %v2782_v8 = vrot.slane %v7241_v17, 7  ;;  %v2791_v53 = vrot.slane %v7241_v17, 5 }
 0x765   : > { %v7251_v50 = vsel %vm746_vm1, %v2778_v1, %v2780_v57  ;;  %v7254_v5 = vsel %vm746_vm1, %v2772_v33, %v2778_v1  ;;  %v7270_v42 = vsel %vm746_vm1, %v2780_v57, %v2790_v60  ;;  %v5995_v33 = vld [vmem:[#allocation7 + $0x110] ss:$8 sps:$4 sm:$0xff]   ;;  %v6000_v57 = vld [vmem:[#allocation7 + $0x124] ss:$8 sps:$4 sm:$0xff]  }
 0x766   : > { %v7258_v45 = vsel %vm746_vm1, %v2779_v4, %v2782_v8  ;;  %v7261_v56 = vsel %vm746_vm1, %v2773_v9, %v2779_v4  ;;  %v2816_v12 = vrot.slane %v7254_v5, 2  ;;  %v2817_v27 = vrot.slane %v7251_v50, 2  ;;  %v5998_v4 = vld [vmem:[#allocation7 + $0x120] ss:$8 sps:$4 sm:$0xff]  }
 0x767   : > { %v2805_v25 = vrot.slane %v7261_v56, 1  ;;  %v2806_v28 = vrot.slane %v7258_v45, 1  ;;  %v2831_v31 = vpack.c.bf16 %v7258_v45, %v7261_v56  ;;  %v2830_v54 = vpack.c.bf16 %v7251_v50, %v7254_v5 }
 0x768   : > { %v7275_v35 = vsel %vm746_vm1, %v2782_v8, %v2791_v53  ;;  %v7280_v24 = vsel %vm975_vm3, %v2816_v12, %v2817_v27  ;;  %v2822_v13 = vrot.slane %v7270_v42, 2  ;;  %v6003_v8 = vld [vmem:[#allocation7 + $0x134] ss:$8 sps:$4 sm:$0xff]   ;;  %v6001_v53 = vld [vmem:[#allocation7 + $0x130] ss:$8 sps:$4 sm:$0xff]  }
 0x769   : > { %3444 = vmatprep.mubr.bf16.mxu1 %v2831_v31  ;;  %v2807_v51 = vsel %vm960_vm2, %v2805_v25, %v2806_v28  ;;  %v2810_v30 = vrot.slane %v7275_v35, 1  ;;  %v6006_v25 = vld [vmem:[#allocation7 + $0x144] ss:$8 sps:$4 sm:$0xff]   ;;  %v6009_v31 = vld [vmem:[#allocation7 + $0x154] ss:$8 sps:$4 sm:$0xff]  }
 0x76a   : > { %3445 = vmatmul.mubr.bf16.vlgmr.msra.gmra.mrb[12].mxu1 %v2830_v54  ;;  %v7285_v60 = vsel %vm975_vm3, %v2817_v27, %v2822_v13  ;;  %v6012_v12 = vld [vmem:[#allocation7 + $0x164] ss:$8 sps:$4 sm:$0xff]   ;;  %v6010_v27 = vld [vmem:[#allocation7 + $0x160] ss:$8 sps:$4 sm:$0xff]   ;;  %v6015_v54 = vld [vmem:[#allocation7 + $0x174] ss:$8 sps:$4 sm:$0xff]  }
 0x76b   : > { %3456 = vmatpush1.bf16.msra.mxu1 %v5992_v0  ;;  %v2811_v43 = vsel %vm960_vm2, %v2806_v28, %v2810_v30  ;;  %v2834_v9 = vpack.c.bf16 %v7285_v60, %v7280_v24  ;;  %v6004_v28 = vld [vmem:[#allocation7 + $0x140] ss:$8 sps:$4 sm:$0xff]   ;;  %v6007_v0 = vld [vmem:[#allocation7 + $0x150] ss:$8 sps:$4 sm:$0xff]   ;;  %v6021_v13 = vld [vmem:[#allocation7 + $0x194] ss:$8 sps:$4 sm:$0xff]  }
 0x76c   : > { %v2833_v1 = vpack.c.bf16 %v2811_v43, %v2807_v51  ;;  %3457 = vmatprep.subr.bf16.mxu1 %v5997_v20  ;;  %v6013_v20 = vld [vmem:[#allocation7 + $0x170] ss:$8 sps:$4 sm:$0xff]   ;;  %v6018_v51 = vld [vmem:[#allocation7 + $0x184] ss:$8 sps:$4 sm:$0xff]   ;;  %v6016_v30 = vld [vmem:[#allocation7 + $0x180] ss:$8 sps:$4 sm:$0xff]  }
 0x76d   : > { %v6019_v43 = vld [vmem:[#allocation7 + $0x190] ss:$8 sps:$4 sm:$0xff]  }
 0x76e   : > { %3487 = vmatprep.mubr.bf16.mxu1 %v2833_v1  ;;  %v6022_v1 = vld [vmem:[#allocation7 + $0x1a0] ss:$8 sps:$4 sm:$0xff]  }
 0x76f   : > { %3458 = vmatpush1.bf16.msra.mxu1 %v5995_v33  ;;  %v6024_v33 = vld [vmem:[#allocation7 + $0x1a4] ss:$8 sps:$4 sm:$0xff]  }
 0x770   : > { %3459 = vmatprep.subr.bf16.mxu1 %v6000_v57  ;;  %v6027_v57 = vld [vmem:[#allocation7 + $0x1b4] ss:$8 sps:$4 sm:$0xff]  }
 0x773   : > { %3460 = vmatpush1.bf16.msra.mxu1 %v5998_v4  ;;  %v6025_v4 = vld [vmem:[#allocation7 + $0x1b0] ss:$8 sps:$4 sm:$0xff]  }
 0x774   : > { %3461 = vmatprep.subr.bf16.mxu1 %v6003_v8  ;;  %v6030_v8 = vld [vmem:[#allocation7 + $0x1c4] ss:$8 sps:$4 sm:$0xff]  }
 0x777   : > { %3462 = vmatpush1.bf16.msra.mxu1 %v6001_v53  ;;  %v6028_v53 = vld [vmem:[#allocation7 + $0x1c0] ss:$8 sps:$4 sm:$0xff]  }
 0x778   : > { %3463 = vmatprep.subr.bf16.mxu1 %v6006_v25  ;;  %v6033_v25 = vld [vmem:[#allocation7 + $0x1d4] ss:$8 sps:$4 sm:$0xff]  }
 0x77b   : > { %3464 = vmatpush1.bf16.msra.mxu1 %v6004_v28  ;;  %v6031_v28 = vld [vmem:[#allocation7 + $0x1d0] ss:$8 sps:$4 sm:$0xff]  }
 0x77c   : > { %3465 = vmatprep.subr.bf16.mxu1 %v6009_v31  ;;  %v6036_v31 = vld [vmem:[#allocation7 + $0x1e4] ss:$8 sps:$4 sm:$0xff]  }
 0x77f   : > { %3466 = vmatpush1.bf16.msra.mxu1 %v6007_v0  ;;  %v6034_v0 = vld [vmem:[#allocation7 + $0x1e0] ss:$8 sps:$4 sm:$0xff]  }
 0x780   : > { %3467 = vmatprep.subr.bf16.mxu1 %v6012_v12  ;;  %v6039_v12 = vld [vmem:[#allocation7 + $0x1f4] ss:$8 sps:$4 sm:$0xff]  }
 0x783   : > { %3468 = vmatpush1.bf16.msra.mxu1 %v6010_v27  ;;  %v2802_v27 = vrot.slane %v7254_v5, 1 }
 0x784   : > { %3469 = vmatprep.subr.bf16.mxu1 %v6015_v54  ;;  %v2803_v54 = vrot.slane %v7251_v50, 1 }
 0x787   : > { %3470 = vmatpush1.bf16.msra.mxu1 %v6013_v20  ;;  %v2808_v20 = vrot.slane %v7270_v42, 1  ;;  %v6040_v42 = vld [vmem:[#allocation7 + $0x200] ss:$8 sps:$4 sm:$0xff]  }
 0x788   : > { %3471 = vmatprep.subr.bf16.mxu1 %v6018_v51  ;;  %v2819_v51 = vrot.slane %v7261_v56, 2  ;;  %v6045_v56 = vld [vmem:[#allocation7 + $0x214] ss:$8 sps:$4 sm:$0xff]  }
 0x78b   : > { %3472 = vmatpush1.bf16.msra.mxu1 %v6016_v30  ;;  %v2820_v30 = vrot.slane %v7258_v45, 2 }
 0x78c   : > { %3473 = vmatprep.subr.bf16.mxu1 %v6021_v13  ;;  %v2824_v13 = vrot.slane %v7275_v35, 2  ;;  %v6043_v35 = vld [vmem:[#allocation7 + $0x210] ss:$8 sps:$4 sm:$0xff]  }
 0x78d   : > { %v2821_v5 = vsel %vm975_vm3, %v2819_v51, %v2820_v30  ;;  %v6063_v51 = vld [vmem:[#allocation7 + $0x274] ss:$8 sps:$4 sm:$0xff]  }
 0x78e   : > { %v2825_v50 = vsel %vm975_vm3, %v2820_v30, %v2824_v13  ;;  %v6061_v30 = vld [vmem:[#allocation7 + $0x270] ss:$8 sps:$4 sm:$0xff]   ;;  %v6066_v13 = vld [vmem:[#allocation7 + $0x284] ss:$8 sps:$4 sm:$0xff]  }
 0x78f   : > { %3474 = vmatpush1.bf16.msra.mxu1 %v6019_v43  ;;  %v6037_v43 = vld [vmem:[#allocation7 + $0x1f0] ss:$8 sps:$4 sm:$0xff]   ;;  %v2835_v45 = vpack.c.bf16 %v2825_v50, %v2821_v5  ;;  %v6070_v5 = vld [vmem:[#allocation7 + $0x2a0] ss:$8 sps:$4 sm:$0xff]   ;;  %v6075_v50 = vld [vmem:[#allocation7 + $0x2b4] ss:$8 sps:$4 sm:$0xff]  }
 0x790   : > { %3475 = vmatprep.subr.bf16.mxu1 %v6024_v33  ;;  %v6042_v33 = vld [vmem:[#allocation7 + $0x204] ss:$8 sps:$4 sm:$0xff]  }
 0x793   : > { %3476 = vmatpush1.bf16.msra.mxu1 %v6022_v1  ;;  %v2804_v1 = vsel %vm960_vm2, %v2802_v27, %v2803_v54  ;;  %v6055_v27 = vld [vmem:[#allocation7 + $0x250] ss:$8 sps:$4 sm:$0xff]  }
 0x794   : > { %3477 = vmatprep.subr.bf16.mxu1 %v6027_v57  ;;  %v2809_v57 = vsel %vm960_vm2, %v2803_v54, %v2808_v20  ;;  %v6060_v54 = vld [vmem:[#allocation7 + $0x264] ss:$8 sps:$4 sm:$0xff]   ;;  %v6058_v20 = vld [vmem:[#allocation7 + $0x260] ss:$8 sps:$4 sm:$0xff]  }
 0x797   : > { %3478 = vmatpush1.bf16.msra.mxu1 %v6025_v4  ;;  %v2832_v4 = vpack.c.bf16 %v2809_v57, %v2804_v1  ;;  %v6067_v1 = vld [vmem:[#allocation7 + $0x290] ss:$8 sps:$4 sm:$0xff]   ;;  %v6072_v57 = vld [vmem:[#allocation7 + $0x2a4] ss:$8 sps:$4 sm:$0xff]  }
 0x798   : > { %3479 = vmatprep.subr.bf16.mxu1 %v6030_v8  ;;  %v6048_v8 = vld [vmem:[#allocation7 + $0x224] ss:$8 sps:$4 sm:$0xff]  }
 0x79b   : > { %3480 = vmatpush1.bf16.msra.mxu1 %v6028_v53  ;;  %v6046_v53 = vld [vmem:[#allocation7 + $0x220] ss:$8 sps:$4 sm:$0xff]  }
 0x79c   : > { %3481 = vmatprep.subr.bf16.mxu1 %v6033_v25  ;;  %v6051_v25 = vld [vmem:[#allocation7 + $0x234] ss:$8 sps:$4 sm:$0xff]  }
 0x79f   : > { %3482 = vmatpush1.bf16.msra.mxu1 %v6031_v28  ;;  %v6049_v28 = vld [vmem:[#allocation7 + $0x230] ss:$8 sps:$4 sm:$0xff]  }
 0x7a0   : > { %3483 = vmatprep.subr.bf16.mxu1 %v6036_v31  ;;  %v6054_v31 = vld [vmem:[#allocation7 + $0x244] ss:$8 sps:$4 sm:$0xff]  }
 0x7a3   : > { %3484 = vmatpush1.bf16.msra.mxu1 %v6034_v0  ;;  %v6052_v0 = vld [vmem:[#allocation7 + $0x240] ss:$8 sps:$4 sm:$0xff]  }
 0x7a4   : > { %3485 = vmatprep.subr.bf16.mxu1 %v6039_v12  ;;  %v6057_v12 = vld [vmem:[#allocation7 + $0x254] ss:$8 sps:$4 sm:$0xff]  }
 0x7a7   : > { %3486 = vmatpush1.bf16.msra.mxu1 %v6037_v43  ;;  %v6064_v43 = vld [vmem:[#allocation7 + $0x280] ss:$8 sps:$4 sm:$0xff]  }
 0x7a8   : > { %3498 = vmatprep.subr.bf16.mxu1 %v6042_v33  ;;  %v6069_v33 = vld [vmem:[#allocation7 + $0x294] ss:$8 sps:$4 sm:$0xff]  }
 0x7aa   : > { %3488 = vmatmul.mubr.bf16.vlgmr.msra.gmra.mrb[12].mxu1 %v2832_v4  ;;  %v6078_v4 = vld [vmem:[#allocation7 + $0x2c4] ss:$8 sps:$4 sm:$0xff]  }
 0x7ab   : > { %3499 = vmatpush1.bf16.msra.mxu1 %v6040_v42  ;;  %3530 = vmatprep.mubr.bf16.mxu1 %v2835_v45  ;;  %v6073_v42 = vld [vmem:[#allocation7 + $0x2b0] ss:$8 sps:$4 sm:$0xff]   ;;  %v6081_v45 = vld [vmem:[#allocation7 + $0x2d4] ss:$8 sps:$4 sm:$0xff]  }
 0x7ac   : > { %3500 = vmatprep.subr.bf16.mxu1 %v6045_v56  ;;  %v6076_v56 = vld [vmem:[#allocation7 + $0x2c0] ss:$8 sps:$4 sm:$0xff]  }
 0x7af   : > { %3501 = vmatpush1.bf16.msra.mxu1 %v6043_v35  ;;  %v6079_v35 = vld [vmem:[#allocation7 + $0x2d0] ss:$8 sps:$4 sm:$0xff]  }
 0x7b0   : > { %3502 = vmatprep.subr.bf16.mxu1 %v6048_v8  ;;  %v6084_v8 = vld [vmem:[#allocation7 + $0x2e4] ss:$8 sps:$4 sm:$0xff]  }
 0x7b3   : > { %3503 = vmatpush1.bf16.msra.mxu1 %v6046_v53  ;;  %v6082_v53 = vld [vmem:[#allocation7 + $0x2e0] ss:$8 sps:$4 sm:$0xff]  }
 0x7b4   : > { %3504 = vmatprep.subr.bf16.mxu1 %v6051_v25  ;;  %v6087_v25 = vld [vmem:[#allocation7 + $0x2f4] ss:$8 sps:$4 sm:$0xff]  }
 0x7b7   : > { %3505 = vmatpush1.bf16.msra.mxu1 %v6049_v28  ;;  %v6085_v28 = vld [vmem:[#allocation7 + $0x2f0] ss:$8 sps:$4 sm:$0xff]  }
 0x7b8   : > { %3506 = vmatprep.subr.bf16.mxu1 %v6054_v31 }
 0x7bb   : > { %3507 = vmatpush1.bf16.msra.mxu1 %v6052_v0 }
 0x7bc   : > { %3508 = vmatprep.subr.bf16.mxu1 %v6057_v12 }
 0x7bf   : > { %3509 = vmatpush1.bf16.msra.mxu1 %v6055_v27 }
 0x7c0   : > { %3510 = vmatprep.subr.bf16.mxu1 %v6060_v54 }
 0x7c3   : > { %3511 = vmatpush1.bf16.msra.mxu1 %v6058_v20  ;;  %v6088_v20 = vld [vmem:[#allocation9] ss:$8 sps:$4 sm:$0xff]  }
 0x7c4   : > { %3512 = vmatprep.subr.bf16.mxu1 %v6063_v51 }
 0x7c7   : > { %3513 = vmatpush1.bf16.msra.mxu1 %v6061_v30  ;;  %v6093_v30 = vld [vmem:[#allocation9 + $0x14] ss:$8 sps:$4 sm:$0xff]  }
 0x7c8   : > { %3514 = vmatprep.subr.bf16.mxu1 %v6066_v13  ;;  %v6091_v13 = vld [vmem:[#allocation9 + $0x10] ss:$8 sps:$4 sm:$0xff]  }
 0x7cb   : > { %3515 = vmatpush1.bf16.msra.mxu1 %v6064_v43  ;;  %v6096_v43 = vld [vmem:[#allocation9 + $0x24] ss:$8 sps:$4 sm:$0xff]  }
 0x7cc   : > { %3516 = vmatprep.subr.bf16.mxu1 %v6069_v33  ;;  %v6094_v33 = vld [vmem:[#allocation9 + $0x20] ss:$8 sps:$4 sm:$0xff]  }
 0x7cf   : > { %3517 = vmatpush1.bf16.msra.mxu1 %v6067_v1  ;;  %v6099_v1 = vld [vmem:[#allocation9 + $0x34] ss:$8 sps:$4 sm:$0xff]  }
 0x7d0   : > { %3518 = vmatprep.subr.bf16.mxu1 %v6072_v57  ;;  %v6097_v57 = vld [vmem:[#allocation9 + $0x30] ss:$8 sps:$4 sm:$0xff]  }
 0x7d3   : > { %3519 = vmatpush1.bf16.msra.mxu1 %v6070_v5  ;;  %v6102_v5 = vld [vmem:[#allocation9 + $0x44] ss:$8 sps:$4 sm:$0xff]  }
 0x7d4   : > { %3520 = vmatprep.subr.bf16.mxu1 %v6075_v50  ;;  %v6100_v50 = vld [vmem:[#allocation9 + $0x40] ss:$8 sps:$4 sm:$0xff]  }
 0x7d7   : > { %3521 = vmatpush1.bf16.msra.mxu1 %v6073_v42  ;;  %v6105_v42 = vld [vmem:[#allocation9 + $0x54] ss:$8 sps:$4 sm:$0xff]  }
 0x7d8   : > { %3522 = vmatprep.subr.bf16.mxu1 %v6078_v4  ;;  %v6103_v4 = vld [vmem:[#allocation9 + $0x50] ss:$8 sps:$4 sm:$0xff]  }
 0x7db   : > { %3523 = vmatpush1.bf16.msra.mxu1 %v6076_v56  ;;  %v6108_v56 = vld [vmem:[#allocation9 + $0x64] ss:$8 sps:$4 sm:$0xff]  }
 0x7dc   : > { %3524 = vmatprep.subr.bf16.mxu1 %v6081_v45  ;;  %v6106_v45 = vld [vmem:[#allocation9 + $0x60] ss:$8 sps:$4 sm:$0xff]  }
 0x7df   : > { %3525 = vmatpush1.bf16.msra.mxu1 %v6079_v35  ;;  %v6111_v35 = vld [vmem:[#allocation9 + $0x74] ss:$8 sps:$4 sm:$0xff]  }
 0x7e0   : > { %3526 = vmatprep.subr.bf16.mxu1 %v6084_v8  ;;  %v6109_v8 = vld [vmem:[#allocation9 + $0x70] ss:$8 sps:$4 sm:$0xff]  }
 0x7e3   : > { %3527 = vmatpush1.bf16.msra.mxu1 %v6082_v53  ;;  %v6114_v53 = vld [vmem:[#allocation9 + $0x84] ss:$8 sps:$4 sm:$0xff]  }
 0x7e4   : > { %3528 = vmatprep.subr.bf16.mxu1 %v6087_v25  ;;  %v6112_v25 = vld [vmem:[#allocation9 + $0x80] ss:$8 sps:$4 sm:$0xff]  }
 0x7e7   : > { %3529 = vmatpush1.bf16.msra.mxu1 %v6085_v28  ;;  %v6117_v28 = vld [vmem:[#allocation9 + $0x94] ss:$8 sps:$4 sm:$0xff]  }
 0x7e8   : > { %5427 = vmatprep.subr.bf16.mxu1 %v6649_v32  ;;  %v7482_v32 = vld [vmem:[#allocation13_spill] sm:$0xff] }
 0x7ea   : > { %3531 = vmatmul.mubr.bf16.vlgmr.msra.gmra.mrb[12].mxu1 %v2834_v9 }
 0x7eb   : > { %5429 = vmatpush1.bf16.msra.mxu1 %v6664_v39  ;;  %v6090_v39 = vld [vmem:[#allocation9 + $0x4] ss:$8 sps:$4 sm:$0xff]  }
 0x7ec   : > { %5431 = vmatprep.subr.bf16.mxu1 %v6667_v41  ;;  %4332 = vmatprep.subr.bf16.mxu0 %v6090_v39  ;;  %v6120_v39 = vld [vmem:[#allocation9 + $0xa4] ss:$8 sps:$4 sm:$0xff]  }
 0x7ef   : > { %5433 = vmatpush1.bf16.msra.mxu1 %v6682_v47 }
 0x7f0   : > { %5435 = vmatprep.subr.bf16.mxu1 %v6685_v49 }
 0x7f3   : > { %5437 = vmatpush1.bf16.msra.mxu1 %v6703_v58 }
 0x7f4   : > { %5439 = vmatprep.subr.bf16.mxu1 %v6715_v62 }
 0x7f7   : > { %5441 = vmatpush1.bf16.msra.mxu1 %v6724_v3 }
 0x7f8   : > { %5443 = vmatprep.subr.bf16.mxu1 %v6733_v6 }
 0x7fb   : > { %5445 = vmatpush1.bf16.msra.mxu1 %v6742_v11 }
 0x7fc   : > { %5447 = vmatprep.subr.bf16.mxu1 %v6751_v14 }
 0x7ff   : > { %5449 = vmatpush1.bf16.msra.mxu1 %v6760_v19 }
 0x800   : > { %5451 = vmatprep.subr.bf16.mxu1 %v6769_v22 }
 0x803   : > { %5453 = vmatpush1.bf16.msra.mxu1 %v6778_v26 }
 0x804   : > { %5455 = vmatprep.subr.bf16.mxu1 %v6787_v29 }
 0x807   : > { %5457 = vmatpush1.bf16.msra.mxu1 %v6797_v34 }
 0x808   : > { %5459 = vmatprep.subr.bf16.mxu1 %v6806_v37 }
 0x80b   : > { %5461 = vmatpush1.bf16.msra.mxu1 %v6810_v38 }
 0x80c   : > { %5463 = vmatprep.subr.bf16.mxu1 %v6813_v40 }
 0x80f   : > { %5465 = vmatpush1.bf16.msra.mxu1 %v6841_v44 }
 0x810   : > { %5467 = vmatprep.subr.bf16.mxu1 %v6851_v48 }
 0x813   : > { %5469 = vmatpush1.bf16.msra.mxu1 %v6859_v52 }
 0x814   : > { %5471 = vmatprep.subr.bf16.mxu1 %v6871_v55 }
 0x817   : > { %5473 = vmatpush1.bf16.msra.mxu1 %v6879_v59 }
 0x818   : > { %5475 = vmatprep.subr.bf16.mxu1 %v6891_v63 }
 0x81b   : > { %5477 = vmatpush1.bf16.msra.mxu1 %v6899_v2 }
 0x81c   : > { %5479 = vmatprep.subr.bf16.mxu1 %v6911_v7 }
 0x81f   : > { %5481 = vmatpush1.bf16.msra.mxu1 %v6919_v10 }
 0x820   : > { %5483 = vmatprep.subr.bf16.mxu1 %v6934_v16 }
 0x823   : > { %5485 = vmatpush1.bf16.msra.mxu1 %v6945_v21 }
 0x824   : > { %5487 = vmatprep.subr.bf16.mxu1 %v6947_v23 }
 0x827   : > { %5489 = vmatpush1.bf16.msra.mxu1 %v7482_v32  ;;  %v6115_v32 = vld [vmem:[#allocation9 + $0x90] ss:$8 sps:$4 sm:$0xff]  }
 0x8bd   : > { %v7334_v41 = vpop.f32.mrb[12].mxu1 }
 0x8be   : > { %v7336_v47 = vpop.f32.mrb[13].mxu1  ;;  %v3555_v58 = vmul.f32 %v7334_v41, %v7334_v41 }
 0x8bf   : > { %v7338_v49 = vpop.f32.mrb[14].mxu1  ;;  %v3556_v11 = vmul.f32 %v7336_v47, %v7336_v47 }
 0x8c0   : > { %v3541_v62 = vadd.f32 %v7338_v49, %v7334_v41  ;;  %v3557_v3 = vmul.f32 %v7338_v49, %v7338_v49  ;;  %v7346_v6 = vpop.f32.mrb[15].mxu1 }
 0x8c1   : > { %v3548_v14 = vadd.f32 %v7346_v6, %v7336_v47  ;;  %v3558_v19 = vmul.f32 %v7346_v6, %v7346_v6 }
 0x8c2   : > { %v3542_v22 = vrot.slane %v3541_v62, 4  ;;  %v3559_v26 = vadd.f32 %v3557_v3, %v3555_v58  ;;  %v6118_v58 = vld [vmem:[#allocation9 + $0xa0] ss:$8 sps:$4 sm:$0xff]   ;;  %v6121_v3 = vld [vmem:[#allocation9 + $0xb0] ss:$8 sps:$4 sm:$0xff]  }
 0x8c3   : > { %v3549_v29 = vrot.slane %v3548_v14, 4  ;;  %v3566_v34 = vadd.f32 %v3558_v19, %v3556_v11  ;;  %v6126_v11 = vld [vmem:[#allocation9 + $0xc4] ss:$8 sps:$4 sm:$0xff]   ;;  %v6129_v19 = vld [vmem:[#allocation9 + $0xd4] ss:$8 sps:$4 sm:$0xff]  }
 0x8c4   : > { %v3543_v37 = vadd.f32 %v3542_v22, %v3541_v62  ;;  %v3560_v38 = vrot.slane %v3559_v26, 4  ;;  %v6123_v62 = vld [vmem:[#allocation9 + $0xb4] ss:$8 sps:$4 sm:$0xff]   ;;  %v6127_v22 = vld [vmem:[#allocation9 + $0xd0] ss:$8 sps:$4 sm:$0xff]  }
 0x8c5   : > { %v3550_v40 = vadd.f32 %v3549_v29, %v3548_v14  ;;  %v3567_v44 = vrot.slane %v3566_v34, 4  ;;  %v6124_v14 = vld [vmem:[#allocation9 + $0xc0] ss:$8 sps:$4 sm:$0xff]  }
 0x8c6   : > { %v3544_v48 = vrot.slane %v3543_v37, 2  ;;  %v3561_v52 = vadd.f32 %v3560_v38, %v3559_v26  ;;  %v6132_v26 = vld [vmem:[#allocation9 + $0xe4] ss:$8 sps:$4 sm:$0xff]   ;;  %v6130_v29 = vld [vmem:[#allocation9 + $0xe0] ss:$8 sps:$4 sm:$0xff]  }
 0x8c7   : > { %v3551_v55 = vrot.slane %v3550_v40, 2  ;;  %v3568_v59 = vadd.f32 %v3567_v44, %v3566_v34  ;;  %v6135_v34 = vld [vmem:[#allocation9 + $0xf4] ss:$8 sps:$4 sm:$0xff]   ;;  %v6138_v38 = vld [vmem:[#allocation9 + $0x104] ss:$8 sps:$4 sm:$0xff]  }
 0x8c8   : > { %v3545_v63 = vadd.f32 %v3544_v48, %v3543_v37  ;;  %v3562_v2 = vrot.slane %v3561_v52, 2  ;;  %v6133_v37 = vld [vmem:[#allocation9 + $0xf0] ss:$8 sps:$4 sm:$0xff]  }
 0x8c9   : > { %v3552_v7 = vadd.f32 %v3551_v55, %v3550_v40  ;;  %v3569_v10 = vrot.slane %v3568_v59, 2 }
 0x8ca   : > { %v3546_v16 = vrot.slane %v3545_v63, 1  ;;  %v3563_v21 = vadd.f32 %v3562_v2, %v3561_v52 }
 0x8cb   : > { %v3553_v23 = vrot.slane %v3552_v7, 1  ;;  %v3570_v24 = vadd.f32 %v3569_v10, %v3568_v59 }
 0x8cc   : > { %v3564_v60 = vrot.slane %v3563_v21, 1  ;;  %v3547_v31 = vadd.f32 %v3546_v16, %v3545_v63 }
 0x8cd   : > { %v3571_v9 = vrot.slane %v3570_v24, 1  ;;  %v3554_v12 = vadd.f32 %v3553_v23, %v3552_v7 }
 0x8ce   : > { %v3565_v0 = vadd.f32 %v3564_v60, %v3563_v21 }
 0x8cf   : > { %v3572_v27 = vadd.f32 %v3571_v9, %v3570_v24 }
 0x8d0   : > { %v3573_v54 = vsel %vm746_vm1, %v3547_v31, %v3565_v0 }
 0x8d1   : > { %v3574_v51 = vsel %vm746_vm1, %v3554_v12, %v3572_v27 }
 0x8d2   : > { %3639 = vmatprep.mubr.f32.mxu0 %v3574_v51 }
 0x8d3   : > { %3640 = vmatmul.mubr.f32.vlgmr.msra.gmra.mrb[6].mxu0 %v3573_v54 }
 0x8d4   : > { %4333 = vmatpush1.bf16.msra.mxu0 %v6088_v20 }
 0x8d5   : > { %4334 = vmatprep.subr.bf16.mxu0 %v6093_v30 }
 0x8d8   : > { %4335 = vmatpush1.bf16.msra.mxu0 %v6091_v13 }
 0x8d9   : > { %4336 = vmatprep.subr.bf16.mxu0 %v6096_v43 }
 0x8dc   : > { %4337 = vmatpush1.bf16.msra.mxu0 %v6094_v33 }
 0x8dd   : > { %4338 = vmatprep.subr.bf16.mxu0 %v6099_v1 }
 0x8e0   : > { %4339 = vmatpush1.bf16.msra.mxu0 %v6097_v57 }
 0x8e1   : > { %4340 = vmatprep.subr.bf16.mxu0 %v6102_v5 }
 0x8e4   : > { %4341 = vmatpush1.bf16.msra.mxu0 %v6100_v50 }
 0x8e5   : > { %4342 = vmatprep.subr.bf16.mxu0 %v6105_v42 }
 0x8e8   : > { %4343 = vmatpush1.bf16.msra.mxu0 %v6103_v4 }
 0x8e9   : > { %4344 = vmatprep.subr.bf16.mxu0 %v6108_v56 }
 0x8ec   : > { %4345 = vmatpush1.bf16.msra.mxu0 %v6106_v45 }
 0x8ed   : > { %4346 = vmatprep.subr.bf16.mxu0 %v6111_v35 }
 0x8f0   : > { %4347 = vmatpush1.bf16.msra.mxu0 %v6109_v8 }
 0x8f1   : > { %4348 = vmatprep.subr.bf16.mxu0 %v6114_v53 }
 0x8f4   : > { %4349 = vmatpush1.bf16.msra.mxu0 %v6112_v25 }
 0x8f5   : > { %4350 = vmatprep.subr.bf16.mxu0 %v6117_v28 }
 0x8f8   : > { %4351 = vmatpush1.bf16.msra.mxu0 %v6115_v32 }
 0x8f9   : > { %4352 = vmatprep.subr.bf16.mxu0 %v6120_v39 }
 0x8fc   : > { %4353 = vmatpush1.bf16.msra.mxu0 %v6118_v58 }
 0x8fd   : > { %4354 = vmatprep.subr.bf16.mxu0 %v6123_v62 }
 0x900   : > { %4355 = vmatpush1.bf16.msra.mxu0 %v6121_v3 }
 0x901   : > { %4356 = vmatprep.subr.bf16.mxu0 %v6126_v11 }
 0x904   : > { %4357 = vmatpush1.bf16.msra.mxu0 %v6124_v14  ;;  %v6136_v14 = vld [vmem:[#allocation9 + $0x100] ss:$8 sps:$4 sm:$0xff]  }
 0x905   : > { %4358 = vmatprep.subr.bf16.mxu0 %v6129_v19 }
 0x908   : > { %4359 = vmatpush1.bf16.msra.mxu0 %v6127_v22 }
 0x909   : > { %4360 = vmatprep.subr.bf16.mxu0 %v6132_v26 }
 0x90c   : > { %4361 = vmatpush1.bf16.msra.mxu0 %v6130_v29 }
 0x90d   : > { %4362 = vmatprep.subr.bf16.mxu0 %v6135_v34 }
 0x910   : > { %4363 = vmatpush1.bf16.msra.mxu0 %v6133_v37  ;;  %v6141_v37 = vld [vmem:[#allocation9 + $0x114] ss:$8 sps:$4 sm:$0xff]  }
 0x911   : > { %4375 = vmatprep.subr.bf16.mxu0 %v6138_v38 }
 0x9a6   : > { %v3641_v40 = vpop.f32.mrb[6].mxu0 }
 0x9a7   : > { %v3646_v44 = vmul.f32 0.00390625, %v3641_v40  ;;  %v3643_v48 = vpop.f32.mrb[7].mxu0 }
 0x9a8   : > { %v3647_v52 = vmul.f32 0.00390625, %v3643_v48 }
 0x9a9   : > { %v3648_v55 = vmul.f32 %v3646_v44, %v3646_v44  ;;  %v3661_v59 = vrot.slane %v3646_v44, %v6987_v36 }
 0x9aa   : > { %v3649_v63 = vmul.f32 %v3647_v52, %v3647_v52  ;;  %v3665_v2 = vrot.slane %v3647_v52, %v6987_v36 }
 0x9ab   : > { %v3652_v7 = vrot.slane %v3648_v55, 7  ;;  %v3666_v10 = vsub.f32 %v7334_v41, %v3661_v59  ;;  %v3668_v16 = vsub.f32 %v7338_v49, %v3661_v59 }
 0x9ac   : > { %v3653_v21 = vrot.slane %v3649_v63, 7  ;;  %v3667_v23 = vsub.f32 %v7336_v47, %v3665_v2  ;;  %v3669_v24 = vsub.f32 %v7346_v6, %v3665_v2 }
 0x9ad   : > { %v3656_v60 = vsub.f32 %v3646_v44, %v3652_v7  ;;  %v6139_v7 = vld [vmem:[#allocation9 + $0x110] ss:$8 sps:$4 sm:$0xff]  }
 0x9ae   : > { %v3657_v9 = vsub.f32 %v3647_v52, %v3653_v21 }
 0x9af   : > { %v3670_v31 = vadd.f32 1e-05, %v3656_v60 }
 0x9b0   : > { %v3671_v0 = vadd.f32 1e-05, %v3657_v9 }
 0x9b1   : > { %6244 = vrsqrt.f32 %v3670_v31  ;;  %v6142_v31 = vld [vmem:[#allocation9 + $0x120] ss:$8 sps:$4 sm:$0xff]  }
 0x9b2   : > { %6246 = vrsqrt.f32 %v3671_v0  ;;  %v6147_v0 = vld [vmem:[#allocation9 + $0x134] ss:$8 sps:$4 sm:$0xff]  }
 0x9bb   : > { %v6245_v12 = vpop.eup %6244 }
 0x9bc   : > { %v6247_v27 = vpop.eup %6246  ;;  %v3677_v54 = vrot.slane %v6245_v12, %v6990_v46  ;;  %v6145_v12 = vld [vmem:[#allocation9 + $0x130] ss:$8 sps:$4 sm:$0xff]  }
 0x9bd   : > { %v3681_v20 = vrot.slane %v6247_v27, %v6990_v46  ;;  %v6150_v27 = vld [vmem:[#allocation9 + $0x144] ss:$8 sps:$4 sm:$0xff]  }
 0x9be   : > { %v3682_v41 = vmul.f32 %v3677_v54, %v3666_v10  ;;  %v3684_v51 = vmul.f32 %v3677_v54, %v3668_v16  ;;  %v6148_v54 = vld [vmem:[#allocation9 + $0x140] ss:$8 sps:$4 sm:$0xff]  }
 0x9bf   : > { %v3683_v49 = vmul.f32 %v3681_v20, %v3667_v23  ;;  %v3685_v30 = vmul.f32 %v3681_v20, %v3669_v24  ;;  %v6144_v23 = vld [vmem:[#allocation9 + $0x124] ss:$8 sps:$4 sm:$0xff]   ;;  %v6153_v20 = vld [vmem:[#allocation9 + $0x154] ss:$8 sps:$4 sm:$0xff]  }
 0x9c0   : > { %v3686_v13 = vmax.f32 %v3682_v41, 0.0  ;;  %v3688_v47 = vmax.f32 %v3684_v51, 0.0  ;;  %v6151_v41 = vld [vmem:[#allocation9 + $0x150] ss:$8 sps:$4 sm:$0xff]   ;;  %v6156_v51 = vld [vmem:[#allocation9 + $0x164] ss:$8 sps:$4 sm:$0xff]  }
 0x9c1   : > { %v3687_v43 = vmax.f32 %v3683_v49, 0.0  ;;  %v3689_v6 = vmax.f32 %v3685_v30, 0.0  ;;  %v6154_v49 = vld [vmem:[#allocation9 + $0x160] ss:$8 sps:$4 sm:$0xff]   ;;  %v6159_v30 = vld [vmem:[#allocation9 + $0x174] ss:$8 sps:$4 sm:$0xff]  }
 0x9c2   : > { %v3692_v33 = vrot.slane %v3686_v13, 1  ;;  %v3698_v1 = vrot.slane %v3686_v13, 7  ;;  %v3700_v57 = vrot.slane %v3688_v47, 7  ;;  %v3710_v5 = vrot.slane %v3688_v47, 5  ;;  %v6157_v13 = vld [vmem:[#allocation9 + $0x170] ss:$8 sps:$4 sm:$0xff]  }
 0x9c3   : > { %v3693_v50 = vrot.slane %v3687_v43, 1  ;;  %v3699_v42 = vrot.slane %v3687_v43, 7  ;;  %v3702_v4 = vrot.slane %v3689_v6, 7  ;;  %v3711_v56 = vrot.slane %v3689_v6, 5  ;;  %v6162_v47 = vld [vmem:[#allocation9 + $0x184] ss:$8 sps:$4 sm:$0xff]  }
 0x9c4   : > { %v3701_v45 = vsel %vm746_vm1, %v3698_v1, %v3700_v57  ;;  %v3714_v35 = vsel %vm746_vm1, %v3692_v33, %v3698_v1  ;;  %v3716_v8 = vsel %vm746_vm1, %v3700_v57, %v3710_v5  ;;  %v6160_v43 = vld [vmem:[#allocation9 + $0x180] ss:$8 sps:$4 sm:$0xff]   ;;  %v6165_v6 = vld [vmem:[#allocation9 + $0x194] ss:$8 sps:$4 sm:$0xff]   ;;  %v6163_v33 = vld [vmem:[#allocation9 + $0x190] ss:$8 sps:$4 sm:$0xff]  }
 0x9c5   : > { %v3703_v53 = vsel %vm746_vm1, %v3699_v42, %v3702_v4  ;;  %v3715_v25 = vsel %vm746_vm1, %v3693_v50, %v3699_v42  ;;  %v3722_v28 = vrot.slane %v3714_v35, 1  ;;  %v3723_v32 = vrot.slane %v3701_v45, 1  ;;  %v6168_v1 = vld [vmem:[#allocation9 + $0x1a4] ss:$8 sps:$4 sm:$0xff]   ;;  %v6166_v57 = vld [vmem:[#allocation9 + $0x1a0] ss:$8 sps:$4 sm:$0xff]  }
 0x9c6   : > { %v3725_v39 = vrot.slane %v3715_v25, 1  ;;  %v3726_v58 = vrot.slane %v3703_v53, 1  ;;  %v3739_v62 = vrot.slane %v3715_v25, 2  ;;  %v3740_v3 = vrot.slane %v3703_v53, 2  ;;  %v6171_v5 = vld [vmem:[#allocation9 + $0x1b4] ss:$8 sps:$4 sm:$0xff]  }
 0x9c7   : > { %v3751_v11 = vpack.c.bf16 %v3703_v53, %v3715_v25  ;;  %v3736_v19 = vrot.slane %v3714_v35, 2  ;;  %v3737_v22 = vrot.slane %v3701_v45, 2  ;;  %v3750_v26 = vpack.c.bf16 %v3701_v45, %v3714_v35  ;;  %v6169_v50 = vld [vmem:[#allocation9 + $0x1b0] ss:$8 sps:$4 sm:$0xff]   ;;  %v6174_v42 = vld [vmem:[#allocation9 + $0x1c4] ss:$8 sps:$4 sm:$0xff]  }
 0x9c8   : > { %v3717_v29 = vsel %vm746_vm1, %v3702_v4, %v3711_v56  ;;  %v3727_v34 = vsel %vm960_vm2, %v3725_v39, %v3726_v58  ;;  %v7372_v38 = vsel %vm960_vm2, %v3722_v28, %v3723_v32  ;;  %v3728_v40 = vrot.slane %v3716_v8, 1  ;;  %v6172_v4 = vld [vmem:[#allocation9 + $0x1c0] ss:$8 sps:$4 sm:$0xff]   ;;  %v6177_v56 = vld [vmem:[#allocation9 + $0x1d4] ss:$8 sps:$4 sm:$0xff]  }
 0x9c9   : > { %4364 = vmatprep.mubr.bf16.mxu0 %v3751_v11  ;;  %v3730_v44 = vrot.slane %v3717_v29, 1  ;;  %v7375_v48 = vsel %vm975_vm3, %v3739_v62, %v3740_v3  ;;  %v3744_v52 = vrot.slane %v3717_v29, 2  ;;  %v7378_v55 = vsel %vm975_vm3, %v3736_v19, %v3737_v22  ;;  %v6175_v45 = vld [vmem:[#allocation9 + $0x1d0] ss:$8 sps:$4 sm:$0xff]   ;;  %v6180_v35 = vld [vmem:[#allocation9 + $0x1e4] ss:$8 sps:$4 sm:$0xff]  }
 0x9ca   : > { %4365 = vmatmul.mubr.bf16.vlgmr.msra.gmra.mrb[12].mxu0 %v3750_v26  ;;  %v7381_v59 = vsel %vm960_vm2, %v3723_v32, %v3728_v40  ;;  %v3742_v63 = vrot.slane %v3716_v8, 2  ;;  %v6178_v8 = vld [vmem:[#allocation9 + $0x1e0] ss:$8 sps:$4 sm:$0xff]   ;;  %v6183_v53 = vld [vmem:[#allocation9 + $0x1f4] ss:$8 sps:$4 sm:$0xff]  }
 0x9cb   : > { %4376 = vmatpush1.bf16.msra.mxu0 %v6136_v14  ;;  %v3731_v2 = vsel %vm960_vm2, %v3726_v58, %v3730_v44  ;;  %v3752_v10 = vpack.c.bf16 %v7381_v59, %v7372_v38  ;;  %v7387_v16 = vsel %vm975_vm3, %v3740_v3, %v3744_v52  ;;  %v6181_v25 = vld [vmem:[#allocation9 + $0x1f0] ss:$8 sps:$4 sm:$0xff]   ;;  %v6186_v28 = vld [vmem:[#allocation9 + $0x204] ss:$8 sps:$4 sm:$0xff]   ;;  %v6184_v32 = vld [vmem:[#allocation9 + $0x200] ss:$8 sps:$4 sm:$0xff]  }
 0x9cc   : > { %v3753_v21 = vpack.c.bf16 %v3731_v2, %v3727_v34  ;;  %4377 = vmatprep.subr.bf16.mxu0 %v6141_v37  ;;  %v3755_v24 = vpack.c.bf16 %v7387_v16, %v7375_v48  ;;  %v7392_v60 = vsel %vm975_vm3, %v3737_v22, %v3742_v63  ;;  %v6189_v39 = vld [vmem:[#allocation9 + $0x214] ss:$8 sps:$4 sm:$0xff]   ;;  %v6187_v58 = vld [vmem:[#allocation9 + $0x210] ss:$8 sps:$4 sm:$0xff]   ;;  %v6192_v62 = vld [vmem:[#allocation9 + $0x224] ss:$8 sps:$4 sm:$0xff]  }
 0x9cd   : > { %v3754_v9 = vpack.c.bf16 %v7392_v60, %v7378_v55  ;;  %v6190_v3 = vld [vmem:[#allocation9 + $0x220] ss:$8 sps:$4 sm:$0xff]   ;;  %v6195_v11 = vld [vmem:[#allocation9 + $0x234] ss:$8 sps:$4 sm:$0xff]   ;;  %v6193_v14 = vld [vmem:[#allocation9 + $0x230] ss:$8 sps:$4 sm:$0xff]  }
 0x9ce   : > { %4407 = vmatprep.mubr.bf16.mxu0 %v3753_v21  ;;  %v6198_v19 = vld [vmem:[#allocation9 + $0x244] ss:$8 sps:$4 sm:$0xff]   ;;  %v6196_v22 = vld [vmem:[#allocation9 + $0x240] ss:$8 sps:$4 sm:$0xff]   ;;  %v6201_v26 = vld [vmem:[#allocation9 + $0x254] ss:$8 sps:$4 sm:$0xff]  }
 0x9cf   : > { %4378 = vmatpush1.bf16.msra.mxu0 %v6139_v7  ;;  %v6199_v29 = vld [vmem:[#allocation9 + $0x250] ss:$8 sps:$4 sm:$0xff]   ;;  %v6204_v34 = vld [vmem:[#allocation9 + $0x264] ss:$8 sps:$4 sm:$0xff]   ;;  %v6202_v37 = vld [vmem:[#allocation9 + $0x260] ss:$8 sps:$4 sm:$0xff]  }
 0x9d0   : > { %4379 = vmatprep.subr.bf16.mxu0 %v6144_v23  ;;  %v6207_v38 = vld [vmem:[#allocation9 + $0x274] ss:$8 sps:$4 sm:$0xff]   ;;  %v6205_v40 = vld [vmem:[#allocation9 + $0x270] ss:$8 sps:$4 sm:$0xff]   ;;  %v6210_v44 = vld [vmem:[#allocation9 + $0x284] ss:$8 sps:$4 sm:$0xff]  }
 0x9d1   : > { %v6208_v48 = vld [vmem:[#allocation9 + $0x280] ss:$8 sps:$4 sm:$0xff]   ;;  %v6213_v52 = vld [vmem:[#allocation9 + $0x294] ss:$8 sps:$4 sm:$0xff]   ;;  %v6211_v59 = vld [vmem:[#allocation9 + $0x290] ss:$8 sps:$4 sm:$0xff]  }
 0x9d2   : > { %v6216_v63 = vld [vmem:[#allocation9 + $0x2a4] ss:$8 sps:$4 sm:$0xff]   ;;  %v6214_v2 = vld [vmem:[#allocation9 + $0x2a0] ss:$8 sps:$4 sm:$0xff]   ;;  %v6219_v7 = vld [vmem:[#allocation9 + $0x2b4] ss:$8 sps:$4 sm:$0xff]  }
 0x9d3   : > { %4380 = vmatpush1.bf16.msra.mxu0 %v6142_v31  ;;  %v6222_v16 = vld [vmem:[#allocation9 + $0x2c4] ss:$8 sps:$4 sm:$0xff]   ;;  %v6220_v21 = vld [vmem:[#allocation9 + $0x2c0] ss:$8 sps:$4 sm:$0xff]   ;;  %v6225_v23 = vld [vmem:[#allocation9 + $0x2d4] ss:$8 sps:$4 sm:$0xff]  }
 0x9d4   : > { %4381 = vmatprep.subr.bf16.mxu0 %v6147_v0  ;;  %v6228_v31 = vld [vmem:[#allocation9 + $0x2e4] ss:$8 sps:$4 sm:$0xff]   ;;  %v6226_v0 = vld [vmem:[#allocation9 + $0x2e0] ss:$8 sps:$4 sm:$0xff]  }
 0x9d7   : > { %4382 = vmatpush1.bf16.msra.mxu0 %v6145_v12  ;;  %v6231_v12 = vld [vmem:[#allocation9 + $0x2f4] ss:$8 sps:$4 sm:$0xff]  }
 0x9d8   : > { %4383 = vmatprep.subr.bf16.mxu0 %v6150_v27  ;;  %v6229_v27 = vld [vmem:[#allocation9 + $0x2f0] ss:$8 sps:$4 sm:$0xff]  }
 0x9db   : > { %4384 = vmatpush1.bf16.msra.mxu0 %v6148_v54 }
 0x9dc   : > { %4385 = vmatprep.subr.bf16.mxu0 %v6153_v20 }
 0x9df   : > { %4386 = vmatpush1.bf16.msra.mxu0 %v6151_v41 }
 0x9e0   : > { %4387 = vmatprep.subr.bf16.mxu0 %v6156_v51 }
 0x9e3   : > { %4388 = vmatpush1.bf16.msra.mxu0 %v6154_v49 }
 0x9e4   : > { %4389 = vmatprep.subr.bf16.mxu0 %v6159_v30 }
 0x9e7   : > { %4390 = vmatpush1.bf16.msra.mxu0 %v6157_v13 }
 0x9e8   : > { %4391 = vmatprep.subr.bf16.mxu0 %v6162_v47 }
 0x9eb   : > { %4392 = vmatpush1.bf16.msra.mxu0 %v6160_v43 }
 0x9ec   : > { %4393 = vmatprep.subr.bf16.mxu0 %v6165_v6 }
 0x9ef   : > { %4394 = vmatpush1.bf16.msra.mxu0 %v6163_v33 }
 0x9f0   : > { %4395 = vmatprep.subr.bf16.mxu0 %v6168_v1 }
 0x9f3   : > { %4396 = vmatpush1.bf16.msra.mxu0 %v6166_v57 }
 0x9f4   : > { %4397 = vmatprep.subr.bf16.mxu0 %v6171_v5 }
 0x9f7   : > { %4398 = vmatpush1.bf16.msra.mxu0 %v6169_v50 }
 0x9f8   : > { %4399 = vmatprep.subr.bf16.mxu0 %v6174_v42 }
 0x9fb   : > { %4400 = vmatpush1.bf16.msra.mxu0 %v6172_v4 }
 0x9fc   : > { %4401 = vmatprep.subr.bf16.mxu0 %v6177_v56 }
 0x9ff   : > { %4402 = vmatpush1.bf16.msra.mxu0 %v6175_v45 }
 0xa00   : > { %4403 = vmatprep.subr.bf16.mxu0 %v6180_v35 }
 0xa03   : > { %4404 = vmatpush1.bf16.msra.mxu0 %v6178_v8 }
 0xa04   : > { %4405 = vmatprep.subr.bf16.mxu0 %v6183_v53 }
 0xa07   : > { %4406 = vmatpush1.bf16.msra.mxu0 %v6181_v25 }
 0xa08   : > { %4418 = vmatprep.subr.bf16.mxu0 %v6186_v28 }
 0xa0a   : > { %4408 = vmatmul.mubr.bf16.vlgmr.msra.gmra.mrb[12].mxu0 %v3752_v10  ;;  %v6217_v10 = vld [vmem:[#allocation9 + $0x2b0] ss:$8 sps:$4 sm:$0xff]  }
 0xa0b   : > { %4419 = vmatpush1.bf16.msra.mxu0 %v6184_v32  ;;  %4450 = vmatprep.mubr.bf16.mxu0 %v3755_v24  ;;  %v6223_v24 = vld [vmem:[#allocation9 + $0x2d0] ss:$8 sps:$4 sm:$0xff]  }
 0xa0c   : > { %4420 = vmatprep.subr.bf16.mxu0 %v6189_v39 }
 0xa0f   : > { %4421 = vmatpush1.bf16.msra.mxu0 %v6187_v58 }
 0xa10   : > { %4422 = vmatprep.subr.bf16.mxu0 %v6192_v62 }
 0xa13   : > { %4423 = vmatpush1.bf16.msra.mxu0 %v6190_v3 }
 0xa14   : > { %4424 = vmatprep.subr.bf16.mxu0 %v6195_v11 }
 0xa17   : > { %4425 = vmatpush1.bf16.msra.mxu0 %v6193_v14 }
 0xa18   : > { %4426 = vmatprep.subr.bf16.mxu0 %v6198_v19 }
 0xa1b   : > { %4427 = vmatpush1.bf16.msra.mxu0 %v6196_v22 }
 0xa1c   : > { %4428 = vmatprep.subr.bf16.mxu0 %v6201_v26 }
 0xa1f   : > { %4429 = vmatpush1.bf16.msra.mxu0 %v6199_v29 }
 0xa20   : > { %4430 = vmatprep.subr.bf16.mxu0 %v6204_v34 }
 0xa23   : > { %4431 = vmatpush1.bf16.msra.mxu0 %v6202_v37 }
 0xa24   : > { %4432 = vmatprep.subr.bf16.mxu0 %v6207_v38 }
 0xa27   : > { %4433 = vmatpush1.bf16.msra.mxu0 %v6205_v40 }
 0xa28   : > { %4434 = vmatprep.subr.bf16.mxu0 %v6210_v44 }
 0xa2b   : > { %4435 = vmatpush1.bf16.msra.mxu0 %v6208_v48 }
 0xa2c   : > { %4436 = vmatprep.subr.bf16.mxu0 %v6213_v52 }
 0xa2f   : > { %4437 = vmatpush1.bf16.msra.mxu0 %v6211_v59 }
 0xa30   : > { %4438 = vmatprep.subr.bf16.mxu0 %v6216_v63 }
 0xa33   : > { %4439 = vmatpush1.bf16.msra.mxu0 %v6214_v2 }
 0xa34   : > { %4440 = vmatprep.subr.bf16.mxu0 %v6219_v7 }
 0xa37   : > { %4441 = vmatpush1.bf16.msra.mxu0 %v6217_v10 }
 0xa38   : > { %4442 = vmatprep.subr.bf16.mxu0 %v6222_v16 }
 0xa3b   : > { %4443 = vmatpush1.bf16.msra.mxu0 %v6220_v21 }
 0xa3c   : > { %4444 = vmatprep.subr.bf16.mxu0 %v6225_v23 }
 0xa3f   : > { %4445 = vmatpush1.bf16.msra.mxu0 %v6223_v24 }
 0xa40   : > { %4446 = vmatprep.subr.bf16.mxu0 %v6228_v31 }
 0xa43   : > { %4447 = vmatpush1.bf16.msra.mxu0 %v6226_v0 }
 0xa44   : > { %4448 = vmatprep.subr.bf16.mxu0 %v6231_v12 }
 0xa47   : > { %4449 = vmatpush1.bf16.msra.mxu0 %v6229_v27 }
 0xa4a   : > { %4451 = vmatmul.mubr.bf16.vlgmr.msra.gmra.mrb[12].mxu0 %v3754_v9 }
 0xb1d   : > { %v7405_v54 = vpop.f32.mrb[12].mxu0 }
 0xb1e   : > { %v7407_v20 = vpop.f32.mrb[13].mxu0  ;;  %v4475_v51 = vmul.f32 %v7405_v54, %v7405_v54 }
 0xb1f   : > { %v7409_v41 = vpop.f32.mrb[14].mxu0  ;;  %v4476_v55 = vmul.f32 %v7407_v20, %v7407_v20 }
 0xb20   : > { %v4461_v49 = vadd.f32 %v7409_v41, %v7405_v54  ;;  %v4477_v30 = vmul.f32 %v7409_v41, %v7409_v41  ;;  %v7417_v13 = vpop.f32.mrb[15].mxu0 }
 0xb21   : > { %v4468_v60 = vadd.f32 %v7417_v13, %v7407_v20  ;;  %v4478_v9 = vmul.f32 %v7417_v13, %v7417_v13 }
 0xb22   : > { %v4462_v47 = vrot.slane %v4461_v49, 4  ;;  %v4479_v43 = vadd.f32 %v4477_v30, %v4475_v51 }
 0xb23   : > { %v4469_v6 = vrot.slane %v4468_v60, 4  ;;  %v4486_v33 = vadd.f32 %v4478_v9, %v4476_v55 }
 0xb24   : > { %v4463_v1 = vadd.f32 %v4462_v47, %v4461_v49  ;;  %v4480_v57 = vrot.slane %v4479_v43, 4 }
 0xb25   : > { %v4470_v5 = vadd.f32 %v4469_v6, %v4468_v60  ;;  %v4487_v50 = vrot.slane %v4486_v33, 4 }
 0xb26   : > { %v4464_v42 = vrot.slane %v4463_v1, 2  ;;  %v4481_v4 = vadd.f32 %v4480_v57, %v4479_v43 }
 0xb27   : > { %v4471_v56 = vrot.slane %v4470_v5, 2  ;;  %v4488_v45 = vadd.f32 %v4487_v50, %v4486_v33 }
 0xb28   : > { %v4465_v35 = vadd.f32 %v4464_v42, %v4463_v1  ;;  %v4482_v8 = vrot.slane %v4481_v4, 2 }
 0xb29   : > { %v4472_v53 = vadd.f32 %v4471_v56, %v4470_v5  ;;  %v4489_v25 = vrot.slane %v4488_v45, 2 }
 0xb2a   : > { %v4466_v28 = vrot.slane %v4465_v35, 1  ;;  %v4483_v32 = vadd.f32 %v4482_v8, %v4481_v4 }
 0xb2b   : > { %v4473_v39 = vrot.slane %v4472_v53, 1  ;;  %v4490_v58 = vadd.f32 %v4489_v25, %v4488_v45 }
 0xb2c   : > { %v4484_v62 = vrot.slane %v4483_v32, 1  ;;  %v4467_v11 = vadd.f32 %v4466_v28, %v4465_v35 }
 0xb2d   : > { %v4491_v3 = vrot.slane %v4490_v58, 1  ;;  %v4474_v19 = vadd.f32 %v4473_v39, %v4472_v53 }
 0xb2e   : > { %v4485_v14 = vadd.f32 %v4484_v62, %v4483_v32 }
 0xb2f   : > { %v4492_v22 = vadd.f32 %v4491_v3, %v4490_v58 }
 0xb30   : > { %v4493_v26 = vsel %vm746_vm1, %v4467_v11, %v4485_v14 }
 0xb31   : > { %v4494_v29 = vsel %vm746_vm1, %v4474_v19, %v4492_v22 }
 0xb32   : > { %4559 = vmatprep.mubr.f32.mxu1 %v4494_v29 }
 0xb33   : > { %4560 = vmatmul.mubr.f32.vlgmr.msra.gmra.mrb[16].mxu1 %v4493_v26 }
 0xc06   : > { %v4561_v34 = vpop.f32.mrb[16].mxu1 }
 0xc07   : > { %v4566_v37 = vmul.f32 0.00390625, %v4561_v34  ;;  %v4563_v38 = vpop.f32.mrb[17].mxu1 }
 0xc08   : > { %v4567_v40 = vmul.f32 0.00390625, %v4563_v38 }
 0xc09   : > { %v4568_v44 = vmul.f32 %v4566_v37, %v4566_v37  ;;  %v4581_v48 = vrot.slane %v4566_v37, %v6987_v36 }
 0xc0a   : > { %v4569_v52 = vmul.f32 %v4567_v40, %v4567_v40  ;;  %v4585_v59 = vrot.slane %v4567_v40, %v6987_v36 }
 0xc0b   : > { %v4572_v63 = vrot.slane %v4568_v44, 7  ;;  %v4586_v2 = vsub.f32 %v7405_v54, %v4581_v48  ;;  %v4588_v7 = vsub.f32 %v7409_v41, %v4581_v48 }
 0xc0c   : > { %v4573_v10 = vrot.slane %v4569_v52, 7  ;;  %v4587_v16 = vsub.f32 %v7407_v20, %v4585_v59  ;;  %v4589_v21 = vsub.f32 %v7417_v13, %v4585_v59 }
 0xc0d   : > { %v4576_v23 = vsub.f32 %v4566_v37, %v4572_v63 }
 0xc0e   : > { %v4577_v24 = vsub.f32 %v4567_v40, %v4573_v10 }
 0xc0f   : > { %v4590_v31 = vadd.f32 1e-05, %v4576_v23 }
 0xc10   : > { %v4591_v0 = vadd.f32 1e-05, %v4577_v24 }
 0xc11   : > { %6248 = vrsqrt.f32 %v4590_v31 }
 0xc12   : > { %6250 = vrsqrt.f32 %v4591_v0 }
 0xc1b   : > { %v6249_v12 = vpop.eup %6248 }
 0xc1c   : > { %v6251_v27 = vpop.eup %6250  ;;  %v4597_v36 = vrot.slane %v6249_v12, %v6990_v46 }
 0xc1d   : > { %v4601_v54 = vrot.slane %v6251_v27, %v6990_v46 }
 0xc1e   : > { %v4602_v51 = vmul.f32 %v4597_v36, %v4586_v2  ;;  %v4604_v41 = vmul.f32 %v4597_v36, %v4588_v7 }
 0xc1f   : > { %v4603_v20 = vmul.f32 %v4601_v54, %v4587_v16  ;;  %v4605_v49 = vmul.f32 %v4601_v54, %v4589_v21 }
 0xc20   : > { %v4606_v30 = vadd.f32 %v4602_v51, %v7232_v18  ;;  %v4608_v13 = vadd.f32 %v4604_v41, %v7235_v61 }
 0xc21   : > { %v4607_v55 = vadd.f32 %v4603_v20, %v7238_v15  ;;  %v4609_v60 = vadd.f32 %v4605_v49, %v7241_v17 }
 0xc22   : > { %4610 = vst [vmem:[%s351_s15] sm:$0xff] %v4606_v30  ;;  %4612 = vst [vmem:[%s351_s15 + $0x10] sm:$0xff] %v4608_v13 }
 0xc23   : > { %4611 = vst [vmem:[%s351_s15 + $0x8] sm:$0xff] %v4607_v55  ;;  %4613 = vst [vmem:[%s351_s15 + $0x18] sm:$0xff] %v4609_v60 }
 0xc24 PF: > { %s20_s24 = sadd.s32 1, %s6410_s24  }
 0xc25   : > { %p17_p6 = scmp.ge.s32.totalorder %s20_s24, 4  }
 0xc27   :  { %19 = sbr.rel (!%p17_p6) target bundleno = 3 (0x3), region = 99 }
 0xc2e   :  { %4635 = vsyncpa [#allocation3], 1 }
 0xc2f   :  { %4637 = vsyncpa [#allocation3 + $0x1], 1 }
 0xc30   :  { %4638 = vsyncpa [#allocation5], 1 }
 0xc31   :  { %4639 = vsyncpa [#allocation8], 1 }

</bundles_post_ra>
